<compile_context>
chip_gen: v7x
topology: tpu7x:2x2x1
jax: 0.10.0
libtpu: 0.0.40
codegen_flags: <defaults>
</compile_context>

<pallas_src>
import functools

import jax
import jax.numpy as jnp
from jax.experimental import pallas as pl
from jax.experimental.pallas import tpu as pltpu


# ----------------------------- config ---------------------------------------
SIGNAL_DIM = 32
VISUAL_DIM = 48
PREDICATE_DIM = 24
FUSION_DIM = 128

SIGNAL_WEIGHT = 0.4
VIDEO_WEIGHT = 0.35
PREDICATE_WEIGHT = 0.25

BATCH = 16
LANE = 128  # pad narrow first-layer feature widths up to one full lane group

# layer widths per branch: (in, out) chains
SIGNAL_DIMS = [(SIGNAL_DIM, 64), (64, 128), (128, 256), (256, FUSION_DIM)]
VISUAL_DIMS = [(VISUAL_DIM, 1024), (1024, 512), (512, 256), (256, FUSION_DIM)]
PREDICATE_DIMS = [(PREDICATE_DIM, 64), (64, 128), (128, 256), (256, FUSION_DIM)]
FUSION_DIMS = [(FUSION_DIM, 256), (256, 256), (256, 256), (256, FUSION_DIM)]


# --------------------------- parameter init ---------------------------------
def kaiming_linear_params(key, dims):
    """Kaiming normal, mode='fan_out', relu gain; bias = 0 (as in _init_weights)."""
    ws, bs = [], []
    for (din, dout) in dims:
        key, sub = jax.random.split(key)
        std = (2.0 / dout) ** 0.5  # fan_out = out_features for nn.Linear
        w = std * jax.random.normal(sub, (din, dout), dtype=jnp.float32)
        b = jnp.zeros((1, dout), dtype=jnp.float32)
        ws.append(w)
        bs.append(b)
    return key, ws, bs


# ------------------------------ kernel ---------------------------------------
def _mlp4(x, params):
    """4x (Linear -> ReLU). bf16 dot operands, f32 accumulation/epilogue."""
    h = x
    for (w_ref, b_ref) in params:
        h = jnp.dot(h.astype(jnp.bfloat16), w_ref[...],
                    preferred_element_type=jnp.float32) + b_ref[...]
        h = jnp.maximum(h, 0.0)  # ReLU after every Linear (incl. the last one)
    return h  # f32


def _l2_normalize(x):
    # Matches x / (||x|| + 1e-16): rsqrt runs on the EUP; the max() guard makes
    # all-zero rows map to exactly 0 (same as the original formula).
    ss = jnp.sum(x * x, axis=-1, keepdims=True)
    inv = jax.lax.rsqrt(jnp.maximum(ss, 1e-30))
    return x * inv


def fusion_forward_kernel(signal_w, video_w, predicate_w,
                          sig_ref, vis_ref, pred_ref, *rest):
    out_ref = rest[-1]
    prefs = rest[:-1]
    # 4 layers per branch, each (W, b) -> 8 refs per branch.
    sp = [(prefs[0 + 2 * i], prefs[1 + 2 * i]) for i in range(4)]
    vp = [(prefs[8 + 2 * i], prefs[9 + 2 * i]) for i in range(4)]
    pp = [(prefs[16 + 2 * i], prefs[17 + 2 * i]) for i in range(4)]
    fp = [(prefs[24 + 2 * i], prefs[25 + 2 * i]) for i in range(4)]

    s = _l2_normalize(_mlp4(sig_ref[...], sp))
    v = _l2_normalize(_mlp4(vis_ref[...], vp))
    p = _l2_normalize(_mlp4(pred_ref[...], pp))

    fused = signal_w * s + video_w * v + predicate_w * p          # f32
    out = _l2_normalize(_mlp4(fused, fp))
    out_ref[...] = out.astype(out_ref.dtype)


# ----------------------------- wrapper ---------------------------------------
def _pad_lanes(x, to=LANE):
    d = x.shape[-1]
    return x if d >= to else jnp.pad(x, ((0, 0), (0, to - d)))


def _pad_rows(w, to=LANE):
    din = w.shape[0]
    return w if din >= to else jnp.pad(w, ((0, to - din), (0, 0)))


def fusion_model_forward(visual_embedding, signal_embedding, predicate_embedding,
                         params):
    """params = dict with lists 'sw','sb','vw','vb','pw','pb','fw','fb'."""
    B = signal_embedding.shape[0]

    # bf16 matmul operands; zero-pad narrow feature widths to 128 lanes.
    sig = _pad_lanes(signal_embedding.astype(jnp.bfloat16))
    vis = _pad_lanes(visual_embedding.astype(jnp.bfloat16))
    pred = _pad_lanes(predicate_embedding.astype(jnp.bfloat16))

    # Flatten params in the exact order the kernel expects.
    flat_params = []
    for key_w, key_b in (("sw", "sb"), ("vw", "vb"), ("pw", "pb"), ("fw", "fb")):
        for li, (w, b) in enumerate(zip(params[key_w], params[key_b])):
            w = w.astype(jnp.bfloat16)
            if li == 0:
                w = _pad_rows(w)   # zero rows align with zero-padded input lanes
            flat_params.append(w)
            flat_params.append(b.astype(jnp.float32))

    def full_spec(arr):
        return pl.BlockSpec(arr.shape, lambda i: (0, 0))

    in_specs = ([full_spec(sig), full_spec(vis), full_spec(pred)]
                + [full_spec(a) for a in flat_params])
    out_spec = pl.BlockSpec((B, FUSION_DIM), lambda i: (0, 0))

    kernel = functools.partial(
        fusion_forward_kernel, SIGNAL_WEIGHT, VIDEO_WEIGHT, PREDICATE_WEIGHT)

    return pl.pallas_call(
        kernel,
        out_shape=jax.ShapeDtypeStruct((B, FUSION_DIM), jnp.float32),
        grid=(1,),                       # single invocation: whole batch at once
        in_specs=in_specs,
        out_specs=out_spec,
        compiler_params=pltpu.CompilerParams(
            dimension_semantics=("arbitrary",),
            vmem_limit_bytes=24 << 20,   # ~5 MiB actually needed; v7x-safe limit
        ),
    )(sig, vis, pred, *flat_params)


# --------------------------- pure-JAX reference -------------------------------
def _ref_mlp4(x, ws, bs):
    h = x
    for w, b in zip(ws, bs):
        h = jnp.dot(h.astype(jnp.bfloat16), w.astype(jnp.bfloat16),
                    preferred_element_type=jnp.float32) + b
        h = jnp.maximum(h, 0.0)
    return h


def _ref_l2_normalize(x):
    n = jnp.sqrt(jnp.sum(x * x, axis=-1, keepdims=True))
    return x / (n + 1e-16)


def fusion_model_ref(visual, signal, predicate, params):
    s = _ref_l2_normalize(_ref_mlp4(signal, params["sw"], params["sb"]))
    v = _ref_l2_normalize(_ref_mlp4(visual, params["vw"], params["vb"]))
    p = _ref_l2_normalize(_ref_mlp4(predicate, params["pw"], params["pb"]))
    fused = SIGNAL_WEIGHT * s + VIDEO_WEIGHT * v + PREDICATE_WEIGHT * p
    out = _ref_mlp4(fused, params["fw"], params["fb"])
    return _ref_l2_normalize(out)


# ------------------------------- main -----------------------------------------
if __name__ == "__main__":
    key = jax.random.PRNGKey(0)

    key, sw, sb = kaiming_linear_params(key, SIGNAL_DIMS)
    key, vw, vb = kaiming_linear_params(key, VISUAL_DIMS)
    key, pw, pb = kaiming_linear_params(key, PREDICATE_DIMS)
    key, fw, fb = kaiming_linear_params(key, FUSION_DIMS)
    params = dict(sw=sw, sb=sb, vw=vw, vb=vb, pw=pw, pb=pb, fw=fw, fb=fb)

    key, k1, k2, k3 = jax.random.split(key, 4)
    visual_embedding = jax.random.normal(k1, (BATCH, VISUAL_DIM), dtype=jnp.float32)
    signal_embedding = jax.random.normal(k2, (BATCH, SIGNAL_DIM), dtype=jnp.float32)
    predicate_embedding = jax.random.normal(k3, (BATCH, PREDICATE_DIM), dtype=jnp.float32)

    out = fusion_model_forward(visual_embedding, signal_embedding,
                               predicate_embedding, params)
    out = jax.block_until_ready(out)

    ref = fusion_model_ref(visual_embedding, signal_embedding,
                           predicate_embedding, params)
    assert out.shape == (BATCH, FUSION_DIM)
    assert jnp.allclose(out, ref, atol=2e-3, rtol=2e-3), "mismatch vs pure-JAX ref"

    print("KERNEL_OK")
</pallas_src>

<mosaic_0001>
module attributes {stable_mosaic.version = 11 : i64} {
  func.func @fusion_forward_kernel(%arg0: i32, %arg1: memref<16x128xbf16, #tpu.memory_space<vmem>>, %arg2: memref<16x128xbf16, #tpu.memory_space<vmem>>, %arg3: memref<16x128xbf16, #tpu.memory_space<vmem>>, %arg4: memref<128x64xbf16, #tpu.memory_space<vmem>>, %arg5: memref<1x64xf32, #tpu.memory_space<vmem>>, %arg6: memref<64x128xbf16, #tpu.memory_space<vmem>>, %arg7: memref<1x128xf32, #tpu.memory_space<vmem>>, %arg8: memref<128x256xbf16, #tpu.memory_space<vmem>>, %arg9: memref<1x256xf32, #tpu.memory_space<vmem>>, %arg10: memref<256x128xbf16, #tpu.memory_space<vmem>>, %arg11: memref<1x128xf32, #tpu.memory_space<vmem>>, %arg12: memref<128x1024xbf16, #tpu.memory_space<vmem>>, %arg13: memref<1x1024xf32, #tpu.memory_space<vmem>>, %arg14: memref<1024x512xbf16, #tpu.memory_space<vmem>>, %arg15: memref<1x512xf32, #tpu.memory_space<vmem>>, %arg16: memref<512x256xbf16, #tpu.memory_space<vmem>>, %arg17: memref<1x256xf32, #tpu.memory_space<vmem>>, %arg18: memref<256x128xbf16, #tpu.memory_space<vmem>>, %arg19: memref<1x128xf32, #tpu.memory_space<vmem>>, %arg20: memref<128x64xbf16, #tpu.memory_space<vmem>>, %arg21: memref<1x64xf32, #tpu.memory_space<vmem>>, %arg22: memref<64x128xbf16, #tpu.memory_space<vmem>>, %arg23: memref<1x128xf32, #tpu.memory_space<vmem>>, %arg24: memref<128x256xbf16, #tpu.memory_space<vmem>>, %arg25: memref<1x256xf32, #tpu.memory_space<vmem>>, %arg26: memref<256x128xbf16, #tpu.memory_space<vmem>>, %arg27: memref<1x128xf32, #tpu.memory_space<vmem>>, %arg28: memref<128x256xbf16, #tpu.memory_space<vmem>>, %arg29: memref<1x256xf32, #tpu.memory_space<vmem>>, %arg30: memref<256x256xbf16, #tpu.memory_space<vmem>>, %arg31: memref<1x256xf32, #tpu.memory_space<vmem>>, %arg32: memref<256x256xbf16, #tpu.memory_space<vmem>>, %arg33: memref<1x256xf32, #tpu.memory_space<vmem>>, %arg34: memref<256x128xbf16, #tpu.memory_space<vmem>>, %arg35: memref<1x128xf32, #tpu.memory_space<vmem>>, %arg36: memref<16x128xf32, #tpu.memory_space<vmem>>) attributes {dimension_semantics = [#tpu.dimension_semantics<arbitrary>], iteration_bounds = array<i64: 1>, scalar_prefetch = 0 : i64, scratch_operands = 0 : i64, tpu.core_type = #tpu.core_type<tc>, window_params = [{pipeline_mode = #tpu.pipeline_mode<synchronous>, transform_indices = @transform_0, window_bounds = array<i64: 16, 128>}, {pipeline_mode = #tpu.pipeline_mode<synchronous>, transform_indices = @transform_1, window_bounds = array<i64: 16, 128>}, {pipeline_mode = #tpu.pipeline_mode<synchronous>, transform_indices = @transform_2, window_bounds = array<i64: 16, 128>}, {pipeline_mode = #tpu.pipeline_mode<synchronous>, transform_indices = @transform_3, window_bounds = array<i64: 128, 64>}, {pipeline_mode = #tpu.pipeline_mode<synchronous>, transform_indices = @transform_4, window_bounds = array<i64: 1, 64>}, {pipeline_mode = #tpu.pipeline_mode<synchronous>, transform_indices = @transform_5, window_bounds = array<i64: 64, 128>}, {pipeline_mode = #tpu.pipeline_mode<synchronous>, transform_indices = @transform_6, window_bounds = array<i64: 1, 128>}, {pipeline_mode = #tpu.pipeline_mode<synchronous>, transform_indices = @transform_7, window_bounds = array<i64: 128, 256>}, {pipeline_mode = #tpu.pipeline_mode<synchronous>, transform_indices = @transform_8, window_bounds = array<i64: 1, 256>}, {pipeline_mode = #tpu.pipeline_mode<synchronous>, transform_indices = @transform_9, window_bounds = array<i64: 256, 128>}, {pipeline_mode = #tpu.pipeline_mode<synchronous>, transform_indices = @transform_10, window_bounds = array<i64: 1, 128>}, {pipeline_mode = #tpu.pipeline_mode<synchronous>, transform_indices = @transform_11, window_bounds = array<i64: 128, 1024>}, {pipeline_mode = #tpu.pipeline_mode<synchronous>, transform_indices = @transform_12, window_bounds = array<i64: 1, 1024>}, {pipeline_mode = #tpu.pipeline_mode<synchronous>, transform_indices = @transform_13, window_bounds = array<i64: 1024, 512>}, {pipeline_mode = #tpu.pipeline_mode<synchronous>, transform_indices = @transform_14, window_bounds = array<i64: 1, 512>}, {pipeline_mode = #tpu.pipeline_mode<synchronous>, transform_indices = @transform_15, window_bounds = array<i64: 512, 256>}, {pipeline_mode = #tpu.pipeline_mode<synchronous>, transform_indices = @transform_16, window_bounds = array<i64: 1, 256>}, {pipeline_mode = #tpu.pipeline_mode<synchronous>, transform_indices = @transform_17, window_bounds = array<i64: 256, 128>}, {pipeline_mode = #tpu.pipeline_mode<synchronous>, transform_indices = @transform_18, window_bounds = array<i64: 1, 128>}, {pipeline_mode = #tpu.pipeline_mode<synchronous>, transform_indices = @transform_19, window_bounds = array<i64: 128, 64>}, {pipeline_mode = #tpu.pipeline_mode<synchronous>, transform_indices = @transform_20, window_bounds = array<i64: 1, 64>}, {pipeline_mode = #tpu.pipeline_mode<synchronous>, transform_indices = @transform_21, window_bounds = array<i64: 64, 128>}, {pipeline_mode = #tpu.pipeline_mode<synchronous>, transform_indices = @transform_22, window_bounds = array<i64: 1, 128>}, {pipeline_mode = #tpu.pipeline_mode<synchronous>, transform_indices = @transform_23, window_bounds = array<i64: 128, 256>}, {pipeline_mode = #tpu.pipeline_mode<synchronous>, transform_indices = @transform_24, window_bounds = array<i64: 1, 256>}, {pipeline_mode = #tpu.pipeline_mode<synchronous>, transform_indices = @transform_25, window_bounds = array<i64: 256, 128>}, {pipeline_mode = #tpu.pipeline_mode<synchronous>, transform_indices = @transform_26, window_bounds = array<i64: 1, 128>}, {pipeline_mode = #tpu.pipeline_mode<synchronous>, transform_indices = @transform_27, window_bounds = array<i64: 128, 256>}, {pipeline_mode = #tpu.pipeline_mode<synchronous>, transform_indices = @transform_28, window_bounds = array<i64: 1, 256>}, {pipeline_mode = #tpu.pipeline_mode<synchronous>, transform_indices = @transform_29, window_bounds = array<i64: 256, 256>}, {pipeline_mode = #tpu.pipeline_mode<synchronous>, transform_indices = @transform_30, window_bounds = array<i64: 1, 256>}, {pipeline_mode = #tpu.pipeline_mode<synchronous>, transform_indices = @transform_31, window_bounds = array<i64: 256, 256>}, {pipeline_mode = #tpu.pipeline_mode<synchronous>, transform_indices = @transform_32, window_bounds = array<i64: 1, 256>}, {pipeline_mode = #tpu.pipeline_mode<synchronous>, transform_indices = @transform_33, window_bounds = array<i64: 256, 128>}, {pipeline_mode = #tpu.pipeline_mode<synchronous>, transform_indices = @transform_34, window_bounds = array<i64: 1, 128>}, {pipeline_mode = #tpu.pipeline_mode<synchronous>, transform_indices = @transform_35, window_bounds = array<i64: 16, 128>}]} {
    %c0 = arith.constant 0 : index
    %c0_0 = arith.constant 0 : index
    %0 = vector.load %arg1[%c0, %c0_0] : memref<16x128xbf16, #tpu.memory_space<vmem>>, vector<16x128xbf16>
    %c0_1 = arith.constant 0 : index
    %c0_2 = arith.constant 0 : index
    %1 = vector.load %arg4[%c0_1, %c0_2] : memref<128x64xbf16, #tpu.memory_space<vmem>>, vector<128x64xbf16>
    %cst = arith.constant dense<0.000000e+00> : vector<16x64xf32>
    %2 = tpu.matmul %0, %1, %cst {dimension_numbers = #tpu.dot_dimension_numbers<[1], [0], [0], [1], [0, 0, 1, 1], [], []>} : vector<16x128xbf16>, vector<128x64xbf16>, vector<16x64xf32> -> vector<16x64xf32>
    %c0_3 = arith.constant 0 : index
    %c0_4 = arith.constant 0 : index
    %3 = vector.load %arg5[%c0_3, %c0_4] : memref<1x64xf32, #tpu.memory_space<vmem>>, vector<1x64xf32>
    %4 = vector.broadcast %3 : vector<1x64xf32> to vector<16x64xf32>
    %5 = arith.addf %2, %4 : vector<16x64xf32>
    %cst_5 = arith.constant 0.000000e+00 : f32
    %6 = vector.broadcast %cst_5 : f32 to vector<16x64xf32>
    %7 = arith.maximumf %5, %6 : vector<16x64xf32>
    %8 = arith.truncf %7 : vector<16x64xf32> to vector<16x64xbf16>
    %c0_6 = arith.constant 0 : index
    %c0_7 = arith.constant 0 : index
    %9 = vector.load %arg6[%c0_6, %c0_7] : memref<64x128xbf16, #tpu.memory_space<vmem>>, vector<64x128xbf16>
    %cst_8 = arith.constant dense<0.000000e+00> : vector<16x128xf32>
    %10 = tpu.matmul %8, %9, %cst_8 {dimension_numbers = #tpu.dot_dimension_numbers<[1], [0], [0], [1], [0, 0, 1, 1], [], []>} : vector<16x64xbf16>, vector<64x128xbf16>, vector<16x128xf32> -> vector<16x128xf32>
    %c0_9 = arith.constant 0 : index
    %c0_10 = arith.constant 0 : index
    %11 = vector.load %arg7[%c0_9, %c0_10] : memref<1x128xf32, #tpu.memory_space<vmem>>, vector<1x128xf32>
    %12 = vector.broadcast %11 : vector<1x128xf32> to vector<16x128xf32>
    %13 = arith.addf %10, %12 : vector<16x128xf32>
    %cst_11 = arith.constant 0.000000e+00 : f32
    %14 = vector.broadcast %cst_11 : f32 to vector<16x128xf32>
    %15 = arith.maximumf %13, %14 : vector<16x128xf32>
    %16 = arith.truncf %15 : vector<16x128xf32> to vector<16x128xbf16>
    %c0_12 = arith.constant 0 : index
    %c0_13 = arith.constant 0 : index
    %17 = vector.load %arg8[%c0_12, %c0_13] : memref<128x256xbf16, #tpu.memory_space<vmem>>, vector<128x256xbf16>
    %cst_14 = arith.constant dense<0.000000e+00> : vector<16x256xf32>
    %18 = tpu.matmul %16, %17, %cst_14 {dimension_numbers = #tpu.dot_dimension_numbers<[1], [0], [0], [1], [0, 0, 1, 1], [], []>} : vector<16x128xbf16>, vector<128x256xbf16>, vector<16x256xf32> -> vector<16x256xf32>
    %c0_15 = arith.constant 0 : index
    %c0_16 = arith.constant 0 : index
    %19 = vector.load %arg9[%c0_15, %c0_16] : memref<1x256xf32, #tpu.memory_space<vmem>>, vector<1x256xf32>
    %20 = vector.broadcast %19 : vector<1x256xf32> to vector<16x256xf32>
    %21 = arith.addf %18, %20 : vector<16x256xf32>
    %cst_17 = arith.constant 0.000000e+00 : f32
    %22 = vector.broadcast %cst_17 : f32 to vector<16x256xf32>
    %23 = arith.maximumf %21, %22 : vector<16x256xf32>
    %24 = arith.truncf %23 : vector<16x256xf32> to vector<16x256xbf16>
    %c0_18 = arith.constant 0 : index
    %c0_19 = arith.constant 0 : index
    %25 = vector.load %arg10[%c0_18, %c0_19] : memref<256x128xbf16, #tpu.memory_space<vmem>>, vector<256x128xbf16>
    %cst_20 = arith.constant dense<0.000000e+00> : vector<16x128xf32>
    %26 = tpu.matmul %24, %25, %cst_20 {dimension_numbers = #tpu.dot_dimension_numbers<[1], [0], [0], [1], [0, 0, 1, 1], [], []>} : vector<16x256xbf16>, vector<256x128xbf16>, vector<16x128xf32> -> vector<16x128xf32>
    %c0_21 = arith.constant 0 : index
    %c0_22 = arith.constant 0 : index
    %27 = vector.load %arg11[%c0_21, %c0_22] : memref<1x128xf32, #tpu.memory_space<vmem>>, vector<1x128xf32>
    %28 = vector.broadcast %27 : vector<1x128xf32> to vector<16x128xf32>
    %29 = arith.addf %26, %28 : vector<16x128xf32>
    %cst_23 = arith.constant 0.000000e+00 : f32
    %30 = vector.broadcast %cst_23 : f32 to vector<16x128xf32>
    %31 = arith.maximumf %29, %30 : vector<16x128xf32>
    %32 = arith.mulf %31, %31 : vector<16x128xf32>
    %cst_24 = arith.constant dense<0.000000e+00> : vector<16xf32>
    %33 = vector.multi_reduction <add>, %32, %cst_24 [1] : vector<16x128xf32> to vector<16xf32>
    %34 = vector.shape_cast %33 : vector<16xf32> to vector<16x1xf32>
    %cst_25 = arith.constant 1.000000e-30 : f32
    %35 = vector.broadcast %cst_25 : f32 to vector<16x1xf32>
    %36 = arith.maximumf %34, %35 : vector<16x1xf32>
    %37 = math.rsqrt %36 : vector<16x1xf32>
    %38 = vector.broadcast %37 : vector<16x1xf32> to vector<16x128xf32>
    %39 = arith.mulf %31, %38 : vector<16x128xf32>
    %c0_26 = arith.constant 0 : index
    %c0_27 = arith.constant 0 : index
    %40 = vector.load %arg2[%c0_26, %c0_27] : memref<16x128xbf16, #tpu.memory_space<vmem>>, vector<16x128xbf16>
    %c0_28 = arith.constant 0 : index
    %c0_29 = arith.constant 0 : index
    %41 = vector.load %arg12[%c0_28, %c0_29] : memref<128x1024xbf16, #tpu.memory_space<vmem>>, vector<128x1024xbf16>
    %cst_30 = arith.constant dense<0.000000e+00> : vector<16x1024xf32>
    %42 = tpu.matmul %40, %41, %cst_30 {dimension_numbers = #tpu.dot_dimension_numbers<[1], [0], [0], [1], [0, 0, 1, 1], [], []>} : vector<16x128xbf16>, vector<128x1024xbf16>, vector<16x1024xf32> -> vector<16x1024xf32>
    %c0_31 = arith.constant 0 : index
    %c0_32 = arith.constant 0 : index
    %43 = vector.load %arg13[%c0_31, %c0_32] : memref<1x1024xf32, #tpu.memory_space<vmem>>, vector<1x1024xf32>
    %44 = vector.broadcast %43 : vector<1x1024xf32> to vector<16x1024xf32>
    %45 = arith.addf %42, %44 : vector<16x1024xf32>
    %cst_33 = arith.constant 0.000000e+00 : f32
    %46 = vector.broadcast %cst_33 : f32 to vector<16x1024xf32>
    %47 = arith.maximumf %45, %46 : vector<16x1024xf32>
    %48 = arith.truncf %47 : vector<16x1024xf32> to vector<16x1024xbf16>
    %c0_34 = arith.constant 0 : index
    %c0_35 = arith.constant 0 : index
    %49 = vector.load %arg14[%c0_34, %c0_35] : memref<1024x512xbf16, #tpu.memory_space<vmem>>, vector<1024x512xbf16>
    %cst_36 = arith.constant dense<0.000000e+00> : vector<16x512xf32>
    %50 = tpu.matmul %48, %49, %cst_36 {dimension_numbers = #tpu.dot_dimension_numbers<[1], [0], [0], [1], [0, 0, 1, 1], [], []>} : vector<16x1024xbf16>, vector<1024x512xbf16>, vector<16x512xf32> -> vector<16x512xf32>
    %c0_37 = arith.constant 0 : index
    %c0_38 = arith.constant 0 : index
    %51 = vector.load %arg15[%c0_37, %c0_38] : memref<1x512xf32, #tpu.memory_space<vmem>>, vector<1x512xf32>
    %52 = vector.broadcast %51 : vector<1x512xf32> to vector<16x512xf32>
    %53 = arith.addf %50, %52 : vector<16x512xf32>
    %cst_39 = arith.constant 0.000000e+00 : f32
    %54 = vector.broadcast %cst_39 : f32 to vector<16x512xf32>
    %55 = arith.maximumf %53, %54 : vector<16x512xf32>
    %56 = arith.truncf %55 : vector<16x512xf32> to vector<16x512xbf16>
    %c0_40 = arith.constant 0 : index
    %c0_41 = arith.constant 0 : index
    %57 = vector.load %arg16[%c0_40, %c0_41] : memref<512x256xbf16, #tpu.memory_space<vmem>>, vector<512x256xbf16>
    %cst_42 = arith.constant dense<0.000000e+00> : vector<16x256xf32>
    %58 = tpu.matmul %56, %57, %cst_42 {dimension_numbers = #tpu.dot_dimension_numbers<[1], [0], [0], [1], [0, 0, 1, 1], [], []>} : vector<16x512xbf16>, vector<512x256xbf16>, vector<16x256xf32> -> vector<16x256xf32>
    %c0_43 = arith.constant 0 : index
    %c0_44 = arith.constant 0 : index
    %59 = vector.load %arg17[%c0_43, %c0_44] : memref<1x256xf32, #tpu.memory_space<vmem>>, vector<1x256xf32>
    %60 = vector.broadcast %59 : vector<1x256xf32> to vector<16x256xf32>
    %61 = arith.addf %58, %60 : vector<16x256xf32>
    %cst_45 = arith.constant 0.000000e+00 : f32
    %62 = vector.broadcast %cst_45 : f32 to vector<16x256xf32>
    %63 = arith.maximumf %61, %62 : vector<16x256xf32>
    %64 = arith.truncf %63 : vector<16x256xf32> to vector<16x256xbf16>
    %c0_46 = arith.constant 0 : index
    %c0_47 = arith.constant 0 : index
    %65 = vector.load %arg18[%c0_46, %c0_47] : memref<256x128xbf16, #tpu.memory_space<vmem>>, vector<256x128xbf16>
    %cst_48 = arith.constant dense<0.000000e+00> : vector<16x128xf32>
    %66 = tpu.matmul %64, %65, %cst_48 {dimension_numbers = #tpu.dot_dimension_numbers<[1], [0], [0], [1], [0, 0, 1, 1], [], []>} : vector<16x256xbf16>, vector<256x128xbf16>, vector<16x128xf32> -> vector<16x128xf32>
    %c0_49 = arith.constant 0 : index
    %c0_50 = arith.constant 0 : index
    %67 = vector.load %arg19[%c0_49, %c0_50] : memref<1x128xf32, #tpu.memory_space<vmem>>, vector<1x128xf32>
    %68 = vector.broadcast %67 : vector<1x128xf32> to vector<16x128xf32>
    %69 = arith.addf %66, %68 : vector<16x128xf32>
    %cst_51 = arith.constant 0.000000e+00 : f32
    %70 = vector.broadcast %cst_51 : f32 to vector<16x128xf32>
    %71 = arith.maximumf %69, %70 : vector<16x128xf32>
    %72 = arith.mulf %71, %71 : vector<16x128xf32>
    %cst_52 = arith.constant dense<0.000000e+00> : vector<16xf32>
    %73 = vector.multi_reduction <add>, %72, %cst_52 [1] : vector<16x128xf32> to vector<16xf32>
    %74 = vector.shape_cast %73 : vector<16xf32> to vector<16x1xf32>
    %cst_53 = arith.constant 1.000000e-30 : f32
    %75 = vector.broadcast %cst_53 : f32 to vector<16x1xf32>
    %76 = arith.maximumf %74, %75 : vector<16x1xf32>
    %77 = math.rsqrt %76 : vector<16x1xf32>
    %78 = vector.broadcast %77 : vector<16x1xf32> to vector<16x128xf32>
    %79 = arith.mulf %71, %78 : vector<16x128xf32>
    %c0_54 = arith.constant 0 : index
    %c0_55 = arith.constant 0 : index
    %80 = vector.load %arg3[%c0_54, %c0_55] : memref<16x128xbf16, #tpu.memory_space<vmem>>, vector<16x128xbf16>
    %c0_56 = arith.constant 0 : index
    %c0_57 = arith.constant 0 : index
    %81 = vector.load %arg20[%c0_56, %c0_57] : memref<128x64xbf16, #tpu.memory_space<vmem>>, vector<128x64xbf16>
    %cst_58 = arith.constant dense<0.000000e+00> : vector<16x64xf32>
    %82 = tpu.matmul %80, %81, %cst_58 {dimension_numbers = #tpu.dot_dimension_numbers<[1], [0], [0], [1], [0, 0, 1, 1], [], []>} : vector<16x128xbf16>, vector<128x64xbf16>, vector<16x64xf32> -> vector<16x64xf32>
    %c0_59 = arith.constant 0 : index
    %c0_60 = arith.constant 0 : index
    %83 = vector.load %arg21[%c0_59, %c0_60] : memref<1x64xf32, #tpu.memory_space<vmem>>, vector<1x64xf32>
    %84 = vector.broadcast %83 : vector<1x64xf32> to vector<16x64xf32>
    %85 = arith.addf %82, %84 : vector<16x64xf32>
    %cst_61 = arith.constant 0.000000e+00 : f32
    %86 = vector.broadcast %cst_61 : f32 to vector<16x64xf32>
    %87 = arith.maximumf %85, %86 : vector<16x64xf32>
    %88 = arith.truncf %87 : vector<16x64xf32> to vector<16x64xbf16>
    %c0_62 = arith.constant 0 : index
    %c0_63 = arith.constant 0 : index
    %89 = vector.load %arg22[%c0_62, %c0_63] : memref<64x128xbf16, #tpu.memory_space<vmem>>, vector<64x128xbf16>
    %cst_64 = arith.constant dense<0.000000e+00> : vector<16x128xf32>
    %90 = tpu.matmul %88, %89, %cst_64 {dimension_numbers = #tpu.dot_dimension_numbers<[1], [0], [0], [1], [0, 0, 1, 1], [], []>} : vector<16x64xbf16>, vector<64x128xbf16>, vector<16x128xf32> -> vector<16x128xf32>
    %c0_65 = arith.constant 0 : index
    %c0_66 = arith.constant 0 : index
    %91 = vector.load %arg23[%c0_65, %c0_66] : memref<1x128xf32, #tpu.memory_space<vmem>>, vector<1x128xf32>
    %92 = vector.broadcast %91 : vector<1x128xf32> to vector<16x128xf32>
    %93 = arith.addf %90, %92 : vector<16x128xf32>
    %cst_67 = arith.constant 0.000000e+00 : f32
    %94 = vector.broadcast %cst_67 : f32 to vector<16x128xf32>
    %95 = arith.maximumf %93, %94 : vector<16x128xf32>
    %96 = arith.truncf %95 : vector<16x128xf32> to vector<16x128xbf16>
    %c0_68 = arith.constant 0 : index
    %c0_69 = arith.constant 0 : index
    %97 = vector.load %arg24[%c0_68, %c0_69] : memref<128x256xbf16, #tpu.memory_space<vmem>>, vector<128x256xbf16>
    %cst_70 = arith.constant dense<0.000000e+00> : vector<16x256xf32>
    %98 = tpu.matmul %96, %97, %cst_70 {dimension_numbers = #tpu.dot_dimension_numbers<[1], [0], [0], [1], [0, 0, 1, 1], [], []>} : vector<16x128xbf16>, vector<128x256xbf16>, vector<16x256xf32> -> vector<16x256xf32>
    %c0_71 = arith.constant 0 : index
    %c0_72 = arith.constant 0 : index
    %99 = vector.load %arg25[%c0_71, %c0_72] : memref<1x256xf32, #tpu.memory_space<vmem>>, vector<1x256xf32>
    %100 = vector.broadcast %99 : vector<1x256xf32> to vector<16x256xf32>
    %101 = arith.addf %98, %100 : vector<16x256xf32>
    %cst_73 = arith.constant 0.000000e+00 : f32
    %102 = vector.broadcast %cst_73 : f32 to vector<16x256xf32>
    %103 = arith.maximumf %101, %102 : vector<16x256xf32>
    %104 = arith.truncf %103 : vector<16x256xf32> to vector<16x256xbf16>
    %c0_74 = arith.constant 0 : index
    %c0_75 = arith.constant 0 : index
    %105 = vector.load %arg26[%c0_74, %c0_75] : memref<256x128xbf16, #tpu.memory_space<vmem>>, vector<256x128xbf16>
    %cst_76 = arith.constant dense<0.000000e+00> : vector<16x128xf32>
    %106 = tpu.matmul %104, %105, %cst_76 {dimension_numbers = #tpu.dot_dimension_numbers<[1], [0], [0], [1], [0, 0, 1, 1], [], []>} : vector<16x256xbf16>, vector<256x128xbf16>, vector<16x128xf32> -> vector<16x128xf32>
    %c0_77 = arith.constant 0 : index
    %c0_78 = arith.constant 0 : index
    %107 = vector.load %arg27[%c0_77, %c0_78] : memref<1x128xf32, #tpu.memory_space<vmem>>, vector<1x128xf32>
    %108 = vector.broadcast %107 : vector<1x128xf32> to vector<16x128xf32>
    %109 = arith.addf %106, %108 : vector<16x128xf32>
    %cst_79 = arith.constant 0.000000e+00 : f32
    %110 = vector.broadcast %cst_79 : f32 to vector<16x128xf32>
    %111 = arith.maximumf %109, %110 : vector<16x128xf32>
    %112 = arith.mulf %111, %111 : vector<16x128xf32>
    %cst_80 = arith.constant dense<0.000000e+00> : vector<16xf32>
    %113 = vector.multi_reduction <add>, %112, %cst_80 [1] : vector<16x128xf32> to vector<16xf32>
    %114 = vector.shape_cast %113 : vector<16xf32> to vector<16x1xf32>
    %cst_81 = arith.constant 1.000000e-30 : f32
    %115 = vector.broadcast %cst_81 : f32 to vector<16x1xf32>
    %116 = arith.maximumf %114, %115 : vector<16x1xf32>
    %117 = math.rsqrt %116 : vector<16x1xf32>
    %118 = vector.broadcast %117 : vector<16x1xf32> to vector<16x128xf32>
    %119 = arith.mulf %111, %118 : vector<16x128xf32>
    %cst_82 = arith.constant 4.000000e-01 : f32
    %120 = vector.broadcast %cst_82 : f32 to vector<16x128xf32>
    %121 = arith.mulf %120, %39 : vector<16x128xf32>
    %cst_83 = arith.constant 3.500000e-01 : f32
    %122 = vector.broadcast %cst_83 : f32 to vector<16x128xf32>
    %123 = arith.mulf %122, %79 : vector<16x128xf32>
    %124 = arith.addf %121, %123 : vector<16x128xf32>
    %cst_84 = arith.constant 2.500000e-01 : f32
    %125 = vector.broadcast %cst_84 : f32 to vector<16x128xf32>
    %126 = arith.mulf %125, %119 : vector<16x128xf32>
    %127 = arith.addf %124, %126 : vector<16x128xf32>
    %128 = arith.truncf %127 : vector<16x128xf32> to vector<16x128xbf16>
    %c0_85 = arith.constant 0 : index
    %c0_86 = arith.constant 0 : index
    %129 = vector.load %arg28[%c0_85, %c0_86] : memref<128x256xbf16, #tpu.memory_space<vmem>>, vector<128x256xbf16>
    %cst_87 = arith.constant dense<0.000000e+00> : vector<16x256xf32>
    %130 = tpu.matmul %128, %129, %cst_87 {dimension_numbers = #tpu.dot_dimension_numbers<[1], [0], [0], [1], [0, 0, 1, 1], [], []>} : vector<16x128xbf16>, vector<128x256xbf16>, vector<16x256xf32> -> vector<16x256xf32>
    %c0_88 = arith.constant 0 : index
    %c0_89 = arith.constant 0 : index
    %131 = vector.load %arg29[%c0_88, %c0_89] : memref<1x256xf32, #tpu.memory_space<vmem>>, vector<1x256xf32>
    %132 = vector.broadcast %131 : vector<1x256xf32> to vector<16x256xf32>
    %133 = arith.addf %130, %132 : vector<16x256xf32>
    %cst_90 = arith.constant 0.000000e+00 : f32
    %134 = vector.broadcast %cst_90 : f32 to vector<16x256xf32>
    %135 = arith.maximumf %133, %134 : vector<16x256xf32>
    %136 = arith.truncf %135 : vector<16x256xf32> to vector<16x256xbf16>
    %c0_91 = arith.constant 0 : index
    %c0_92 = arith.constant 0 : index
    %137 = vector.load %arg30[%c0_91, %c0_92] : memref<256x256xbf16, #tpu.memory_space<vmem>>, vector<256x256xbf16>
    %cst_93 = arith.constant dense<0.000000e+00> : vector<16x256xf32>
    %138 = tpu.matmul %136, %137, %cst_93 {dimension_numbers = #tpu.dot_dimension_numbers<[1], [0], [0], [1], [0, 0, 1, 1], [], []>} : vector<16x256xbf16>, vector<256x256xbf16>, vector<16x256xf32> -> vector<16x256xf32>
    %c0_94 = arith.constant 0 : index
    %c0_95 = arith.constant 0 : index
    %139 = vector.load %arg31[%c0_94, %c0_95] : memref<1x256xf32, #tpu.memory_space<vmem>>, vector<1x256xf32>
    %140 = vector.broadcast %139 : vector<1x256xf32> to vector<16x256xf32>
    %141 = arith.addf %138, %140 : vector<16x256xf32>
    %cst_96 = arith.constant 0.000000e+00 : f32
    %142 = vector.broadcast %cst_96 : f32 to vector<16x256xf32>
    %143 = arith.maximumf %141, %142 : vector<16x256xf32>
    %144 = arith.truncf %143 : vector<16x256xf32> to vector<16x256xbf16>
    %c0_97 = arith.constant 0 : index
    %c0_98 = arith.constant 0 : index
    %145 = vector.load %arg32[%c0_97, %c0_98] : memref<256x256xbf16, #tpu.memory_space<vmem>>, vector<256x256xbf16>
    %cst_99 = arith.constant dense<0.000000e+00> : vector<16x256xf32>
    %146 = tpu.matmul %144, %145, %cst_99 {dimension_numbers = #tpu.dot_dimension_numbers<[1], [0], [0], [1], [0, 0, 1, 1], [], []>} : vector<16x256xbf16>, vector<256x256xbf16>, vector<16x256xf32> -> vector<16x256xf32>
    %c0_100 = arith.constant 0 : index
    %c0_101 = arith.constant 0 : index
    %147 = vector.load %arg33[%c0_100, %c0_101] : memref<1x256xf32, #tpu.memory_space<vmem>>, vector<1x256xf32>
    %148 = vector.broadcast %147 : vector<1x256xf32> to vector<16x256xf32>
    %149 = arith.addf %146, %148 : vector<16x256xf32>
    %cst_102 = arith.constant 0.000000e+00 : f32
    %150 = vector.broadcast %cst_102 : f32 to vector<16x256xf32>
    %151 = arith.maximumf %149, %150 : vector<16x256xf32>
    %152 = arith.truncf %151 : vector<16x256xf32> to vector<16x256xbf16>
    %c0_103 = arith.constant 0 : index
    %c0_104 = arith.constant 0 : index
    %153 = vector.load %arg34[%c0_103, %c0_104] : memref<256x128xbf16, #tpu.memory_space<vmem>>, vector<256x128xbf16>
    %cst_105 = arith.constant dense<0.000000e+00> : vector<16x128xf32>
    %154 = tpu.matmul %152, %153, %cst_105 {dimension_numbers = #tpu.dot_dimension_numbers<[1], [0], [0], [1], [0, 0, 1, 1], [], []>} : vector<16x256xbf16>, vector<256x128xbf16>, vector<16x128xf32> -> vector<16x128xf32>
    %c0_106 = arith.constant 0 : index
    %c0_107 = arith.constant 0 : index
    %155 = vector.load %arg35[%c0_106, %c0_107] : memref<1x128xf32, #tpu.memory_space<vmem>>, vector<1x128xf32>
    %156 = vector.broadcast %155 : vector<1x128xf32> to vector<16x128xf32>
    %157 = arith.addf %154, %156 : vector<16x128xf32>
    %cst_108 = arith.constant 0.000000e+00 : f32
    %158 = vector.broadcast %cst_108 : f32 to vector<16x128xf32>
    %159 = arith.maximumf %157, %158 : vector<16x128xf32>
    %160 = arith.mulf %159, %159 : vector<16x128xf32>
    %cst_109 = arith.constant dense<0.000000e+00> : vector<16xf32>
    %161 = vector.multi_reduction <add>, %160, %cst_109 [1] : vector<16x128xf32> to vector<16xf32>
    %162 = vector.shape_cast %161 : vector<16xf32> to vector<16x1xf32>
    %cst_110 = arith.constant 1.000000e-30 : f32
    %163 = vector.broadcast %cst_110 : f32 to vector<16x1xf32>
    %164 = arith.maximumf %162, %163 : vector<16x1xf32>
    %165 = math.rsqrt %164 : vector<16x1xf32>
    %166 = vector.broadcast %165 : vector<16x1xf32> to vector<16x128xf32>
    %167 = arith.mulf %159, %166 : vector<16x128xf32>
    %c0_111 = arith.constant 0 : index
    %c0_112 = arith.constant 0 : index
    %168 = vector.load %arg36[%c0_111, %c0_112] : memref<16x128xf32, #tpu.memory_space<vmem>>, vector<16x128xf32>
    tpu.vector_store %arg36[%c0_111, %c0_112], %167 {strides = array<i32>} : memref<16x128xf32, #tpu.memory_space<vmem>>, vector<16x128xf32>,
    return
  }
  func.func @transform_0(%arg0: i32) -> (i32, i32) {
    %c0_i32 = arith.constant 0 : i32
    %c0_i32_0 = arith.constant 0 : i32
    %c0_i32_1 = arith.constant 0 : i32
    return %c0_i32, %c0_i32_0 : i32, i32
  }
  func.func @transform_1(%arg0: i32) -> (i32, i32) {
    %c0_i32 = arith.constant 0 : i32
    %c0_i32_0 = arith.constant 0 : i32
    %c0_i32_1 = arith.constant 0 : i32
    return %c0_i32, %c0_i32_0 : i32, i32
  }
  func.func @transform_2(%arg0: i32) -> (i32, i32) {
    %c0_i32 = arith.constant 0 : i32
    %c0_i32_0 = arith.constant 0 : i32
    %c0_i32_1 = arith.constant 0 : i32
    return %c0_i32, %c0_i32_0 : i32, i32
  }
  func.func @transform_3(%arg0: i32) -> (i32, i32) {
    %c0_i32 = arith.constant 0 : i32
    %c0_i32_0 = arith.constant 0 : i32
    %c0_i32_1 = arith.constant 0 : i32
    return %c0_i32, %c0_i32_0 : i32, i32
  }
  func.func @transform_4(%arg0: i32) -> (i32, i32) {
    %c0_i32 = arith.constant 0 : i32
    %c0_i32_0 = arith.constant 0 : i32
    %c0_i32_1 = arith.constant 0 : i32
    return %c0_i32, %c0_i32_0 : i32, i32
  }
  func.func @transform_5(%arg0: i32) -> (i32, i32) {
    %c0_i32 = arith.constant 0 : i32
    %c0_i32_0 = arith.constant 0 : i32
    %c0_i32_1 = arith.constant 0 : i32
    return %c0_i32, %c0_i32_0 : i32, i32
  }
  func.func @transform_6(%arg0: i32) -> (i32, i32) {
    %c0_i32 = arith.constant 0 : i32
    %c0_i32_0 = arith.constant 0 : i32
    %c0_i32_1 = arith.constant 0 : i32
    return %c0_i32, %c0_i32_0 : i32, i32
  }
  func.func @transform_7(%arg0: i32) -> (i32, i32) {
    %c0_i32 = arith.constant 0 : i32
    %c0_i32_0 = arith.constant 0 : i32
    %c0_i32_1 = arith.constant 0 : i32
    return %c0_i32, %c0_i32_0 : i32, i32
  }
  func.func @transform_8(%arg0: i32) -> (i32, i32) {
    %c0_i32 = arith.constant 0 : i32
    %c0_i32_0 = arith.constant 0 : i32
    %c0_i32_1 = arith.constant 0 : i32
    return %c0_i32, %c0_i32_0 : i32, i32
  }
  func.func @transform_9(%arg0: i32) -> (i32, i32) {
    %c0_i32 = arith.constant 0 : i32
    %c0_i32_0 = arith.constant 0 : i32
    %c0_i32_1 = arith.constant 0 : i32
    return %c0_i32, %c0_i32_0 : i32, i32
  }
  func.func @transform_10(%arg0: i32) -> (i32, i32) {
    %c0_i32 = arith.constant 0 : i32
    %c0_i32_0 = arith.constant 0 : i32
    %c0_i32_1 = arith.constant 0 : i32
    return %c0_i32, %c0_i32_0 : i32, i32
  }
  func.func @transform_11(%arg0: i32) -> (i32, i32) {
    %c0_i32 = arith.constant 0 : i32
    %c0_i32_0 = arith.constant 0 : i32
    %c0_i32_1 = arith.constant 0 : i32
    return %c0_i32, %c0_i32_0 : i32, i32
  }
  func.func @transform_12(%arg0: i32) -> (i32, i32) {
    %c0_i32 = arith.constant 0 : i32
    %c0_i32_0 = arith.constant 0 : i32
    %c0_i32_1 = arith.constant 0 : i32
    return %c0_i32, %c0_i32_0 : i32, i32
  }
  func.func @transform_13(%arg0: i32) -> (i32, i32) {
    %c0_i32 = arith.constant 0 : i32
    %c0_i32_0 = arith.constant 0 : i32
    %c0_i32_1 = arith.constant 0 : i32
    return %c0_i32, %c0_i32_0 : i32, i32
  }
  func.func @transform_14(%arg0: i32) -> (i32, i32) {
    %c0_i32 = arith.constant 0 : i32
    %c0_i32_0 = arith.constant 0 : i32
    %c0_i32_1 = arith.constant 0 : i32
    return %c0_i32, %c0_i32_0 : i32, i32
  }
  func.func @transform_15(%arg0: i32) -> (i32, i32) {
    %c0_i32 = arith.constant 0 : i32
    %c0_i32_0 = arith.constant 0 : i32
    %c0_i32_1 = arith.constant 0 : i32
    return %c0_i32, %c0_i32_0 : i32, i32
  }
  func.func @transform_16(%arg0: i32) -> (i32, i32) {
    %c0_i32 = arith.constant 0 : i32
    %c0_i32_0 = arith.constant 0 : i32
    %c0_i32_1 = arith.constant 0 : i32
    return %c0_i32, %c0_i32_0 : i32, i32
  }
  func.func @transform_17(%arg0: i32) -> (i32, i32) {
    %c0_i32 = arith.constant 0 : i32
    %c0_i32_0 = arith.constant 0 : i32
    %c0_i32_1 = arith.constant 0 : i32
    return %c0_i32, %c0_i32_0 : i32, i32
  }
  func.func @transform_18(%arg0: i32) -> (i32, i32) {
    %c0_i32 = arith.constant 0 : i32
    %c0_i32_0 = arith.constant 0 : i32
    %c0_i32_1 = arith.constant 0 : i32
    return %c0_i32, %c0_i32_0 : i32, i32
  }
  func.func @transform_19(%arg0: i32) -> (i32, i32) {
    %c0_i32 = arith.constant 0 : i32
    %c0_i32_0 = arith.constant 0 : i32
    %c0_i32_1 = arith.constant 0 : i32
    return %c0_i32, %c0_i32_0 : i32, i32
  }
  func.func @transform_20(%arg0: i32) -> (i32, i32) {
    %c0_i32 = arith.constant 0 : i32
    %c0_i32_0 = arith.constant 0 : i32
    %c0_i32_1 = arith.constant 0 : i32
    return %c0_i32, %c0_i32_0 : i32, i32
  }
  func.func @transform_21(%arg0: i32) -> (i32, i32) {
    %c0_i32 = arith.constant 0 : i32
    %c0_i32_0 = arith.constant 0 : i32
    %c0_i32_1 = arith.constant 0 : i32
    return %c0_i32, %c0_i32_0 : i32, i32
  }
  func.func @transform_22(%arg0: i32) -> (i32, i32) {
    %c0_i32 = arith.constant 0 : i32
    %c0_i32_0 = arith.constant 0 : i32
    %c0_i32_1 = arith.constant 0 : i32
    return %c0_i32, %c0_i32_0 : i32, i32
  }
  func.func @transform_23(%arg0: i32) -> (i32, i32) {
    %c0_i32 = arith.constant 0 : i32
    %c0_i32_0 = arith.constant 0 : i32
    %c0_i32_1 = arith.constant 0 : i32
    return %c0_i32, %c0_i32_0 : i32, i32
  }
  func.func @transform_24(%arg0: i32) -> (i32, i32) {
    %c0_i32 = arith.constant 0 : i32
    %c0_i32_0 = arith.constant 0 : i32
    %c0_i32_1 = arith.constant 0 : i32
    return %c0_i32, %c0_i32_0 : i32, i32
  }
  func.func @transform_25(%arg0: i32) -> (i32, i32) {
    %c0_i32 = arith.constant 0 : i32
    %c0_i32_0 = arith.constant 0 : i32
    %c0_i32_1 = arith.constant 0 : i32
    return %c0_i32, %c0_i32_0 : i32, i32
  }
  func.func @transform_26(%arg0: i32) -> (i32, i32) {
    %c0_i32 = arith.constant 0 : i32
    %c0_i32_0 = arith.constant 0 : i32
    %c0_i32_1 = arith.constant 0 : i32
    return %c0_i32, %c0_i32_0 : i32, i32
  }
  func.func @transform_27(%arg0: i32) -> (i32, i32) {
    %c0_i32 = arith.constant 0 : i32
    %c0_i32_0 = arith.constant 0 : i32
    %c0_i32_1 = arith.constant 0 : i32
    return %c0_i32, %c0_i32_0 : i32, i32
  }
  func.func @transform_28(%arg0: i32) -> (i32, i32) {
    %c0_i32 = arith.constant 0 : i32
    %c0_i32_0 = arith.constant 0 : i32
    %c0_i32_1 = arith.constant 0 : i32
    return %c0_i32, %c0_i32_0 : i32, i32
  }
  func.func @transform_29(%arg0: i32) -> (i32, i32) {
    %c0_i32 = arith.constant 0 : i32
    %c0_i32_0 = arith.constant 0 : i32
    %c0_i32_1 = arith.constant 0 : i32
    return %c0_i32, %c0_i32_0 : i32, i32
  }
  func.func @transform_30(%arg0: i32) -> (i32, i32) {
    %c0_i32 = arith.constant 0 : i32
    %c0_i32_0 = arith.constant 0 : i32
    %c0_i32_1 = arith.constant 0 : i32
    return %c0_i32, %c0_i32_0 : i32, i32
  }
  func.func @transform_31(%arg0: i32) -> (i32, i32) {
    %c0_i32 = arith.constant 0 : i32
    %c0_i32_0 = arith.constant 0 : i32
    %c0_i32_1 = arith.constant 0 : i32
    return %c0_i32, %c0_i32_0 : i32, i32
  }
  func.func @transform_32(%arg0: i32) -> (i32, i32) {
    %c0_i32 = arith.constant 0 : i32
    %c0_i32_0 = arith.constant 0 : i32
    %c0_i32_1 = arith.constant 0 : i32
    return %c0_i32, %c0_i32_0 : i32, i32
  }
  func.func @transform_33(%arg0: i32) -> (i32, i32) {
    %c0_i32 = arith.constant 0 : i32
    %c0_i32_0 = arith.constant 0 : i32
    %c0_i32_1 = arith.constant 0 : i32
    return %c0_i32, %c0_i32_0 : i32, i32
  }
  func.func @transform_34(%arg0: i32) -> (i32, i32) {
    %c0_i32 = arith.constant 0 : i32
    %c0_i32_0 = arith.constant 0 : i32
    %c0_i32_1 = arith.constant 0 : i32
    return %c0_i32, %c0_i32_0 : i32, i32
  }
  func.func @transform_35(%arg0: i32) -> (i32, i32) {
    %c0_i32 = arith.constant 0 : i32
    %c0_i32_0 = arith.constant 0 : i32
    %c0_i32_1 = arith.constant 0 : i32
    return %c0_i32, %c0_i32_0 : i32, i32
  }
}

</mosaic_0001>

<bundles_post_ra>
// kernel: tpu_custom_call.1
= control target key start
LH: loop header
LB: loop body
LE: loop exit
PB: predicated region body
PF: predicated region fallthrough
CT: control target
= control target key end

     0   :  { %s7973_s6 = smov 1   ;;  %s7974_s10 = smov 2   ;;  %s8604_s0 = inlined_call_operand.smem [shape: u32[36], index: -1, kind: input, shape index: {}] }
   0x1   :  { %s8053_s5 = sld [smem:[%s8604_s0]]   ;;  %s7975_s14 = smov 3  }
   0x2   :  { %s8058_s9 = sld [smem:[%s8604_s0 + %s7973_s6]]   ;;  %s7976_s18 = smov 4  }
   0x3   :  { %s8063_s13 = sld [smem:[%s8604_s0 + %s7974_s10]]   ;;  %s7977_s22 = smov 5  }
   0x4   :  { %s8068_s17 = sld [smem:[%s8604_s0 + %s7975_s14]]   ;;  %s7978_s26 = smov 6  }
   0x5   :  { %s8073_s21 = sld [smem:[%s8604_s0 + %s7976_s18]]   ;;  %s7979_s30 = smov 7  }
   0x6   :  { %s8078_s25 = sld [smem:[%s8604_s0 + %s7977_s22]]   ;;  %s7980_s4 = smov 8  }
   0x7   :  { %8619 = sst [smem:[#allocation56_spill]] %s8053_s5  ;;  %s7981_s10 = smov 9  }
   0x8   :  { %s8083_s29 = sld [smem:[%s8604_s0 + %s7978_s26]]   ;;  %s7982_s15 = smov 10  }
   0x9   :  { %s8088_s3 = sld [smem:[%s8604_s0 + %s7979_s30]]   ;;  %s7983_s20 = smov 11  }
   0xa   :  { %8620 = sst [smem:[#allocation57_spill]] %s8068_s17  ;;  %s7984_s26 = smov 12  }
   0xb   :  { %8621 = sst [smem:[#allocation58_spill]] %s8073_s21  ;;  %s7985_s1 = smov 13  }
   0xc   :  { %8622 = sst [smem:[#allocation59_spill]] %s8078_s25  ;;  %s7986_s7 = smov 14  }
   0xd   :  { %s8093_s8 = sld [smem:[%s8604_s0 + %s7980_s4]]   ;;  %s7988_s22 = smov 16  }
   0xe   :  { %s8098_s14 = sld [smem:[%s8604_s0 + %s7981_s10]]   ;;  %s7989_s28 = smov 17  }
   0xf   :  { %s8103_s19 = sld [smem:[%s8604_s0 + %s7982_s15]]   ;;  %s7987_s15 = smov 15  }
  0x10   :  { %s8108_s24 = sld [smem:[%s8604_s0 + %s7983_s20]]  }
  0x11   :  { %s8113_s30 = sld [smem:[%s8604_s0 + %s7984_s26]]  }
  0x12   :  { %s8118_s6 = sld [smem:[%s8604_s0 + %s7985_s1]]  }
  0x13   :  { %8623 = sst [smem:[#allocation60_spill]] %s8093_s8 }
  0x14   :  { %s8123_s12 = sld [smem:[%s8604_s0 + %s7986_s7]]   ;;  %s7990_s7 = smov 18  }
  0x15   :  { %8624 = sst [smem:[#allocation61_spill]] %s8103_s19 }
  0x16   :  { %s8128_s20 = sld [smem:[%s8604_s0 + %s7987_s15]]   ;;  %s7991_s15 = smov 19  }
  0x17   :  { %8625 = sst [smem:[#allocation62_spill]] %s8113_s30 }
  0x18   :  { %s8133_s27 = sld [smem:[%s8604_s0 + %s7988_s22]]   ;;  %s7992_s22 = smov 20  }
  0x19   :  { %s8138_s4 = sld [smem:[%s8604_s0 + %s7989_s28]]   ;;  %s7993_s28 = smov 21  }
  0x1a   :  { %8626 = sst [smem:[#allocation63_spill]] %s8123_s12 }
  0x1b   :  { %s8143_s12 = sld [smem:[%s8604_s0 + %s7990_s7]]   ;;  %s7994_s7 = smov 22  }
  0x1c   :  { %8627 = sst [smem:[#allocation64_spill]] %s8128_s20 }
  0x1d   :  { %s8148_s21 = sld [smem:[%s8604_s0 + %s7991_s15]]   ;;  %s7995_s15 = smov 23  }
  0x1e   :  { %s8153_s5 = sld [smem:[%s8604_s0 + %s7992_s22]]   ;;  %s7996_s22 = smov 24  }
  0x1f   :  { %8628 = sst [smem:[#allocation65_spill]] %s8138_s4 }
  0x20   :  { %s8158_s25 = sld [smem:[%s8604_s0 + %s7993_s28]]   ;;  %s7997_s28 = smov 25  }
  0x21   :  { %s8163_s17 = sld [smem:[%s8604_s0 + %s7994_s7]]   ;;  %s7998_s7 = smov 26  }
  0x22   :  { %s8178_s4 = sld [smem:[%s8604_s0 + %s7997_s28]]   ;;  %s8001_s28 = smov 29  }
  0x23   :  { %8629 = sst [smem:[#allocation66_spill]] %s8148_s21 }
  0x24   :  { %8630 = sst [smem:[#allocation67_spill]] %s8153_s5 }
  0x25   :  { %s8168_s21 = sld [smem:[%s8604_s0 + %s7995_s15]]   ;;  %s7999_s15 = smov 27  }
  0x26   :  { %s8173_s5 = sld [smem:[%s8604_s0 + %s7996_s22]]   ;;  %s8000_s22 = smov 28  }
  0x27   :  { %8631 = sst [smem:[#allocation68_spill]] %s8163_s17 }
  0x28   :  { %s8183_s17 = sld [smem:[%s8604_s0 + %s7998_s7]]   ;;  %s8002_s7 = smov 30  }
  0x29   :  { %s8188_s20 = sld [smem:[%s8604_s0 + %s7999_s15]]   ;;  %s8003_s15 = smov 31  }
  0x2a   :  { %s8198_s30 = sld [smem:[%s8604_s0 + %s8001_s28]]   ;;  %s8005_s28 = smov 33  }
  0x2b   :  { %s8208_s19 = sld [smem:[%s8604_s0 + %s8003_s15]]   ;;  %s8007_s15 = smov 35  }
  0x2c   :  { %8632 = sst [smem:[#allocation69_spill]] %s8173_s5 }
  0x2d   :  { %s8193_s5 = sld [smem:[%s8604_s0 + %s8000_s22]]   ;;  %s8004_s22 = smov 32  }
  0x2e   :  { %8633 = sst [smem:[#allocation70_spill]] %s8183_s17 }
  0x2f   :  { %s8203_s17 = sld [smem:[%s8604_s0 + %s8002_s7]]   ;;  %s8006_s7 = smov 34  }
  0x30   :  { %8635 = sst [smem:[#allocation72_spill]] %s8198_s30 }
  0x31   :  { %s8218_s30 = sld [smem:[%s8604_s0 + %s8005_s28]]  }
  0x32   :  { %s8228_s8 = sld [smem:[%s8604_s0 + %s8007_s15]]  }
  0x33   :  { %8634 = sst [smem:[#allocation71_spill]] %s8193_s5 }
  0x34   :  { %s8213_s5 = sld [smem:[%s8604_s0 + %s8004_s22]]  }
  0x35   :  { %8636 = sst [smem:[#allocation73_spill]] %s8203_s17 }
  0x36   :  { %s8223_s17 = sld [smem:[%s8604_s0 + %s8006_s7]]  }
  0x37   :  { %76 = vsyncpa [#allocation3], 0 }
  0x38   :  { %77 = vsyncpa [#allocation6], 0 }
  0x39   :  { %78 = vsyncpa [#allocation9], 0 }
  0x3a   :  { %79 = vsyncpa [#allocation12], 0 }
  0x3b   :  { %80 = vsyncpa [#allocation15], 0 }
  0x3c   :  { %81 = vsyncpa [#allocation18], 0 }
  0x3d   :  { %82 = vsyncpa [#allocation21], 0 }
  0x3e   :  { %83 = vsyncpa [#allocation24], 0 }
  0x3f   :  { %84 = vsyncpa [#allocation27], 0 }
  0x40   :  { %85 = vsyncpa [#allocation30], 0 }
  0x41   :  { %86 = vsyncpa [#allocation33], 0 }
  0x42   :  { %87 = vsyncpa [#allocation36], 0 }
  0x43   :  { %88 = vsyncpa [#allocation39], 0 }
  0x44   :  { %89 = vsyncpa [#allocation4], 0  ;;  %s8008_s22 = smov [#allocation5]   ;;  %s8009_s23 = smov [#allocation8]  }
  0x45   :  { %s109_s0 = sshll.u32 %s8008_s22, 4  ;;  %s137_s26 = sshll.u32 %s8009_s23, 4  ;;  %s110_s0 = int_to_ptr.vmem [resolvable:$true] %s109_s0  ;;  %s8230_s26 = int_to_ptr.vmem [resolvable:$true] %s137_s26 }
  0x46   :  { %s7373_s28 = scalar_lea.hbm %s8063_s13, 128 }
  0x47   :  { %p7374_p0 = scmp.ne.s32.totalorder %s8063_s13, %s7373_s28  ;;  %p7377_p1 = scmp.lt.u32.totalorder %s7373_s28, %s8063_s13 }
  0x49   :  { %p7379_p2 = pnand %p7377_p1, %p7374_p0 }
  0x4b   :  { %7382 = shalt.err (!%p7379_p2)
}
  0x4c   :  { %s7383_s1 = scalar_lea.vmem %s110_s0, 128  ;;  %p7388_p4 = scmp.lt.s32.totalorder %s110_s0, %s110_s0 }
  0x4d   :  { %p7384_p3 = scmp.ne.s32.totalorder %s110_s0, %s7383_s1  ;;  %p7389_p5 = scmp.lt.s32.totalorder %s7383_s1, %s7383_s1 }
  0x4f   :  { %p7390_p6 = por %p7389_p5, %p7388_p4 }
  0x51   :  { %p7391_p7 = pnand %p7390_p6, %p7384_p3 }
  0x53   :  { %7394 = shalt.err (!%p7391_p7)
}
  0x54   :  { %s8010_s2 = smov 64   ;;  %s8011_s7 = smov 4  }
  0x55   :  { %115 = dma.hbm_to_vmem [thread:$0]  %s8063_s13, 128, %s110_s0, [#allocation6], %s8010_s2, %s8010_s2, %s8011_s7  }
  0x56   :  { %s7395_s10 = scalar_lea.hbm %s8088_s3, 2048 }
  0x57   :  { %p7396_p8 = scmp.ne.s32.totalorder %s8088_s3, %s7395_s10  ;;  %p7399_p9 = scmp.lt.u32.totalorder %s7395_s10, %s8088_s3 }
  0x59   :  { %p7401_p10 = pnand %p7399_p9, %p7396_p8 }
  0x5b   :  { %7404 = shalt.err (!%p7401_p10)
}
  0x5c   :  { %s7405_s11 = scalar_lea.vmem %s8230_s26, 2048  ;;  %p7410_p12 = scmp.lt.s32.totalorder %s8230_s26, %s8230_s26 }
  0x5d   :  { %p7406_p11 = scmp.ne.s32.totalorder %s8230_s26, %s7405_s11  ;;  %p7411_p13 = scmp.lt.s32.totalorder %s7405_s11, %s7405_s11 }
  0x5f   :  { %p7412_p0 = por %p7411_p13, %p7410_p12 }
  0x61   :  { %p7413_p1 = pnand %p7412_p0, %p7406_p11 }
  0x63   :  { %7416 = shalt.err (!%p7413_p1)
}
  0x64   :  { %s8012_s15 = smov 128   ;;  %s8013_s13 = smov 8  }
  0x65   :  { %143 = dma.hbm_to_vmem [thread:$0]  %s8088_s3, 2048, %s8230_s26, [#allocation9], %s8012_s15, %s8012_s15, %s8013_s13  }
  0x66   :  { %s8014_s16 = smov [#allocation11]   ;;  %s8015_s22 = smov [#allocation14]  }
  0x67   :  { %s159_s18 = sshll.u32 %s8014_s16, 4  ;;  %s181_s0 = sshll.u32 %s8015_s22, 4  ;;  %s160_s18 = int_to_ptr.vmem [resolvable:$true] %s159_s18  ;;  %s8251_s0 = int_to_ptr.vmem [resolvable:$true] %s181_s0 }
  0x68   :  { %s7417_s23 = scalar_lea.hbm %s8098_s14, 2048 }
  0x69   :  { %p7418_p2 = scmp.ne.s32.totalorder %s8098_s14, %s7417_s23  ;;  %p7421_p3 = scmp.lt.u32.totalorder %s7417_s23, %s8098_s14 }
  0x6b   :  { %p7423_p4 = pnand %p7421_p3, %p7418_p2 }
  0x6d   :  { %7426 = shalt.err (!%p7423_p4)
}
  0x6e   :  { %s7427_s28 = scalar_lea.vmem %s160_s18, 2048  ;;  %p7432_p6 = scmp.lt.s32.totalorder %s160_s18, %s160_s18 }
  0x6f   :  { %p7428_p5 = scmp.ne.s32.totalorder %s160_s18, %s7427_s28  ;;  %p7433_p7 = scmp.lt.s32.totalorder %s7427_s28, %s7427_s28 }
  0x71   :  { %p7434_p8 = por %p7433_p7, %p7432_p6 }
  0x73   :  { %p7435_p9 = pnand %p7434_p8, %p7428_p5 }
  0x75   :  { %7438 = shalt.err (!%p7435_p9)
}
  0x76   :  { %165 = dma.hbm_to_vmem [thread:$0]  %s8098_s14, 2048, %s160_s18, [#allocation12], %s8010_s2, %s8010_s2, %s8011_s7  }
  0x77   :  { %s7439_s3 = scalar_lea.hbm %s8108_s24, 8192 }
  0x78   :  { %p7440_p10 = scmp.ne.s32.totalorder %s8108_s24, %s7439_s3  ;;  %p7443_p11 = scmp.lt.u32.totalorder %s7439_s3, %s8108_s24 }
  0x7a   :  { %p7445_p12 = pnand %p7443_p11, %p7440_p10 }
  0x7c   :  { %7448 = shalt.err (!%p7445_p12)
}
  0x7d   :  { %s7449_s26 = scalar_lea.vmem %s8251_s0, 8192  ;;  %p7454_p0 = scmp.lt.s32.totalorder %s8251_s0, %s8251_s0 }
  0x7e   :  { %p7450_p13 = scmp.ne.s32.totalorder %s8251_s0, %s7449_s26  ;;  %p7455_p1 = scmp.lt.s32.totalorder %s7449_s26, %s7449_s26 }
  0x80   :  { %p7456_p2 = por %p7455_p1, %p7454_p0 }
  0x82   :  { %p7457_p3 = pnand %p7456_p2, %p7450_p13 }
  0x84   :  { %7460 = shalt.err (!%p7457_p3)
}
  0x85   :  { %s8016_s1 = smov 512   ;;  %s8017_s14 = smov 32  }
  0x86   :  { %187 = dma.hbm_to_vmem [thread:$0]  %s8108_s24, 8192, %s8251_s0, [#allocation15], %s8016_s1, %s8016_s1, %s8017_s14  }
  0x87   :  { %s8018_s10 = smov [#allocation17]   ;;  %s7461_s16 = scalar_lea.hbm %s8118_s6, 32768 }
  0x88   :  { %s203_s11 = sshll.u32 %s8018_s10, 4  ;;  %p7462_p4 = scmp.ne.s32.totalorder %s8118_s6, %s7461_s16  ;;  %s204_s11 = int_to_ptr.vmem [resolvable:$true] %s203_s11 }
  0x89   :  { %p7465_p5 = scmp.lt.u32.totalorder %s7461_s16, %s8118_s6 }
  0x8b   :  { %p7467_p6 = pnand %p7465_p5, %p7462_p4 }
  0x8d   :  { %7470 = shalt.err (!%p7467_p6)
}
  0x8e   :  { %s7471_s18 = scalar_lea.vmem %s204_s11, 32768  ;;  %p7476_p8 = scmp.lt.s32.totalorder %s204_s11, %s204_s11 }
  0x8f   :  { %p7472_p7 = scmp.ne.s32.totalorder %s204_s11, %s7471_s18  ;;  %p7477_p9 = scmp.lt.s32.totalorder %s7471_s18, %s7471_s18 }
  0x91   :  { %p7478_p10 = por %p7477_p9, %p7476_p8 }
  0x93   :  { %p7479_p11 = pnand %p7478_p10, %p7472_p7 }
  0x95   :  { %7482 = shalt.err (!%p7479_p11)
}
  0x96   :  { %s8019_s22 = smov 256   ;;  %s8020_s24 = smov 16  }
  0x97   :  { %209 = dma.hbm_to_vmem [thread:$0]  %s8118_s6, 32768, %s204_s11, [#allocation18], %s8019_s22, %s8019_s22, %s8020_s24  }
  0x98   :  { %s8021_s0 = smov [#allocation20]   ;;  %s8022_s28 = smov [#allocation23]  }
  0x99   :  { %s230_s23 = sshll.u32 %s8021_s0, 4  ;;  %s252_s3 = sshll.u32 %s8022_s28, 4  ;;  %s231_s23 = int_to_ptr.vmem [resolvable:$true] %s230_s23  ;;  %s253_s3 = int_to_ptr.vmem [resolvable:$true] %s252_s3 }
  0x9a   :  { %s7483_s26 = scalar_lea.hbm %s8133_s27, 32 }
  0x9b   :  { %p7484_p12 = scmp.ne.s32.totalorder %s8133_s27, %s7483_s26  ;;  %p7487_p13 = scmp.lt.u32.totalorder %s7483_s26, %s8133_s27 }
  0x9d   :  { %p7489_p0 = pnand %p7487_p13, %p7484_p12 }
  0x9f   :  { %7492 = shalt.err (!%p7489_p0)
}
  0xa0   :  { %s7493_s1 = scalar_lea.vmem %s231_s23, 32  ;;  %p7498_p2 = scmp.lt.s32.totalorder %s231_s23, %s231_s23 }
  0xa1   :  { %p7494_p1 = scmp.ne.s32.totalorder %s231_s23, %s7493_s1  ;;  %p7499_p3 = scmp.lt.s32.totalorder %s7493_s1, %s7493_s1 }
  0xa3   :  { %p7500_p4 = por %p7499_p3, %p7498_p2 }
  0xa5   :  { %p7501_p5 = pnand %p7500_p4, %p7494_p1 }
  0xa7   :  { %7504 = shalt.err (!%p7501_p5)
}
  0xa8   :  { %233 = dma.hbm_to_vmem [thread:$0]  %s8133_s27, 32, %s231_s23, [#allocation21]  }
  0xa9   :  { %s7505_s6 = scalar_lea.hbm %s8143_s12, 16 }
  0xaa   :  { %p7506_p6 = scmp.ne.s32.totalorder %s8143_s12, %s7505_s6  ;;  %p7509_p7 = scmp.lt.u32.totalorder %s7505_s6, %s8143_s12 }
  0xac   :  { %p7511_p8 = pnand %p7509_p7, %p7506_p6 }
  0xae   :  { %7514 = shalt.err (!%p7511_p8)
}
  0xaf   :  { %s7515_s14 = scalar_lea.vmem %s253_s3, 16  ;;  %s7519_s10 = scalar_lea.vmem %s253_s3, 32 }
  0xb0   :  { %p7516_p9 = scmp.ne.s32.totalorder %s253_s3, %s7515_s14  ;;  %p7520_p10 = scmp.lt.s32.totalorder %s253_s3, %s253_s3 }
  0xb1   :  { %p7521_p11 = scmp.lt.s32.totalorder %s7519_s10, %s7515_s14 }
  0xb3   :  { %p7522_p12 = por %p7521_p11, %p7520_p10 }
  0xb5   :  { %p7523_p13 = pnand %p7522_p12, %p7516_p9 }
  0xb7   :  { %7526 = shalt.err (!%p7523_p13)
}
  0xb8   :  { %255 = dma.hbm_to_vmem [thread:$0]  %s8143_s12, 16, %s253_s3, [#allocation24]  }
  0xb9   :  { %s8023_s27 = smov [#allocation26]   ;;  %s8024_s16 = smov [#allocation29]  }
  0xba   :  { %s273_s11 = sshll.u32 %s8023_s27, 4  ;;  %s295_s18 = sshll.u32 %s8024_s16, 4  ;;  %s274_s11 = int_to_ptr.vmem [resolvable:$true] %s273_s11  ;;  %s296_s18 = int_to_ptr.vmem [resolvable:$true] %s295_s18 }
  0xbb   :  { %s7527_s22 = scalar_lea.hbm %s8158_s25, 512 }
  0xbc   :  { %p7528_p0 = scmp.ne.s32.totalorder %s8158_s25, %s7527_s22  ;;  %p7531_p1 = scmp.lt.u32.totalorder %s7527_s22, %s8158_s25 }
  0xbe   :  { %p7533_p2 = pnand %p7531_p1, %p7528_p0 }
  0xc0   :  { %7536 = shalt.err (!%p7533_p2)
}
  0xc1   :  { %s7537_s24 = scalar_lea.vmem %s274_s11, 512  ;;  %p7542_p4 = scmp.lt.s32.totalorder %s274_s11, %s274_s11 }
  0xc2   :  { %p7538_p3 = scmp.ne.s32.totalorder %s274_s11, %s7537_s24  ;;  %p7543_p5 = scmp.lt.s32.totalorder %s7537_s24, %s7537_s24 }
  0xc4   :  { %p7544_p6 = por %p7543_p5, %p7542_p4 }
  0xc6   :  { %p7545_p7 = pnand %p7544_p6, %p7538_p3 }
  0xc8   :  { %7548 = shalt.err (!%p7545_p7)
}
  0xc9   :  { %279 = dma.hbm_to_vmem [thread:$0]  %s8158_s25, 512, %s274_s11, [#allocation27], %s8010_s2, %s8010_s2, %s8011_s7  }
  0xca   :  { %s7549_s12 = scalar_lea.hbm %s8168_s21, 2048 }
  0xcb   :  { %p7550_p8 = scmp.ne.s32.totalorder %s8168_s21, %s7549_s12  ;;  %p7553_p9 = scmp.lt.u32.totalorder %s7549_s12, %s8168_s21 }
  0xcd   :  { %p7555_p10 = pnand %p7553_p9, %p7550_p8 }
  0xcf   :  { %7558 = shalt.err (!%p7555_p10)
}
  0xd0   :  { %s7559_s0 = scalar_lea.vmem %s296_s18, 2048  ;;  %p7564_p12 = scmp.lt.s32.totalorder %s296_s18, %s296_s18 }
  0xd1   :  { %p7560_p11 = scmp.ne.s32.totalorder %s296_s18, %s7559_s0  ;;  %p7565_p13 = scmp.lt.s32.totalorder %s7559_s0, %s7559_s0 }
  0xd3   :  { %p7566_p0 = por %p7565_p13, %p7564_p12 }
  0xd5   :  { %p7567_p1 = pnand %p7566_p0, %p7560_p11 }
  0xd7   :  { %7570 = shalt.err (!%p7567_p1)
}
  0xd8   :  { %301 = dma.hbm_to_vmem [thread:$0]  %s8168_s21, 2048, %s296_s18, [#allocation30], %s8012_s15, %s8012_s15, %s8013_s13  }
  0xd9   :  { %s8025_s25 = smov [#allocation32]   ;;  %s8026_s28 = smov [#allocation35]  }
  0xda   :  { %s317_s23 = sshll.u32 %s8025_s25, 4  ;;  %s339_s3 = sshll.u32 %s8026_s28, 4  ;;  %s318_s23 = int_to_ptr.vmem [resolvable:$true] %s317_s23  ;;  %s340_s3 = int_to_ptr.vmem [resolvable:$true] %s339_s3 }
  0xdb   :  { %s7571_s26 = scalar_lea.hbm %s8178_s4, 2048 }
  0xdc   :  { %p7572_p2 = scmp.ne.s32.totalorder %s8178_s4, %s7571_s26  ;;  %p7575_p3 = scmp.lt.u32.totalorder %s7571_s26, %s8178_s4 }
  0xde   :  { %p7577_p4 = pnand %p7575_p3, %p7572_p2 }
  0xe0   :  { %7580 = shalt.err (!%p7577_p4)
}
  0xe1   :  { %s7581_s1 = scalar_lea.vmem %s318_s23, 2048  ;;  %p7586_p6 = scmp.lt.s32.totalorder %s318_s23, %s318_s23 }
  0xe2   :  { %p7582_p5 = scmp.ne.s32.totalorder %s318_s23, %s7581_s1  ;;  %p7587_p7 = scmp.lt.s32.totalorder %s7581_s1, %s7581_s1 }
  0xe4   :  { %p7588_p8 = por %p7587_p7, %p7586_p6 }
  0xe6   :  { %p7589_p9 = pnand %p7588_p8, %p7582_p5 }
  0xe8   :  { %7592 = shalt.err (!%p7589_p9)
}
  0xe9   :  { %323 = dma.hbm_to_vmem [thread:$0]  %s8178_s4, 2048, %s318_s23, [#allocation33], %s8010_s2, %s8010_s2, %s8011_s7  }
  0xea   :  { %s7593_s21 = scalar_lea.hbm %s8188_s20, 2048 }
  0xeb   :  { %p7594_p10 = scmp.ne.s32.totalorder %s8188_s20, %s7593_s21  ;;  %p7597_p11 = scmp.lt.u32.totalorder %s7593_s21, %s8188_s20 }
  0xed   :  { %p7599_p12 = pnand %p7597_p11, %p7594_p10 }
  0xef   :  { %7602 = shalt.err (!%p7599_p12)
}
  0xf0   :  { %s7603_s6 = scalar_lea.vmem %s340_s3, 2048  ;;  %p7608_p0 = scmp.lt.s32.totalorder %s340_s3, %s340_s3 }
  0xf1   :  { %p7604_p13 = scmp.ne.s32.totalorder %s340_s3, %s7603_s6  ;;  %p7609_p1 = scmp.lt.s32.totalorder %s7603_s6, %s7603_s6 }
  0xf3   :  { %p7610_p2 = por %p7609_p1, %p7608_p0 }
  0xf5   :  { %p7611_p3 = pnand %p7610_p2, %p7604_p13 }
  0xf7   :  { %7614 = shalt.err (!%p7611_p3)
}
  0xf8   :  { %345 = dma.hbm_to_vmem [thread:$0]  %s8188_s20, 2048, %s340_s3, [#allocation36], %s8012_s15, %s8012_s15, %s8013_s13  }
  0xf9   :  { %s8027_s4 = smov [#allocation38]   ;;  %s8028_s10 = smov [#allocation2]  }
  0xfa   :  { %s365_s14 = sshll.u32 %s8027_s4, 4  ;;  %s97_s27 = sshll.u32 %s8028_s10, 4  ;;  %s366_s14 = int_to_ptr.vmem [resolvable:$true] %s365_s14  ;;  %s98_s27 = int_to_ptr.vmem [resolvable:$true] %s97_s27 }
  0xfb   :  { %s7615_s11 = scalar_lea.hbm %s8208_s19, 4096 }
  0xfc   :  { %p7616_p4 = scmp.ne.s32.totalorder %s8208_s19, %s7615_s11  ;;  %p7619_p5 = scmp.lt.u32.totalorder %s7615_s11, %s8208_s19 }
  0xfe   :  { %p7621_p6 = pnand %p7619_p5, %p7616_p4 }
 0x100   :  { %7624 = shalt.err (!%p7621_p6)
}
 0x101   :  { %s7625_s16 = scalar_lea.vmem %s366_s14, 4096  ;;  %p7630_p8 = scmp.lt.s32.totalorder %s366_s14, %s366_s14 }
 0x102   :  { %p7626_p7 = scmp.ne.s32.totalorder %s366_s14, %s7625_s16  ;;  %p7631_p9 = scmp.lt.s32.totalorder %s7625_s16, %s7625_s16 }
 0x104   :  { %p7632_p10 = por %p7631_p9, %p7630_p8 }
 0x106   :  { %p7633_p11 = pnand %p7632_p10, %p7626_p7 }
 0x108   :  { %7636 = shalt.err (!%p7633_p11)
}
 0x109   :  { %371 = dma.hbm_to_vmem [thread:$0]  %s8208_s19, 4096, %s366_s14, [#allocation39], %s8012_s15, %s8012_s15, %s8013_s13  }
 0x10a   :  { %s7637_s20 = scalar_lea.hbm %s8058_s9, 128 }
 0x10b   :  { %p7638_p12 = scmp.ne.s32.totalorder %s8058_s9, %s7637_s20  ;;  %p7641_p13 = scmp.lt.u32.totalorder %s7637_s20, %s8058_s9 }
 0x10d   :  { %p7643_p0 = pnand %p7641_p13, %p7638_p12 }
 0x10f   :  { %7646 = shalt.err (!%p7643_p0)
}
 0x110   :  { %s7647_s18 = scalar_lea.vmem %s98_s27, 128  ;;  %p7652_p2 = scmp.lt.s32.totalorder %s98_s27, %s98_s27 }
 0x111   :  { %p7648_p1 = scmp.ne.s32.totalorder %s98_s27, %s7647_s18  ;;  %p7653_p3 = scmp.lt.s32.totalorder %s7647_s18, %s7647_s18 }
 0x113   :  { %p7654_p4 = por %p7653_p3, %p7652_p2 }
 0x115   :  { %p7655_p5 = pnand %p7654_p4, %p7648_p1 }
 0x117   :  { %7658 = shalt.err (!%p7655_p5)
}
 0x118   :  { %103 = dma.hbm_to_vmem [thread:$0]  %s8058_s9, 128, %s98_s27, [#allocation3], %s8010_s2, %s8010_s2, %s8011_s7  }
 0x119   :  { %s8029_s19 = smov [#allocation7]   ;;  %s8030_s24 = smov [#allocation10]  }
 0x11a   :  { %s128_s22 = sshll.u32 %s8029_s19, 4  ;;  %s150_s12 = sshll.u32 %s8030_s24, 4  ;;  %s129_s22 = int_to_ptr.vmem [resolvable:$true] %s128_s22  ;;  %s151_s12 = int_to_ptr.vmem [resolvable:$true] %s150_s12 }
 0x11b   :  { %s7659_s0 = scalar_lea.hbm %s8083_s29, 16 }
 0x11c   :  { %p7660_p6 = scmp.ne.s32.totalorder %s8083_s29, %s7659_s0  ;;  %p7663_p7 = scmp.lt.u32.totalorder %s7659_s0, %s8083_s29 }
 0x11e   :  { %p7665_p8 = pnand %p7663_p7, %p7660_p6 }
 0x120   :  { %7668 = shalt.err (!%p7665_p8)
}
 0x121   :  { %s7669_s25 = scalar_lea.vmem %s129_s22, 16  ;;  %s7673_s23 = scalar_lea.vmem %s129_s22, 32 }
 0x122   :  { %p7670_p9 = scmp.ne.s32.totalorder %s129_s22, %s7669_s25  ;;  %p7674_p10 = scmp.lt.s32.totalorder %s129_s22, %s129_s22 }
 0x123   :  { %p7675_p11 = scmp.lt.s32.totalorder %s7673_s23, %s7669_s25 }
 0x125   :  { %p7676_p12 = por %p7675_p11, %p7674_p10 }
 0x127   :  { %p7677_p13 = pnand %p7676_p12, %p7670_p9 }
 0x129   :  { %7680 = shalt.err (!%p7677_p13)
}
 0x12a   :  { %s8637_s9 = sld [smem:[#allocation60_spill]] }
 0x12b   :  { %131 = dma.hbm_to_vmem [thread:$0]  %s8083_s29, 16, %s129_s22, [#allocation6]  }
 0x130   :  { %s7681_s28 = scalar_lea.hbm %s8637_s9, 32 }
 0x131   :  { %p7682_p0 = scmp.ne.s32.totalorder %s8637_s9, %s7681_s28  ;;  %p7685_p1 = scmp.lt.u32.totalorder %s7681_s28, %s8637_s9 }
 0x133   :  { %p7687_p2 = pnand %p7685_p1, %p7682_p0 }
 0x135   :  { %7690 = shalt.err (!%p7687_p2)
}
 0x136   :  { %s7691_s3 = scalar_lea.vmem %s151_s12, 32  ;;  %p7696_p4 = scmp.lt.s32.totalorder %s151_s12, %s151_s12 }
 0x137   :  { %p7692_p3 = scmp.ne.s32.totalorder %s151_s12, %s7691_s3  ;;  %p7697_p5 = scmp.lt.s32.totalorder %s7691_s3, %s7691_s3 }
 0x139   :  { %p7698_p6 = por %p7697_p5, %p7696_p4 }
 0x13b   :  { %p7699_p7 = pnand %p7698_p6, %p7692_p3 }
 0x13d   :  { %7702 = shalt.err (!%p7699_p7)
}
 0x13e   :  { %s8638_s26 = sld [smem:[#allocation61_spill]]  ;;  %s8031_s1 = smov [#allocation13]  }
 0x13f   :  { %153 = dma.hbm_to_vmem [thread:$0]  %s8637_s9, 32, %s151_s12, [#allocation9]  }
 0x140   :  { %s172_s29 = sshll.u32 %s8031_s1, 4  ;;  %s8032_s21 = smov [#allocation16]   ;;  %s173_s29 = int_to_ptr.vmem [resolvable:$true] %s172_s29 }
 0x141   :  { %s194_s6 = sshll.u32 %s8032_s21, 4  ;;  %s195_s6 = int_to_ptr.vmem [resolvable:$true] %s194_s6 }
 0x144   :  { %s7703_s4 = scalar_lea.hbm %s8638_s26, 16 }
 0x145   :  { %p7704_p8 = scmp.ne.s32.totalorder %s8638_s26, %s7703_s4  ;;  %p7707_p9 = scmp.lt.u32.totalorder %s7703_s4, %s8638_s26 }
 0x147   :  { %p7709_p10 = pnand %p7707_p9, %p7704_p8 }
 0x149   :  { %7712 = shalt.err (!%p7709_p10)
}
 0x14a   :  { %s7713_s14 = scalar_lea.vmem %s173_s29, 16  ;;  %s7717_s10 = scalar_lea.vmem %s173_s29, 32 }
 0x14b   :  { %p7714_p11 = scmp.ne.s32.totalorder %s173_s29, %s7713_s14  ;;  %p7718_p12 = scmp.lt.s32.totalorder %s173_s29, %s173_s29 }
 0x14c   :  { %p7719_p13 = scmp.lt.s32.totalorder %s7717_s10, %s7713_s14 }
 0x14e   :  { %p7720_p0 = por %p7719_p13, %p7718_p12 }
 0x150   :  { %p7721_p1 = pnand %p7720_p0, %p7714_p11 }
 0x152   :  { %7724 = shalt.err (!%p7721_p1)
}
 0x153   :  { %s8639_s27 = sld [smem:[#allocation62_spill]] }
 0x154   :  { %175 = dma.hbm_to_vmem [thread:$0]  %s8638_s26, 16, %s173_s29, [#allocation12]  }
 0x159   :  { %s7725_s11 = scalar_lea.hbm %s8639_s27, 128 }
 0x15a   :  { %p7726_p2 = scmp.ne.s32.totalorder %s8639_s27, %s7725_s11  ;;  %p7729_p3 = scmp.lt.u32.totalorder %s7725_s11, %s8639_s27 }
 0x15c   :  { %p7731_p4 = pnand %p7729_p3, %p7726_p2 }
 0x15e   :  { %7734 = shalt.err (!%p7731_p4)
}
 0x15f   :  { %s7735_s16 = scalar_lea.vmem %s195_s6, 128  ;;  %p7740_p6 = scmp.lt.s32.totalorder %s195_s6, %s195_s6 }
 0x160   :  { %p7736_p5 = scmp.ne.s32.totalorder %s195_s6, %s7735_s16  ;;  %p7741_p7 = scmp.lt.s32.totalorder %s7735_s16, %s7735_s16 }
 0x162   :  { %p7742_p8 = por %p7741_p7, %p7740_p6 }
 0x164   :  { %p7743_p9 = pnand %p7742_p8, %p7736_p5 }
 0x166   :  { %7746 = shalt.err (!%p7743_p9)
}
 0x167   :  { %s8640_s20 = sld [smem:[#allocation64_spill]]  ;;  %s8033_s18 = smov [#allocation19]  }
 0x168   :  { %197 = dma.hbm_to_vmem [thread:$0]  %s8639_s27, 128, %s195_s6, [#allocation15]  }
 0x169   :  { %s217_s19 = sshll.u32 %s8033_s18, 4  ;;  %s8034_s22 = smov [#allocation22]   ;;  %s218_s19 = int_to_ptr.vmem [resolvable:$true] %s217_s19 }
 0x16a   :  { %s239_s24 = sshll.u32 %s8034_s22, 4  ;;  %s240_s24 = int_to_ptr.vmem [resolvable:$true] %s239_s24 }
 0x16d   :  { %s7747_s12 = scalar_lea.hbm %s8640_s20, 8192 }
 0x16e   :  { %p7748_p10 = scmp.ne.s32.totalorder %s8640_s20, %s7747_s12  ;;  %p7751_p11 = scmp.lt.u32.totalorder %s7747_s12, %s8640_s20 }
 0x170   :  { %p7753_p12 = pnand %p7751_p11, %p7748_p10 }
 0x172   :  { %7756 = shalt.err (!%p7753_p12)
}
 0x173   :  { %s7757_s0 = scalar_lea.vmem %s218_s19, 8192  ;;  %p7762_p0 = scmp.lt.s32.totalorder %s218_s19, %s218_s19 }
 0x174   :  { %p7758_p13 = scmp.ne.s32.totalorder %s218_s19, %s7757_s0  ;;  %p7763_p1 = scmp.lt.s32.totalorder %s7757_s0, %s7757_s0 }
 0x176   :  { %p7764_p2 = por %p7763_p1, %p7762_p0 }
 0x178   :  { %p7765_p3 = pnand %p7764_p2, %p7758_p13 }
 0x17a   :  { %7768 = shalt.err (!%p7765_p3)
}
 0x17b   :  { %s8641_s25 = sld [smem:[#allocation65_spill]] }
 0x17c   :  { %223 = dma.hbm_to_vmem [thread:$0]  %s8640_s20, 8192, %s218_s19, [#allocation18], %s8012_s15, %s8012_s15, %s8013_s13  }
 0x181   :  { %s7769_s23 = scalar_lea.hbm %s8641_s25, 2048 }
 0x182   :  { %p7770_p4 = scmp.ne.s32.totalorder %s8641_s25, %s7769_s23  ;;  %p7773_p5 = scmp.lt.u32.totalorder %s7769_s23, %s8641_s25 }
 0x184   :  { %p7775_p6 = pnand %p7773_p5, %p7770_p4 }
 0x186   :  { %7778 = shalt.err (!%p7775_p6)
}
 0x187   :  { %s7779_s9 = scalar_lea.vmem %s240_s24, 2048  ;;  %p7784_p8 = scmp.lt.s32.totalorder %s240_s24, %s240_s24 }
 0x188   :  { %p7780_p7 = scmp.ne.s32.totalorder %s240_s24, %s7779_s9  ;;  %p7785_p9 = scmp.lt.s32.totalorder %s7779_s9, %s7779_s9 }
 0x18a   :  { %p7786_p10 = por %p7785_p9, %p7784_p8 }
 0x18c   :  { %p7787_p11 = pnand %p7786_p10, %p7780_p7 }
 0x18e   :  { %7790 = shalt.err (!%p7787_p11)
}
 0x18f   :  { %s8642_s28 = sld [smem:[#allocation67_spill]]  ;;  %s8035_s3 = smov [#allocation25]  }
 0x190   :  { %245 = dma.hbm_to_vmem [thread:$0]  %s8641_s25, 2048, %s240_s24, [#allocation21], %s8010_s2, %s8010_s2, %s8011_s7  }
 0x191   :  { %s264_s26 = sshll.u32 %s8035_s3, 4  ;;  %s8036_s1 = smov [#allocation28]   ;;  %s265_s26 = int_to_ptr.vmem [resolvable:$true] %s264_s26 }
 0x192   :  { %s286_s29 = sshll.u32 %s8036_s1, 4  ;;  %s287_s29 = int_to_ptr.vmem [resolvable:$true] %s286_s29 }
 0x195   :  { %s7791_s21 = scalar_lea.hbm %s8642_s28, 16 }
 0x196   :  { %p7792_p12 = scmp.ne.s32.totalorder %s8642_s28, %s7791_s21  ;;  %p7795_p13 = scmp.lt.u32.totalorder %s7791_s21, %s8642_s28 }
 0x198   :  { %p7797_p0 = pnand %p7795_p13, %p7792_p12 }
 0x19a   :  { %7800 = shalt.err (!%p7797_p0)
}
 0x19b   :  { %s7801_s6 = scalar_lea.vmem %s265_s26, 16  ;;  %s7805_s4 = scalar_lea.vmem %s265_s26, 32 }
 0x19c   :  { %p7802_p1 = scmp.ne.s32.totalorder %s265_s26, %s7801_s6  ;;  %p7806_p2 = scmp.lt.s32.totalorder %s265_s26, %s265_s26 }
 0x19d   :  { %p7807_p3 = scmp.lt.s32.totalorder %s7805_s4, %s7801_s6 }
 0x19f   :  { %p7808_p4 = por %p7807_p3, %p7806_p2 }
 0x1a1   :  { %p7809_p5 = pnand %p7808_p4, %p7802_p1 }
 0x1a3   :  { %7812 = shalt.err (!%p7809_p5)
}
 0x1a4   :  { %s8643_s14 = sld [smem:[#allocation68_spill]] }
 0x1a5   :  { %267 = dma.hbm_to_vmem [thread:$0]  %s8642_s28, 16, %s265_s26, [#allocation24]  }
 0x1aa   :  { %s7813_s10 = scalar_lea.hbm %s8643_s14, 16 }
 0x1ab   :  { %p7814_p6 = scmp.ne.s32.totalorder %s8643_s14, %s7813_s10  ;;  %p7817_p7 = scmp.lt.u32.totalorder %s7813_s10, %s8643_s14 }
 0x1ad   :  { %p7819_p8 = pnand %p7817_p7, %p7814_p6 }
 0x1af   :  { %7822 = shalt.err (!%p7819_p8)
}
 0x1b0   :  { %s7823_s27 = scalar_lea.vmem %s287_s29, 16  ;;  %s7827_s11 = scalar_lea.vmem %s287_s29, 32 }
 0x1b1   :  { %p7824_p9 = scmp.ne.s32.totalorder %s287_s29, %s7823_s27  ;;  %p7828_p10 = scmp.lt.s32.totalorder %s287_s29, %s287_s29 }
 0x1b2   :  { %p7829_p11 = scmp.lt.s32.totalorder %s7827_s11, %s7823_s27 }
 0x1b4   :  { %p7830_p12 = por %p7829_p11, %p7828_p10 }
 0x1b6   :  { %p7831_p13 = pnand %p7830_p12, %p7824_p9 }
 0x1b8   :  { %7834 = shalt.err (!%p7831_p13)
}
 0x1b9   :  { %s8644_s16 = sld [smem:[#allocation69_spill]]  ;;  %s8037_s20 = smov [#allocation31]  }
 0x1ba   :  { %289 = dma.hbm_to_vmem [thread:$0]  %s8643_s14, 16, %s287_s29, [#allocation27]  }
 0x1bb   :  { %s308_s18 = sshll.u32 %s8037_s20, 4  ;;  %s8038_s19 = smov [#allocation34]   ;;  %s309_s18 = int_to_ptr.vmem [resolvable:$true] %s308_s18 }
 0x1bc   :  { %s330_s22 = sshll.u32 %s8038_s19, 4  ;;  %s331_s22 = int_to_ptr.vmem [resolvable:$true] %s330_s22 }
 0x1bf   :  { %s7835_s24 = scalar_lea.hbm %s8644_s16, 32 }
 0x1c0   :  { %p7836_p0 = scmp.ne.s32.totalorder %s8644_s16, %s7835_s24  ;;  %p7839_p1 = scmp.lt.u32.totalorder %s7835_s24, %s8644_s16 }
 0x1c2   :  { %p7841_p2 = pnand %p7839_p1, %p7836_p0 }
 0x1c4   :  { %7844 = shalt.err (!%p7841_p2)
}
 0x1c5   :  { %s7845_s12 = scalar_lea.vmem %s309_s18, 32  ;;  %p7850_p4 = scmp.lt.s32.totalorder %s309_s18, %s309_s18 }
 0x1c6   :  { %p7846_p3 = scmp.ne.s32.totalorder %s309_s18, %s7845_s12  ;;  %p7851_p5 = scmp.lt.s32.totalorder %s7845_s12, %s7845_s12 }
 0x1c8   :  { %p7852_p6 = por %p7851_p5, %p7850_p4 }
 0x1ca   :  { %p7853_p7 = pnand %p7852_p6, %p7846_p3 }
 0x1cc   :  { %7856 = shalt.err (!%p7853_p7)
}
 0x1cd   :  { %s8645_s0 = sld [smem:[#allocation70_spill]] }
 0x1ce   :  { %311 = dma.hbm_to_vmem [thread:$0]  %s8644_s16, 32, %s309_s18, [#allocation30]  }
 0x1d3   :  { %s7857_s25 = scalar_lea.hbm %s8645_s0, 16 }
 0x1d4   :  { %p7858_p8 = scmp.ne.s32.totalorder %s8645_s0, %s7857_s25  ;;  %p7861_p9 = scmp.lt.u32.totalorder %s7857_s25, %s8645_s0 }
 0x1d6   :  { %p7863_p10 = pnand %p7861_p9, %p7858_p8 }
 0x1d8   :  { %7866 = shalt.err (!%p7863_p10)
}
 0x1d9   :  { %s7867_s23 = scalar_lea.vmem %s331_s22, 16  ;;  %s7871_s9 = scalar_lea.vmem %s331_s22, 32 }
 0x1da   :  { %p7868_p11 = scmp.ne.s32.totalorder %s331_s22, %s7867_s23  ;;  %p7872_p12 = scmp.lt.s32.totalorder %s331_s22, %s331_s22 }
 0x1db   :  { %p7873_p13 = scmp.lt.s32.totalorder %s7871_s9, %s7867_s23 }
 0x1dd   :  { %p7874_p0 = por %p7873_p13, %p7872_p12 }
 0x1df   :  { %p7875_p1 = pnand %p7874_p0, %p7868_p11 }
 0x1e1   :  { %7878 = shalt.err (!%p7875_p1)
}
 0x1e2   :  { %s8646_s28 = sld [smem:[#allocation71_spill]]  ;;  %s8039_s3 = smov [#allocation37]  }
 0x1e3   :  { %333 = dma.hbm_to_vmem [thread:$0]  %s8645_s0, 16, %s331_s22, [#allocation33]  }
 0x1e4   :  { %s352_s26 = sshll.u32 %s8039_s3, 4  ;;  %s8040_s1 = smov [#allocation40]   ;;  %s353_s26 = int_to_ptr.vmem [resolvable:$true] %s352_s26 }
 0x1e5   :  { %s379_s29 = sshll.u32 %s8040_s1, 4  ;;  %s380_s29 = int_to_ptr.vmem [resolvable:$true] %s379_s29 }
 0x1e8   :  { %s7879_s21 = scalar_lea.hbm %s8646_s28, 32 }
 0x1e9   :  { %p7880_p2 = scmp.ne.s32.totalorder %s8646_s28, %s7879_s21  ;;  %p7883_p3 = scmp.lt.u32.totalorder %s7879_s21, %s8646_s28 }
 0x1eb   :  { %p7885_p4 = pnand %p7883_p3, %p7880_p2 }
 0x1ed   :  { %7888 = shalt.err (!%p7885_p4)
}
 0x1ee   :  { %s7889_s6 = scalar_lea.vmem %s353_s26, 32  ;;  %p7894_p6 = scmp.lt.s32.totalorder %s353_s26, %s353_s26 }
 0x1ef   :  { %p7890_p5 = scmp.ne.s32.totalorder %s353_s26, %s7889_s6  ;;  %p7895_p7 = scmp.lt.s32.totalorder %s7889_s6, %s7889_s6 }
 0x1f1   :  { %p7896_p8 = por %p7895_p7, %p7894_p6 }
 0x1f3   :  { %p7897_p9 = pnand %p7896_p8, %p7890_p5 }
 0x1f5   :  { %7900 = shalt.err (!%p7897_p9)
}
 0x1f6   :  { %355 = dma.hbm_to_vmem [thread:$0]  %s8646_s28, 32, %s353_s26, [#allocation36]  }
 0x1f7   :  { %s7901_s4 = scalar_lea.hbm %s8218_s30, 2048 }
 0x1f8   :  { %p7902_p10 = scmp.ne.s32.totalorder %s8218_s30, %s7901_s4  ;;  %p7905_p11 = scmp.lt.u32.totalorder %s7901_s4, %s8218_s30 }
 0x1fa   :  { %p7907_p12 = pnand %p7905_p11, %p7902_p10 }
 0x1fc   :  { %7910 = shalt.err (!%p7907_p12)
}
 0x1fd   :  { %s7911_s14 = scalar_lea.vmem %s380_s29, 2048  ;;  %p7916_p0 = scmp.lt.s32.totalorder %s380_s29, %s380_s29 }
 0x1fe   :  { %p7912_p13 = scmp.ne.s32.totalorder %s380_s29, %s7911_s14  ;;  %p7917_p1 = scmp.lt.s32.totalorder %s7911_s14, %s7911_s14 }
 0x200   :  { %p7918_p2 = por %p7917_p1, %p7916_p0 }
 0x202   :  { %p7919_p3 = pnand %p7918_p2, %p7912_p13 }
 0x204   :  { %7922 = shalt.err (!%p7919_p3)
}
 0x205   :  { %385 = dma.hbm_to_vmem [thread:$0]  %s8218_s30, 2048, %s380_s29, [#allocation39], %s8010_s2, %s8010_s2, %s8011_s7  }
 0x206   :  { %7945 = dma.done.wait [#allocation3], 128  }
 0x207   :  { %7946 = vsyncadd [#allocation3], 4294967168 }
 0x208   :  { %7947 = dma.done.wait [#allocation6], 144  }
 0x209   :  { %7948 = vsyncadd [#allocation6], 4294967152 }
 0x20a   :  { %7949 = dma.done.wait [#allocation9], 2080  }
 0x20b   :  { %7950 = vsyncadd [#allocation9], 4294965216 }
 0x20c   :  { %7951 = dma.done.wait [#allocation12], 2064  }
 0x20d   :  { %7952 = vsyncadd [#allocation12], 4294965232 }
 0x20e   :  { %7953 = dma.done.wait [#allocation15], 8320  }
 0x20f   :  { %7954 = vsyncadd [#allocation15], 4294958976 }
 0x210   :  { %7955 = dma.done.wait [#allocation18], 40960  }
 0x211   :  { %7956 = vsyncadd [#allocation18], 4294926336 }
 0x212   :  { %7957 = dma.done.wait [#allocation21], 2080  }
 0x213   :  { %7958 = vsyncadd [#allocation21], 4294965216 }
 0x214   :  { %7959 = dma.done.wait [#allocation24], 32  }
 0x215   :  { %7960 = vsyncadd [#allocation24], 4294967264 }
 0x216   :  { %7961 = dma.done.wait [#allocation27], 528  }
 0x217   :  { %7962 = vsyncadd [#allocation27], 4294966768 }
 0x218   :  { %7963 = dma.done.wait [#allocation30], 2080  }
 0x219   :  { %7964 = vsyncadd [#allocation30], 4294965216 }
 0x21a   :  { %7965 = dma.done.wait [#allocation33], 2064  }
 0x21b   :  { %7966 = vsyncadd [#allocation33], 4294965232 }
 0x21c   :  { %7967 = dma.done.wait [#allocation36], 2080  }
 0x21d   :  { %7968 = vsyncadd [#allocation36], 4294965216 }
 0x21e   :  { %7969 = dma.done.wait [#allocation39], 6144  }
 0x21f   :  { %7970 = vsyncadd [#allocation39], 4294961152  ;;  %s8647_s30 = sld [smem:[#allocation57_spill]]  ;;  %s8648_s2 = sld [smem:[#allocation59_spill]]  ;;  %v8041_v0 = vmov 0.0   ;;  %vm8042_vm0 = vmmov 0  }
 0x220   :  { %6442 = vmatprep.subr.bf16.mxu0 %v8041_v0  ;;  %6458 = vmatprep.mubr.msk.bf16.mxu0 %vm8042_vm0, %v8041_v0  ;;  %s8649_s7 = sld [smem:[#allocation56_spill]]  ;;  %s8650_s10 = sld [smem:[#allocation58_spill]]  ;;  %v6633_v14 = vld [vmem:[#allocation8 + $0x4] ss:$8 sps:$4 sm:$0xff]   ;;  %vm626_vm1 = vcmask 523264   ;;  %v8043_v40 = vmov 0  }
 0x221   :  { %6462 = vmatprep.subr.bf16.mxu1 %v8041_v0  ;;  %6470 = vmatprep.mubr.msk.bf16.mxu1 %vm8042_vm0, %v8041_v0  ;;  %v6631_v24 = vld [vmem:[#allocation8] ss:$8 sps:$4 sm:$0xff]   ;;  %v6636_v26 = vld [vmem:[#allocation8 + $0x14] ss:$8 sps:$4 sm:$0xff]   ;;  %v6634_v27 = vld [vmem:[#allocation8 + $0x10] ss:$8 sps:$4 sm:$0xff]  }
 0x222   :  { %v6639_v28 = vld [vmem:[#allocation8 + $0x24] ss:$8 sps:$4 sm:$0xff]   ;;  %v6637_v29 = vld [vmem:[#allocation8 + $0x20] ss:$8 sps:$4 sm:$0xff]   ;;  %v6642_v30 = vld [vmem:[#allocation8 + $0x34] ss:$8 sps:$4 sm:$0xff]  }
 0x223   :  { %v6640_v31 = vld [vmem:[#allocation8 + $0x30] ss:$8 sps:$4 sm:$0xff]   ;;  %v6645_v32 = vld [vmem:[#allocation8 + $0x44] ss:$8 sps:$4 sm:$0xff]   ;;  %v6643_v33 = vld [vmem:[#allocation8 + $0x40] ss:$8 sps:$4 sm:$0xff]  }
 0x224   :  { %v6648_v34 = vld [vmem:[#allocation8 + $0x54] ss:$8 sps:$4 sm:$0xff]   ;;  %v6646_v35 = vld [vmem:[#allocation8 + $0x50] ss:$8 sps:$4 sm:$0xff]   ;;  %v6651_v36 = vld [vmem:[#allocation8 + $0x64] ss:$8 sps:$4 sm:$0xff]  }
 0x225   :  { %v6618_v1 = vld [vmem:[%s8647_s30] sm:$0xff]   ;;  %v6619_v2 = vld [vmem:[%s8647_s30 + $0x8] sm:$0xff]   ;;  %v6620_v3 = vld [vmem:[%s8647_s30 + $0x10] sm:$0xff]   ;;  %s8651_s27 = sld [smem:[#allocation63_spill]]  ;;  %s8652_s11 = sld [smem:[#allocation66_spill]] }
 0x226   :  { %6443 = vmatpush3.bf16.msra.mxu0 %v6618_v1  ;;  %v6627_v4 = vld [vmem:[%s8648_s2] sm:$0xff]   ;;  %v6621_v5 = vld [vmem:[%s8647_s30 + $0x18] sm:$0xff]   ;;  %v6628_v6 = vld [vmem:[%s8648_s2 + $0x8] sm:$0xff]   ;;  %s8653_s16 = sld [smem:[#allocation72_spill]]  ;;  %s8654_s20 = sld [smem:[#allocation73_spill]] }
 0x227   :  { %6444 = vmatprep.subr.bf16.mxu0 %v8041_v0  ;;  %6463 = vmatpush3.bf16.msra.mxu1 %v6627_v4  ;;  %v6622_v7 = vld [vmem:[%s8647_s30 + $0x20] sm:$0xff]   ;;  %v6623_v8 = vld [vmem:[%s8647_s30 + $0x28] sm:$0xff]   ;;  %v6624_v9 = vld [vmem:[%s8647_s30 + $0x30] sm:$0xff]  }
 0x228   :  { %6464 = vmatprep.subr.bf16.mxu1 %v8041_v0  ;;  %v6625_v10 = vld [vmem:[%s8647_s30 + $0x38] sm:$0xff]   ;;  %v6626_v11 = vld [vmem:[%s8649_s7] sm:$0xff]   ;;  %v6629_v12 = vld [vmem:[%s8648_s2 + $0x10] sm:$0xff]  }
 0x229   :  { %v6630_v13 = vld [vmem:[%s8648_s2 + $0x18] sm:$0xff]   ;;  %v5729_v15 = vld [vmem:[%s8650_s10] ss:$0 sm:$0xff]  ;;  %v6654_v38 = vld [vmem:[#allocation8 + $0x74] ss:$8 sps:$4 sm:$0xff]  }
 0x22a   :  { %6445 = vmatpush3.bf16.msra.mxu0 %v6619_v2  ;;  %v6649_v37 = vld [vmem:[#allocation8 + $0x60] ss:$8 sps:$4 sm:$0xff]   ;;  %v6652_v39 = vld [vmem:[#allocation8 + $0x70] ss:$8 sps:$4 sm:$0xff]   ;;  %v5739_v57 = vld [vmem:[#allocation7] ss:$0 sm:$0xff] }
 0x22b   :  { %6446 = vmatprep.subr.bf16.mxu0 %v8041_v0  ;;  %6465 = vmatpush3.bf16.msra.mxu1 %v6628_v6  ;;  %v1023_v41 = vld [vmem:[#allocation14] sm:$0xff]  ;;  %v6660_v49 = vld [vmem:[#allocation11 + $0x50] sm:$0xff]   ;;  %v6662_v51 = vld [vmem:[#allocation11 + $0x58] sm:$0xff]  }
 0x22c   :  { %6466 = vmatprep.subr.bf16.mxu1 %v8041_v0  ;;  %v1027_v42 = vld [vmem:[#allocation14 + $0x20] sm:$0xff]  ;;  %v6661_v50 = vld [vmem:[#allocation11 + $0x10] sm:$0xff]   ;;  %v6663_v52 = vld [vmem:[#allocation11 + $0x18] sm:$0xff]  }
 0x22d   :  { %v5779_v43 = vcombine.low %v1023_v41, %v1027_v42  ;;  %v5780_v44 = vcombine.high %v1023_v41, %v1027_v42  ;;  %v6656_v45 = vld [vmem:[#allocation11 + $0x40] sm:$0xff]   ;;  %v6658_v47 = vld [vmem:[#allocation11 + $0x48] sm:$0xff]   ;;  %v1025_v42 = vld [vmem:[#allocation14 + $0x10] sm:$0xff] }
 0x22e   :  { %6447 = vmatpush3.bf16.msra.mxu0 %v6620_v3  ;;  %v6657_v46 = vld [vmem:[#allocation11] sm:$0xff]   ;;  %v6659_v48 = vld [vmem:[#allocation11 + $0x8] sm:$0xff]  }
 0x22f   :  { %6448 = vmatprep.subr.bf16.mxu0 %v8041_v0  ;;  %6467 = vmatpush3.bf16.msra.mxu1 %v6629_v12  ;;  %v6664_v53 = vld [vmem:[#allocation11 + $0x60] sm:$0xff]   ;;  %v6666_v55 = vld [vmem:[#allocation11 + $0x68] sm:$0xff]  }
 0x230   :  { %6468 = vmatprep.subr.bf16.mxu1 %v8041_v0  ;;  %v6665_v54 = vld [vmem:[#allocation11 + $0x20] sm:$0xff]   ;;  %v6667_v56 = vld [vmem:[#allocation11 + $0x28] sm:$0xff]  }
 0x231   :  { %v1031_v1 = vld [vmem:[#allocation14 + $0x40] sm:$0xff] }
 0x232   :  { %6449 = vmatpush3.bf16.msra.mxu0 %v6621_v5  ;;  %v1035_v2 = vld [vmem:[#allocation14 + $0x60] sm:$0xff] }
 0x233   :  { %6450 = vmatprep.subr.bf16.mxu0 %v8041_v0  ;;  %6469 = vmatpush3.bf16.msra.mxu1 %v6630_v13  ;;  %v5788_v6 = vcombine.high %v1031_v1, %v1035_v2  ;;  %v1051_v12 = vld [vmem:[#allocation14 + $0xe0] sm:$0xff] }
 0x234   :  { %782 = vmatprep.subr.bf16.mxu1 %v6633_v14 }
 0x236   :  { %6451 = vmatpush3.bf16.msra.mxu0 %v6622_v7  ;;  %v1039_v7 = vld [vmem:[#allocation14 + $0x80] sm:$0xff] }
 0x237   :  { %6452 = vmatprep.subr.bf16.mxu0 %v8041_v0 }
 0x23a   :  { %6453 = vmatpush3.bf16.msra.mxu0 %v6623_v8  ;;  %v1043_v8 = vld [vmem:[#allocation14 + $0xa0] sm:$0xff] }
 0x23b   :  { %6454 = vmatprep.subr.bf16.mxu0 %v8041_v0  ;;  %v5795_v13 = vcombine.low %v1039_v7, %v1043_v8 }
 0x23e   :  { %6455 = vmatpush3.bf16.msra.mxu0 %v6624_v9  ;;  %v5787_v9 = vcombine.low %v1031_v1, %v1035_v2  ;;  %v1073_v2 = vld [vmem:[#allocation14 + $0x190] sm:$0xff] }
 0x23f   :  { %6456 = vmatprep.subr.bf16.mxu0 %v8041_v0 }
 0x242   :  { %6457 = vmatpush3.bf16.msra.mxu0 %v6625_v10  ;;  %v5796_v10 = vcombine.high %v1039_v7, %v1043_v8  ;;  %v1085_v7 = vld [vmem:[#allocation14 + $0x1f0] sm:$0xff] }
 0x243   :  { %6340 = vmatprep.subr.bf16.mxu0 %v6656_v45 }
 0x245   :  { %6459 = vmatmul.mubr.bf16.vlgmr.msra.gmra.mrb[0].mxu0 %v6626_v11  ;;  %v1047_v11 = vld [vmem:[#allocation14 + $0xc0] sm:$0xff] }
 0x246   :  { %6341 = vmatpush3.bf16.msra.mxu0 %v6657_v46  ;;  %v5804_v14 = vcombine.high %v1047_v11, %v1051_v12 }
 0x247   :  { %6342 = vmatprep.subr.bf16.mxu0 %v6658_v47  ;;  %v1037_v47 = vld [vmem:[#allocation14 + $0x70] sm:$0xff] }
 0x24a   :  { %6343 = vmatpush3.bf16.msra.mxu0 %v6659_v48 }
 0x24b   :  { %6344 = vmatprep.subr.bf16.mxu0 %v6660_v49  ;;  %v1041_v49 = vld [vmem:[#allocation14 + $0x90] sm:$0xff] }
 0x24e   :  { %6345 = vmatpush3.bf16.msra.mxu0 %v6661_v50  ;;  %v1045_v50 = vld [vmem:[#allocation14 + $0xb0] sm:$0xff] }
 0x24f   :  { %6346 = vmatprep.subr.bf16.mxu0 %v6662_v51 }
 0x252   :  { %6347 = vmatpush3.bf16.msra.mxu0 %v6663_v52  ;;  %v5800_v52 = vcombine.high %v1041_v49, %v1045_v50 }
 0x253   :  { %6348 = vmatprep.subr.bf16.mxu0 %v6664_v53  ;;  %v1049_v53 = vld [vmem:[#allocation14 + $0xd0] sm:$0xff] }
 0x256   :  { %6349 = vmatpush3.bf16.msra.mxu0 %v6665_v54  ;;  %v1053_v54 = vld [vmem:[#allocation14 + $0xf0] sm:$0xff] }
 0x257   :  { %6350 = vmatprep.subr.bf16.mxu0 %v6666_v55  ;;  %v5799_v55 = vcombine.low %v1041_v49, %v1045_v50  ;;  %v6750_v50 = vld [vmem:[#allocation17 + $0x1a0] ss:$16 sps:$4 sm:$0xff]  }
 0x25a   :  { %6351 = vmatpush3.bf16.msra.mxu0 %v6667_v56  ;;  %v5808_v56 = vcombine.high %v1049_v53, %v1053_v54 }
 0x318   :  { %v577_v16 = vpop.f32.mrb[0].mxu0 }
 0x319   :  { %v578_v17 = vadd.f32 %v5729_v15, %v577_v16  ;;  %v6460_v18 = vpop.f32.mrb[1].mxu0  ;;  %v1059_v16 = vld [vmem:[#allocation14 + $0x120] sm:$0xff] }
 0x31a   :  { %v580_v19 = vpop.f32.mrb[2].mxu0 }
 0x31b   :  { %v581_v20 = vadd.f32 %v5729_v15, %v580_v19  ;;  %v6461_v21 = vpop.f32.mrb[3].mxu0  ;;  %v584_v22 = vmax.f32 %v578_v17, 0.0  ;;  %v1055_v15 = vld [vmem:[#allocation14 + $0x100] sm:$0xff]  ;;  %v5803_v17 = vcombine.low %v1047_v11, %v1051_v12  ;;  %v6674_v11 = vld [vmem:[#allocation17 + $0x4] ss:$16 sps:$4 sm:$0xff]  }
 0x31c   :  { %v5812_v18 = vcombine.high %v1055_v15, %v1059_v16  ;;  %v1063_v19 = vld [vmem:[#allocation14 + $0x140] sm:$0xff]  ;;  %v5811_v21 = vcombine.low %v1055_v15, %v1059_v16  ;;  %v6672_v12 = vld [vmem:[#allocation17] ss:$16 sps:$4 sm:$0xff]   ;;  %v6686_v15 = vld [vmem:[#allocation17 + $0x44] ss:$16 sps:$4 sm:$0xff]  }
 0x31d   :  { %v585_v23 = vmax.f32 %v581_v20, 0.0  ;;  %v1067_v20 = vld [vmem:[#allocation14 + $0x160] sm:$0xff]  ;;  %v6684_v16 = vld [vmem:[#allocation17 + $0x40] ss:$16 sps:$4 sm:$0xff]  }
 0x31f   :  { %v586_v25 = vpack.c.bf16 %v585_v23, %v584_v22  ;;  %v5820_v22 = vcombine.high %v1063_v19, %v1067_v20  ;;  %v1071_v23 = vld [vmem:[#allocation14 + $0x180] sm:$0xff] }
 0x321   :  { %6471 = vmatmul.mubr.msk.bf16.vlgmr.msra.gmra.mrb[0].mxu1 %vm626_vm1, %v586_v25  ;;  %v5819_v25 = vcombine.low %v1063_v19, %v1067_v20  ;;  %v6698_v19 = vld [vmem:[#allocation17 + $0x84] ss:$16 sps:$4 sm:$0xff]   ;;  %v6696_v20 = vld [vmem:[#allocation17 + $0x80] ss:$16 sps:$4 sm:$0xff]  }
 0x322   :  { %783 = vmatpush1.bf16.msra.mxu1 %v6631_v24  ;;  %814 = vmatprep.mubr.bf16.mxu1 %v8043_v40  ;;  %v1075_v24 = vld [vmem:[#allocation14 + $0x1a0] sm:$0xff] }
 0x323   :  { %784 = vmatprep.subr.bf16.mxu1 %v6636_v26  ;;  %v5828_v26 = vcombine.high %v1071_v23, %v1075_v24 }
 0x326   :  { %785 = vmatpush1.bf16.msra.mxu1 %v6634_v27  ;;  %v1079_v27 = vld [vmem:[#allocation14 + $0x1c0] sm:$0xff] }
 0x327   :  { %786 = vmatprep.subr.bf16.mxu1 %v6639_v28  ;;  %v1083_v28 = vld [vmem:[#allocation14 + $0x1e0] sm:$0xff] }
 0x32a   :  { %787 = vmatpush1.bf16.msra.mxu1 %v6637_v29  ;;  %v5827_v29 = vcombine.low %v1071_v23, %v1075_v24  ;;  %v6710_v23 = vld [vmem:[#allocation17 + $0xc4] ss:$16 sps:$4 sm:$0xff]   ;;  %v6708_v24 = vld [vmem:[#allocation17 + $0xc0] ss:$16 sps:$4 sm:$0xff]  }
 0x32b   :  { %788 = vmatprep.subr.bf16.mxu1 %v6642_v30  ;;  %v5836_v30 = vcombine.high %v1079_v27, %v1083_v28 }
 0x32e   :  { %789 = vmatpush1.bf16.msra.mxu1 %v6640_v31  ;;  %v5835_v31 = vcombine.low %v1079_v27, %v1083_v28  ;;  %v6722_v27 = vld [vmem:[#allocation17 + $0x104] ss:$16 sps:$4 sm:$0xff]   ;;  %v6720_v28 = vld [vmem:[#allocation17 + $0x100] ss:$16 sps:$4 sm:$0xff]  }
 0x32f   :  { %790 = vmatprep.subr.bf16.mxu1 %v6645_v32  ;;  %v8413_v32 = vld [vmem:[#allocation2] sm:$0xff]  }
 0x332   :  { %791 = vmatpush1.bf16.msra.mxu1 %v6643_v33  ;;  %v6668_v33 = vld [vmem:[#allocation11 + $0x70] sm:$0xff]  }
 0x333   :  { %792 = vmatprep.subr.bf16.mxu1 %v6648_v34  ;;  %v6669_v34 = vld [vmem:[#allocation11 + $0x30] sm:$0xff]   ;;  %6352 = vmatprep.subr.bf16.mxu0 %v6668_v33  ;;  %v692_v33 = vlaneseq }
 0x334   :  { %6353 = vmatpush3.bf16.msra.mxu0 %v6669_v34  ;;  %v6732_v34 = vld [vmem:[#allocation17 + $0x140] ss:$16 sps:$4 sm:$0xff]  }
 0x336   :  { %793 = vmatpush1.bf16.msra.mxu1 %v6646_v35  ;;  %v6670_v35 = vld [vmem:[#allocation11 + $0x78] sm:$0xff]  }
 0x337   :  { %794 = vmatprep.subr.bf16.mxu1 %v6651_v36  ;;  %v6671_v36 = vld [vmem:[#allocation11 + $0x38] sm:$0xff]   ;;  %6354 = vmatprep.subr.bf16.mxu0 %v6670_v35 }
 0x338   :  { %6355 = vmatpush3.bf16.msra.mxu0 %v6671_v36  ;;  %v6740_v35 = vld [vmem:[#allocation17 + $0x164] ss:$16 sps:$4 sm:$0xff]   ;;  %v8426_v36 = vshrl.u32 %v692_v33, 7 }
 0x33a   :  { %795 = vmatpush1.bf16.msra.mxu1 %v6649_v37  ;;  %v8417_v37 = vld [vmem:[#allocation14 + $0x8] sm:$0xff] }
 0x33b   :  { %796 = vmatprep.subr.bf16.mxu1 %v6654_v38  ;;  %v8419_v38 = vld [vmem:[#allocation14 + $0x28] sm:$0xff] }
 0x33c   :  { %v5781_v41 = vcombine.low %v8417_v37, %v8419_v38 }
 0x33e   :  { %797 = vmatpush1.bf16.msra.mxu1 %v6652_v39  ;;  %v5782_v39 = vcombine.high %v8417_v37, %v8419_v38  ;;  %v1064_v37 = vld [vmem:[#allocation14 + $0x148] sm:$0xff] }
 0x33f   :  { %1455 = vmatprep.subr.bf16.mxu1 %v5780_v44  ;;  %v1033_v44 = vld [vmem:[#allocation14 + $0x50] sm:$0xff]  ;;  %v1068_v38 = vld [vmem:[#allocation14 + $0x168] sm:$0xff] }
 0x340   :  { %1498 = vmatprep.subr.bf16.mxu0 %v5782_v39  ;;  %v5792_v48 = vcombine.high %v1033_v44, %v1037_v47  ;;  %v5791_v51 = vcombine.low %v1033_v44, %v1037_v47  ;;  %v6738_v39 = vld [vmem:[#allocation17 + $0x160] ss:$16 sps:$4 sm:$0xff]   ;;  %v690_v44 = vld [vmem:[#allocation10] sm:$0x3] }
 0x341   :  { %v6752_v47 = vld [vmem:[#allocation17 + $0x1a4] ss:$16 sps:$4 sm:$0xff]  }
 0x3f4   :  { %v664_v58 = vpop.f32.mrb[0].mxu1 }
 0x3f5   :  { %v665_v59 = vadd.f32 %v5739_v57, %v664_v58  ;;  %v6472_v60 = vpop.f32.mrb[1].mxu1  ;;  %v1061_v58 = vld [vmem:[#allocation14 + $0x130] sm:$0xff] }
 0x3f6   :  { %v667_v61 = vpop.f32.mrb[2].mxu1 }
 0x3f7   :  { %v668_v62 = vadd.f32 %v5739_v57, %v667_v61  ;;  %v6473_v63 = vpop.f32.mrb[3].mxu1  ;;  %v671_v3 = vmax.f32 %v665_v59, 0.0  ;;  %v1057_v57 = vld [vmem:[#allocation14 + $0x110] sm:$0xff]  ;;  %v5807_v59 = vcombine.low %v1049_v53, %v1053_v54 }
 0x3f8   :  { %v5816_v60 = vcombine.high %v1057_v57, %v1061_v58  ;;  %v1065_v61 = vld [vmem:[#allocation14 + $0x150] sm:$0xff]  ;;  %v5815_v63 = vcombine.low %v1057_v57, %v1061_v58 }
 0x3f9   :  { %v672_v4 = vmax.f32 %v668_v62, 0.0  ;;  %v1069_v62 = vld [vmem:[#allocation14 + $0x170] sm:$0xff] }
 0x3fa   :  { %v5824_v1 = vcombine.high %v1065_v61, %v1069_v62 }
 0x3fb   :  { %v673_v5 = vpack.c.bf16 %v672_v4, %v671_v3  ;;  %v1077_v3 = vld [vmem:[#allocation14 + $0x1b0] sm:$0xff]  ;;  %v5823_v4 = vcombine.low %v1065_v61, %v1069_v62  ;;  %v6764_v61 = vld [vmem:[#allocation17 + $0x1e4] ss:$16 sps:$4 sm:$0xff]  }
 0x3fc   :  { %v5831_v8 = vcombine.low %v1073_v2, %v1077_v3 }
 0x3fd   :  { %815 = vmatmul.mubr.bf16.vlgmr.msra.gmra.mrb[4].mxu1 %v673_v5  ;;  %v5832_v5 = vcombine.high %v1073_v2, %v1077_v3  ;;  %v1032_v3 = vld [vmem:[#allocation14 + $0x48] sm:$0xff] }
 0x3fe   :  { %1456 = vmatpush1.bf16.msra.mxu1 %v5779_v43  ;;  %1487 = vmatprep.mubr.bf16.mxu1 %v8043_v40  ;;  %v1029_v43 = vld [vmem:[#allocation14 + $0x30] sm:$0xff] }
 0x3ff   :  { %1457 = vmatprep.subr.bf16.mxu1 %v5788_v6  ;;  %v5783_v45 = vcombine.low %v1025_v42, %v1029_v43  ;;  %v5784_v46 = vcombine.high %v1025_v42, %v1029_v43  ;;  %v1081_v6 = vld [vmem:[#allocation14 + $0x1d0] sm:$0xff]  ;;  %v6746_v42 = vld [vmem:[#allocation17 + $0x184] ss:$16 sps:$4 sm:$0xff]   ;;  %v8429_v43 = vsub.s32 0, %v8426_v36 }
 0x402   :  { %1458 = vmatpush1.bf16.msra.mxu1 %v5787_v9  ;;  %v5840_v9 = vcombine.high %v1081_v6, %v1085_v7 }
 0x403   :  { %1459 = vmatprep.subr.bf16.mxu1 %v5796_v10  ;;  %v5839_v10 = vcombine.low %v1081_v6, %v1085_v7  ;;  %v6762_v6 = vld [vmem:[#allocation17 + $0x1e0] ss:$16 sps:$4 sm:$0xff]  }
 0x406   :  { %1460 = vmatpush1.bf16.msra.mxu1 %v5795_v13  ;;  %v6680_v13 = vld [vmem:[#allocation17 + $0x24] ss:$16 sps:$4 sm:$0xff]  }
 0x407   :  { %1461 = vmatprep.subr.bf16.mxu1 %v5804_v14  ;;  %v6678_v14 = vld [vmem:[#allocation17 + $0x20] ss:$16 sps:$4 sm:$0xff]  }
 0x40a   :  { %1462 = vmatpush1.bf16.msra.mxu1 %v5803_v17  ;;  %v6692_v17 = vld [vmem:[#allocation17 + $0x64] ss:$16 sps:$4 sm:$0xff]  }
 0x40b   :  { %1463 = vmatprep.subr.bf16.mxu1 %v5812_v18  ;;  %v6690_v18 = vld [vmem:[#allocation17 + $0x60] ss:$16 sps:$4 sm:$0xff]  }
 0x40e   :  { %1464 = vmatpush1.bf16.msra.mxu1 %v5811_v21  ;;  %v6704_v21 = vld [vmem:[#allocation17 + $0xa4] ss:$16 sps:$4 sm:$0xff]  }
 0x40f   :  { %1465 = vmatprep.subr.bf16.mxu1 %v5820_v22  ;;  %v6702_v22 = vld [vmem:[#allocation17 + $0xa0] ss:$16 sps:$4 sm:$0xff]  }
 0x412   :  { %1466 = vmatpush1.bf16.msra.mxu1 %v5819_v25  ;;  %v6716_v25 = vld [vmem:[#allocation17 + $0xe4] ss:$16 sps:$4 sm:$0xff]  }
 0x413   :  { %1467 = vmatprep.subr.bf16.mxu1 %v5828_v26  ;;  %v6714_v26 = vld [vmem:[#allocation17 + $0xe0] ss:$16 sps:$4 sm:$0xff]  }
 0x416   :  { %1468 = vmatpush1.bf16.msra.mxu1 %v5827_v29  ;;  %v6728_v29 = vld [vmem:[#allocation17 + $0x124] ss:$16 sps:$4 sm:$0xff]  }
 0x417   :  { %1469 = vmatprep.subr.bf16.mxu1 %v5836_v30  ;;  %v6726_v30 = vld [vmem:[#allocation17 + $0x120] ss:$16 sps:$4 sm:$0xff]  }
 0x41a   :  { %1470 = vmatpush1.bf16.msra.mxu1 %v5835_v31  ;;  %v6734_v31 = vld [vmem:[#allocation17 + $0x144] ss:$16 sps:$4 sm:$0xff]  }
 0x41b   :  { %1541 = vmatprep.subr.bf16.mxu1 %v5784_v46  ;;  %v6744_v46 = vld [vmem:[#allocation17 + $0x180] ss:$16 sps:$4 sm:$0xff]  }
 0x41d   :  { %1488 = vmatmul.mubr.bf16.vlgmr.msra.gmra.mrb[8].mxu1 %v8413_v32 }
 0x41e   :  { %1573 = vmatprep.mubr.bf16.mxu1 %v8043_v40  ;;  %1542 = vmatpush1.bf16.msra.mxu1 %v5783_v45  ;;  %v8432_v45 = vsub.s32 1, %v8426_v36 }
 0x41f   :  { %1543 = vmatprep.subr.bf16.mxu1 %v5792_v48  ;;  %v695_v48 = vrot.slane %v690_v44, %v8429_v43 }
 0x420   :  { %v699_v49 = vrot.slane %v690_v44, %v8432_v45  ;;  %v1026_v44 = vld [vmem:[#allocation14 + $0x18] sm:$0xff] }
 0x422   :  { %1544 = vmatpush1.bf16.msra.mxu1 %v5791_v51 }
 0x423   :  { %1545 = vmatprep.subr.bf16.mxu1 %v5800_v52  ;;  %v6758_v52 = vld [vmem:[#allocation17 + $0x1c4] ss:$16 sps:$4 sm:$0xff]  }
 0x426   :  { %1546 = vmatpush1.bf16.msra.mxu1 %v5799_v55 }
 0x427   :  { %1547 = vmatprep.subr.bf16.mxu1 %v5808_v56 }
 0x42a   :  { %1548 = vmatpush1.bf16.msra.mxu1 %v5807_v59  ;;  %v6756_v59 = vld [vmem:[#allocation17 + $0x1c0] ss:$16 sps:$4 sm:$0xff]  }
 0x42b   :  { %1549 = vmatprep.subr.bf16.mxu1 %v5816_v60 }
 0x42e   :  { %1550 = vmatpush1.bf16.msra.mxu1 %v5815_v63 }
 0x42f   :  { %1551 = vmatprep.subr.bf16.mxu1 %v5824_v1 }
 0x432   :  { %1552 = vmatpush1.bf16.msra.mxu1 %v5823_v4  ;;  %v1036_v4 = vld [vmem:[#allocation14 + $0x68] sm:$0xff] }
 0x433   :  { %1553 = vmatprep.subr.bf16.mxu1 %v5832_v5 }
 0x436   :  { %1554 = vmatpush1.bf16.msra.mxu1 %v5831_v8  ;;  %v5790_v8 = vcombine.high %v1032_v3, %v1036_v4 }
 0x437   :  { %1555 = vmatprep.subr.bf16.mxu1 %v5840_v9  ;;  %v1040_v9 = vld [vmem:[#allocation14 + $0x88] sm:$0xff] }
 0x43a   :  { %1556 = vmatpush1.bf16.msra.mxu1 %v5839_v10  ;;  %v1044_v10 = vld [vmem:[#allocation14 + $0xa8] sm:$0xff] }
 0x43b   :  { %3209 = vmatprep.subr.bf16.mxu1 %v6674_v11  ;;  %v6770_v11 = vld [vmem:[#allocation17 + $0x204] ss:$16 sps:$4 sm:$0xff]  }
 0x43d   :  { %1574 = vmatmul.mubr.bf16.vlgmr.msra.gmra.mrb[12].mxu1 %v8413_v32 }
 0x43e   :  { %3210 = vmatpush1.bf16.msra.mxu1 %v6672_v12  ;;  %v5789_v12 = vcombine.low %v1032_v3, %v1036_v4  ;;  %v1046_v3 = vld [vmem:[#allocation14 + $0xb8] sm:$0xff] }
 0x43f   :  { %3211 = vmatprep.subr.bf16.mxu1 %v6680_v13  ;;  %v5798_v13 = vcombine.high %v1040_v9, %v1044_v10  ;;  %v6776_v4 = vld [vmem:[#allocation17 + $0x224] ss:$16 sps:$4 sm:$0xff]  }
 0x442   :  { %3212 = vmatpush1.bf16.msra.mxu1 %v6678_v14  ;;  %v1048_v14 = vld [vmem:[#allocation14 + $0xc8] sm:$0xff] }
 0x443   :  { %3213 = vmatprep.subr.bf16.mxu1 %v6686_v15  ;;  %v1052_v15 = vld [vmem:[#allocation14 + $0xe8] sm:$0xff] }
 0x446   :  { %3214 = vmatpush1.bf16.msra.mxu1 %v6684_v16  ;;  %v5797_v16 = vcombine.low %v1040_v9, %v1044_v10  ;;  %v1054_v9 = vld [vmem:[#allocation14 + $0xf8] sm:$0xff] }
 0x447   :  { %3215 = vmatprep.subr.bf16.mxu1 %v6692_v17  ;;  %v5806_v17 = vcombine.high %v1048_v14, %v1052_v15  ;;  %v6782_v10 = vld [vmem:[#allocation17 + $0x244] ss:$16 sps:$4 sm:$0xff]  }
 0x44a   :  { %3216 = vmatpush1.bf16.msra.mxu1 %v6690_v18  ;;  %v1056_v18 = vld [vmem:[#allocation14 + $0x108] sm:$0xff] }
 0x44b   :  { %3217 = vmatprep.subr.bf16.mxu1 %v6698_v19  ;;  %v1060_v19 = vld [vmem:[#allocation14 + $0x128] sm:$0xff] }
 0x44e   :  { %3218 = vmatpush1.bf16.msra.mxu1 %v6696_v20  ;;  %v5805_v20 = vcombine.low %v1048_v14, %v1052_v15  ;;  %v1058_v14 = vld [vmem:[#allocation14 + $0x118] sm:$0xff] }
 0x44f   :  { %3219 = vmatprep.subr.bf16.mxu1 %v6704_v21  ;;  %v5814_v21 = vcombine.high %v1056_v18, %v1060_v19  ;;  %v1062_v15 = vld [vmem:[#allocation14 + $0x138] sm:$0xff] }
 0x452   :  { %3220 = vmatpush1.bf16.msra.mxu1 %v6702_v22  ;;  %v5822_v22 = vcombine.high %v1064_v37, %v1068_v38 }
 0x453   :  { %3221 = vmatprep.subr.bf16.mxu1 %v6710_v23  ;;  %v1072_v23 = vld [vmem:[#allocation14 + $0x188] sm:$0xff] }
 0x456   :  { %3222 = vmatpush1.bf16.msra.mxu1 %v6708_v24  ;;  %v1076_v24 = vld [vmem:[#allocation14 + $0x1a8] sm:$0xff] }
 0x457   :  { %3223 = vmatprep.subr.bf16.mxu1 %v6716_v25  ;;  %v8440_v25 = vld [vmem:[#allocation16] sm:$0xff]  ;;  %v5829_v33 = vcombine.low %v1072_v23, %v1076_v24 }
 0x45a   :  { %3224 = vmatpush1.bf16.msra.mxu1 %v6714_v26  ;;  %v5821_v26 = vcombine.low %v1064_v37, %v1068_v38  ;;  %v6794_v37 = vld [vmem:[#allocation17 + $0x284] ss:$16 sps:$4 sm:$0xff]   ;;  %v5817_v38 = vcombine.low %v1058_v14, %v1062_v15 }
 0x45b   :  { %3225 = vmatprep.subr.bf16.mxu1 %v6722_v27  ;;  %v5830_v27 = vcombine.high %v1072_v23, %v1076_v24  ;;  %v1074_v23 = vld [vmem:[#allocation14 + $0x198] sm:$0xff] }
 0x45c   :  { %v1078_v24 = vld [vmem:[#allocation14 + $0x1b8] sm:$0xff] }
 0x45e   :  { %3226 = vmatpush1.bf16.msra.mxu1 %v6720_v28  ;;  %v1092_v28 = vrot.slane %v8440_v25, %v8429_v43 }
 0x45f   :  { %3227 = vmatprep.subr.bf16.mxu1 %v6728_v29  ;;  %v1080_v29 = vld [vmem:[#allocation14 + $0x1c8] sm:$0xff] }
 0x462   :  { %3228 = vmatpush1.bf16.msra.mxu1 %v6726_v30  ;;  %v1084_v30 = vld [vmem:[#allocation14 + $0x1e8] sm:$0xff] }
 0x463   :  { %3229 = vmatprep.subr.bf16.mxu1 %v6734_v31  ;;  %v1096_v31 = vrot.slane %v8440_v25, %v8432_v45 }
 0x466   :  { %3230 = vmatpush1.bf16.msra.mxu1 %v6732_v34 }
 0x467   :  { %3231 = vmatprep.subr.bf16.mxu1 %v6740_v35  ;;  %v5838_v35 = vcombine.high %v1080_v29, %v1084_v30 }
 0x46a   :  { %3232 = vmatpush1.bf16.msra.mxu1 %v6738_v39 }
 0x46b   :  { %3233 = vmatprep.subr.bf16.mxu1 %v6746_v42 }
 0x46e   :  { %3234 = vmatpush1.bf16.msra.mxu1 %v6744_v46  ;;  %v1030_v46 = vld [vmem:[#allocation14 + $0x38] sm:$0xff] }
 0x46f   :  { %3235 = vmatprep.subr.bf16.mxu1 %v6752_v47 }
 0x472   :  { %3236 = vmatpush1.bf16.msra.mxu1 %v6750_v50 }
 0x473   :  { %3237 = vmatprep.subr.bf16.mxu1 %v6758_v52  ;;  %v5837_v52 = vcombine.low %v1080_v29, %v1084_v30  ;;  %v6798_v29 = vld [vmem:[#allocation17 + $0x2a0] ss:$16 sps:$4 sm:$0xff]  }
 0x474   :  { %v1082_v30 = vld [vmem:[#allocation14 + $0x1d8] sm:$0xff] }
 0x476   :  { %3238 = vmatpush1.bf16.msra.mxu1 %v6756_v59 }
 0x477   :  { %3239 = vmatprep.subr.bf16.mxu1 %v6764_v61  ;;  %v5785_v61 = vcombine.low %v1026_v44, %v1030_v46 }
 0x47a   :  { %3240 = vmatpush1.bf16.msra.mxu1 %v6762_v6 }
 0x47b   :  { %3252 = vmatprep.subr.bf16.mxu1 %v6770_v11 }
 0x4d0   :  { %v816_v51 = vpop.f32.mrb[4].mxu1 }
 0x4d1   :  { %v817_v53 = vadd.f32 %v816_v51, %v695_v48  ;;  %v818_v54 = vpop.f32.mrb[5].mxu1 }
 0x4d2   :  { %v819_v55 = vadd.f32 %v818_v54, %v699_v49  ;;  %v820_v56 = vpop.f32.mrb[6].mxu1 }
 0x4d3   :  { %v821_v57 = vadd.f32 %v820_v56, %v695_v48  ;;  %v822_v58 = vpop.f32.mrb[7].mxu1  ;;  %v825_v62 = vmax.f32 %v817_v53, 0.0 }
 0x4d4   :  { %v823_v60 = vadd.f32 %v822_v58, %v699_v49  ;;  %v826_v1 = vmax.f32 %v819_v55, 0.0  ;;  %v5786_v55 = vcombine.high %v1026_v44, %v1030_v46  ;;  %v1038_v58 = vld [vmem:[#allocation14 + $0x78] sm:$0xff]  ;;  %v6683_v44 = vld [vmem:[#allocation17 + $0x2c] ss:$16 sps:$4 sm:$0xff]   ;;  %v6681_v46 = vld [vmem:[#allocation17 + $0x28] ss:$16 sps:$4 sm:$0xff]  }
 0x4d5   :  { %v827_v63 = vmax.f32 %v821_v57, 0.0  ;;  %v1034_v57 = vld [vmem:[#allocation14 + $0x58] sm:$0xff] }
 0x4d6   :  { %v828_v2 = vmax.f32 %v823_v60, 0.0 }
 0x4d7   :  { %v829_v5 = vpack.c.bf16 %v827_v63, %v825_v62  ;;  %v5794_v63 = vcombine.high %v1034_v57, %v1038_v58 }
 0x4d8   :  { %v830_v7 = vpack.c.bf16 %v828_v2, %v826_v1  ;;  %v6768_v1 = vld [vmem:[#allocation17 + $0x200] ss:$16 sps:$4 sm:$0xff]  }
 0x4d9   :  { %v1042_v2 = vld [vmem:[#allocation14 + $0x98] sm:$0xff] }
 0x4da   :  { %998 = vmatprep.mubr.bf16.mxu0 %v830_v7  ;;  %v5802_v6 = vcombine.high %v1042_v2, %v1046_v3  ;;  %v6774_v7 = vld [vmem:[#allocation17 + $0x220] ss:$16 sps:$4 sm:$0xff]   ;;  %v5801_v11 = vcombine.low %v1042_v2, %v1046_v3  ;;  %v6818_v2 = vld [vmem:[#allocation17 + $0x304] ss:$16 sps:$4 sm:$0xff]   ;;  %v6723_v3 = vld [vmem:[#allocation17 + $0x108] ss:$16 sps:$4 sm:$0xff]  }
 0x4db   :  { %999 = vmatmul.mubr.bf16.vlgmr.msra.gmra.mrb[4].mxu0 %v829_v5  ;;  %v5793_v5 = vcombine.low %v1034_v57, %v1038_v58  ;;  %v6711_v57 = vld [vmem:[#allocation17 + $0xc8] ss:$16 sps:$4 sm:$0xff]   ;;  %v6719_v58 = vld [vmem:[#allocation17 + $0xec] ss:$16 sps:$4 sm:$0xff]  }
 0x4dc   :  { %1499 = vmatpush1.bf16.msra.mxu0 %v5781_v41  ;;  %1530 = vmatprep.mubr.bf16.mxu0 %v8043_v40  ;;  %v5813_v41 = vcombine.low %v1056_v18, %v1060_v19  ;;  %v5818_v18 = vcombine.high %v1058_v14, %v1062_v15  ;;  %v6786_v19 = vld [vmem:[#allocation17 + $0x260] ss:$16 sps:$4 sm:$0xff]   ;;  %v6842_v15 = vld [vmem:[#allocation17 + $0x384] ss:$16 sps:$4 sm:$0xff]  }
 0x4dd   :  { %1500 = vmatprep.subr.bf16.mxu0 %v5790_v8  ;;  %v1050_v8 = vld [vmem:[#allocation14 + $0xd8] sm:$0xff] }
 0x4de   :  { %v6834_v14 = vld [vmem:[#allocation17 + $0x360] ss:$16 sps:$4 sm:$0xff]  }
 0x4e0   :  { %1501 = vmatpush1.bf16.msra.mxu0 %v5789_v12  ;;  %v5810_v12 = vcombine.high %v1050_v8, %v1054_v9 }
 0x4e1   :  { %1502 = vmatprep.subr.bf16.mxu0 %v5798_v13  ;;  %v6780_v13 = vld [vmem:[#allocation17 + $0x240] ss:$16 sps:$4 sm:$0xff]  }
 0x4e4   :  { %1503 = vmatpush1.bf16.msra.mxu0 %v5797_v16  ;;  %v6788_v16 = vld [vmem:[#allocation17 + $0x264] ss:$16 sps:$4 sm:$0xff]  }
 0x4e5   :  { %1504 = vmatprep.subr.bf16.mxu0 %v5806_v17  ;;  %v5809_v17 = vcombine.low %v1050_v8, %v1054_v9  ;;  %v6830_v8 = vld [vmem:[#allocation17 + $0x344] ss:$16 sps:$4 sm:$0xff]   ;;  %v6737_v9 = vld [vmem:[#allocation17 + $0x14c] ss:$16 sps:$4 sm:$0xff]  }
 0x4e8   :  { %1505 = vmatpush1.bf16.msra.mxu0 %v5805_v20  ;;  %v1066_v20 = vld [vmem:[#allocation14 + $0x158] sm:$0xff] }
 0x4e9   :  { %1506 = vmatprep.subr.bf16.mxu0 %v5814_v21  ;;  %v1070_v21 = vld [vmem:[#allocation14 + $0x178] sm:$0xff] }
 0x4ec   :  { %1507 = vmatpush1.bf16.msra.mxu0 %v5813_v41  ;;  %v5826_v41 = vcombine.high %v1066_v20, %v1070_v21 }
 0x4ed   :  { %1508 = vmatprep.subr.bf16.mxu0 %v5822_v22  ;;  %v6792_v22 = vld [vmem:[#allocation17 + $0x280] ss:$16 sps:$4 sm:$0xff]  }
 0x4f0   :  { %1509 = vmatpush1.bf16.msra.mxu0 %v5821_v26  ;;  %v1489_v34 = vpop.f32.mrb[8].mxu1  ;;  %v6800_v26 = vld [vmem:[#allocation17 + $0x2a4] ss:$16 sps:$4 sm:$0xff]  }
 0x4f1   :  { %1510 = vmatprep.subr.bf16.mxu0 %v5830_v27  ;;  %v1490_v39 = vadd.f32 %v1489_v34, %v1092_v28  ;;  %v1491_v42 = vpop.f32.mrb[9].mxu1  ;;  %v5825_v27 = vcombine.low %v1066_v20, %v1070_v21  ;;  %v6747_v20 = vld [vmem:[#allocation17 + $0x188] ss:$16 sps:$4 sm:$0xff]   ;;  %v6755_v21 = vld [vmem:[#allocation17 + $0x1ac] ss:$16 sps:$4 sm:$0xff]  }
 0x4f2   :  { %v1492_v47 = vadd.f32 %v1491_v42, %v1096_v31  ;;  %v1493_v48 = vpop.f32.mrb[10].mxu1  ;;  %v6675_v42 = vld [vmem:[#allocation17 + $0x8] ss:$16 sps:$4 sm:$0xff]  }
 0x4f3   :  { %v1627_v49 = vmax.f32 %v1490_v39, 0.0  ;;  %v1494_v50 = vadd.f32 %v1493_v48, %v1092_v28  ;;  %v1495_v51 = vpop.f32.mrb[11].mxu1  ;;  %v5834_v28 = vcombine.high %v1074_v23, %v1078_v24  ;;  %v6677_v39 = vld [vmem:[#allocation17 + $0xc] ss:$16 sps:$4 sm:$0xff]   ;;  %v6687_v48 = vld [vmem:[#allocation17 + $0x48] ss:$16 sps:$4 sm:$0xff]  }
 0x4f4   :  { %1511 = vmatpush1.bf16.msra.mxu0 %v5829_v33  ;;  %v1628_v53 = vmax.f32 %v1492_v47, 0.0  ;;  %v1496_v54 = vadd.f32 %v1495_v51, %v1096_v31  ;;  %v1086_v31 = vld [vmem:[#allocation14 + $0x1f8] sm:$0xff]  ;;  %v5833_v33 = vcombine.low %v1074_v23, %v1078_v24  ;;  %v6689_v47 = vld [vmem:[#allocation17 + $0x4c] ss:$16 sps:$4 sm:$0xff]   ;;  %v6759_v24 = vld [vmem:[#allocation17 + $0x1c8] ss:$16 sps:$4 sm:$0xff]  }
 0x4f5   :  { %1512 = vmatprep.subr.bf16.mxu0 %v5838_v35  ;;  %v1635_v56 = vmax.f32 %v1494_v50, 0.0  ;;  %v5842_v34 = vcombine.high %v1082_v30, %v1086_v31  ;;  %v5841_v35 = vcombine.low %v1082_v30, %v1086_v31  ;;  %v6693_v50 = vld [vmem:[#allocation17 + $0x68] ss:$16 sps:$4 sm:$0xff]   ;;  %v6701_v51 = vld [vmem:[#allocation17 + $0x8c] ss:$16 sps:$4 sm:$0xff]  }
 0x4f6   :  { %v1636_v59 = vmax.f32 %v1496_v54, 0.0  ;;  %v6713_v54 = vld [vmem:[#allocation17 + $0xcc] ss:$16 sps:$4 sm:$0xff]   ;;  %v6852_v23 = vld [vmem:[#allocation17 + $0x3c0] ss:$16 sps:$4 sm:$0xff]  }
 0x4f7   :  { %v8446_v60 = vpack.c.bf16 %v1635_v56, %v1627_v49  ;;  %v6695_v49 = vld [vmem:[#allocation17 + $0x6c] ss:$16 sps:$4 sm:$0xff]   ;;  %v6804_v56 = vld [vmem:[#allocation17 + $0x2c0] ss:$16 sps:$4 sm:$0xff]   ;;  %v6866_v31 = vld [vmem:[#allocation17 + $0x404] ss:$16 sps:$4 sm:$0xff]  }
 0x4f8   :  { %1513 = vmatpush1.bf16.msra.mxu0 %v5837_v52  ;;  %v8448_v62 = vpack.c.bf16 %v1636_v59, %v1628_v53  ;;  %v6699_v52 = vld [vmem:[#allocation17 + $0x88] ss:$16 sps:$4 sm:$0xff]   ;;  %v6707_v53 = vld [vmem:[#allocation17 + $0xac] ss:$16 sps:$4 sm:$0xff]   ;;  %v6812_v59 = vld [vmem:[#allocation17 + $0x2e4] ss:$16 sps:$4 sm:$0xff]  }
 0x4f9   :  { %1584 = vmatprep.subr.bf16.mxu0 %v5786_v55  ;;  %v6806_v55 = vld [vmem:[#allocation17 + $0x2c4] ss:$16 sps:$4 sm:$0xff]   ;;  %v6773_v30 = vld [vmem:[#allocation17 + $0x20c] ss:$16 sps:$4 sm:$0xff]  }
 0x4fa   :  { %3241 = vmatprep.mubr.bf16.mxu1 %v8448_v62 }
 0x4fb   :  { %1531 = vmatmul.mubr.bf16.vlgmr.msra.gmra.mrb[8].mxu0 %v8413_v32  ;;  %3242 = vmatmul.mubr.bf16.vlgmr.msra.gmra.mrb[16].mxu1 %v8446_v60 }
 0x4fc   :  { %1585 = vmatpush1.bf16.msra.mxu0 %v5785_v61  ;;  %1616 = vmatprep.mubr.bf16.mxu0 %v8043_v40  ;;  %v6810_v61 = vld [vmem:[#allocation17 + $0x2e0] ss:$16 sps:$4 sm:$0xff]  }
 0x4fd   :  { %1586 = vmatprep.subr.bf16.mxu0 %v5794_v63  ;;  %3253 = vmatpush1.bf16.msra.mxu1 %v6768_v1  ;;  %v6725_v63 = vld [vmem:[#allocation17 + $0x10c] ss:$16 sps:$4 sm:$0xff]   ;;  %v6816_v1 = vld [vmem:[#allocation17 + $0x300] ss:$16 sps:$4 sm:$0xff]  }
 0x4fe   :  { %3254 = vmatprep.subr.bf16.mxu1 %v6776_v4  ;;  %v6824_v4 = vld [vmem:[#allocation17 + $0x324] ss:$16 sps:$4 sm:$0xff]  }
 0x500   :  { %1587 = vmatpush1.bf16.msra.mxu0 %v5793_v5  ;;  %v6731_v5 = vld [vmem:[#allocation17 + $0x12c] ss:$16 sps:$4 sm:$0xff]  }
 0x501   :  { %1588 = vmatprep.subr.bf16.mxu0 %v5802_v6  ;;  %3255 = vmatpush1.bf16.msra.mxu1 %v6774_v7  ;;  %v6822_v6 = vld [vmem:[#allocation17 + $0x320] ss:$16 sps:$4 sm:$0xff]   ;;  %v6729_v7 = vld [vmem:[#allocation17 + $0x128] ss:$16 sps:$4 sm:$0xff]  }
 0x502   :  { %3256 = vmatprep.subr.bf16.mxu1 %v6782_v10  ;;  %v6828_v10 = vld [vmem:[#allocation17 + $0x340] ss:$16 sps:$4 sm:$0xff]  }
 0x504   :  { %1589 = vmatpush1.bf16.msra.mxu0 %v5801_v11  ;;  %v6836_v11 = vld [vmem:[#allocation17 + $0x364] ss:$16 sps:$4 sm:$0xff]  }
 0x505   :  { %1590 = vmatprep.subr.bf16.mxu0 %v5810_v12  ;;  %3257 = vmatpush1.bf16.msra.mxu1 %v6780_v13  ;;  %v6735_v12 = vld [vmem:[#allocation17 + $0x148] ss:$16 sps:$4 sm:$0xff]   ;;  %v6743_v13 = vld [vmem:[#allocation17 + $0x16c] ss:$16 sps:$4 sm:$0xff]  }
 0x506   :  { %3258 = vmatprep.subr.bf16.mxu1 %v6788_v16  ;;  %v6741_v16 = vld [vmem:[#allocation17 + $0x168] ss:$16 sps:$4 sm:$0xff]  }
 0x508   :  { %1591 = vmatpush1.bf16.msra.mxu0 %v5809_v17  ;;  %v6749_v17 = vld [vmem:[#allocation17 + $0x18c] ss:$16 sps:$4 sm:$0xff]  }
 0x509   :  { %1592 = vmatprep.subr.bf16.mxu0 %v5818_v18  ;;  %3259 = vmatpush1.bf16.msra.mxu1 %v6786_v19  ;;  %v6840_v18 = vld [vmem:[#allocation17 + $0x380] ss:$16 sps:$4 sm:$0xff]   ;;  %v6848_v19 = vld [vmem:[#allocation17 + $0x3a4] ss:$16 sps:$4 sm:$0xff]  }
 0x50a   :  { %3260 = vmatprep.subr.bf16.mxu1 %v6794_v37  ;;  %v6846_v37 = vld [vmem:[#allocation17 + $0x3a0] ss:$16 sps:$4 sm:$0xff]  }
 0x50c   :  { %1593 = vmatpush1.bf16.msra.mxu0 %v5817_v38  ;;  %v6753_v38 = vld [vmem:[#allocation17 + $0x1a8] ss:$16 sps:$4 sm:$0xff]  }
 0x50d   :  { %1594 = vmatprep.subr.bf16.mxu0 %v5826_v41  ;;  %3261 = vmatpush1.bf16.msra.mxu1 %v6792_v22  ;;  %v6761_v41 = vld [vmem:[#allocation17 + $0x1cc] ss:$16 sps:$4 sm:$0xff]   ;;  %v6854_v22 = vld [vmem:[#allocation17 + $0x3c4] ss:$16 sps:$4 sm:$0xff]  }
 0x50e   :  { %3262 = vmatprep.subr.bf16.mxu1 %v6800_v26  ;;  %v6767_v26 = vld [vmem:[#allocation17 + $0x1ec] ss:$16 sps:$4 sm:$0xff]  }
 0x510   :  { %1595 = vmatpush1.bf16.msra.mxu0 %v5825_v27  ;;  %v6860_v27 = vld [vmem:[#allocation17 + $0x3e4] ss:$16 sps:$4 sm:$0xff]  }
 0x511   :  { %1596 = vmatprep.subr.bf16.mxu0 %v5834_v28  ;;  %3263 = vmatpush1.bf16.msra.mxu1 %v6798_v29  ;;  %v6858_v28 = vld [vmem:[#allocation17 + $0x3e0] ss:$16 sps:$4 sm:$0xff]   ;;  %v6765_v29 = vld [vmem:[#allocation17 + $0x1e8] ss:$16 sps:$4 sm:$0xff]  }
 0x512   :  { %3264 = vmatprep.subr.bf16.mxu1 %v6806_v55  ;;  %v6827_v55 = vld [vmem:[#allocation17 + $0x32c] ss:$16 sps:$4 sm:$0xff]  }
 0x514   :  { %1597 = vmatpush1.bf16.msra.mxu0 %v5833_v33  ;;  %v6771_v33 = vld [vmem:[#allocation17 + $0x208] ss:$16 sps:$4 sm:$0xff]  }
 0x515   :  { %1598 = vmatprep.subr.bf16.mxu0 %v5842_v34  ;;  %3265 = vmatpush1.bf16.msra.mxu1 %v6804_v56  ;;  %v6779_v34 = vld [vmem:[#allocation17 + $0x22c] ss:$16 sps:$4 sm:$0xff]   ;;  %v6825_v56 = vld [vmem:[#allocation17 + $0x328] ss:$16 sps:$4 sm:$0xff]  }
 0x516   :  { %3266 = vmatprep.subr.bf16.mxu1 %v6812_v59  ;;  %v6839_v59 = vld [vmem:[#allocation17 + $0x36c] ss:$16 sps:$4 sm:$0xff]  }
 0x518   :  { %1599 = vmatpush1.bf16.msra.mxu0 %v5841_v35  ;;  %v6777_v35 = vld [vmem:[#allocation17 + $0x228] ss:$16 sps:$4 sm:$0xff]  }
 0x519   :  { %3381 = vmatprep.subr.bf16.mxu0 %v6677_v39  ;;  %3267 = vmatpush1.bf16.msra.mxu1 %v6810_v61  ;;  %v6785_v39 = vld [vmem:[#allocation17 + $0x24c] ss:$16 sps:$4 sm:$0xff]   ;;  %v6837_v61 = vld [vmem:[#allocation17 + $0x368] ss:$16 sps:$4 sm:$0xff]  }
 0x51a   :  { %3268 = vmatprep.subr.bf16.mxu1 %v6818_v2  ;;  %v1107_v2 = vsub.s32 4, %v8426_v36 }
 0x51b   :  { %1617 = vmatmul.mubr.bf16.vlgmr.msra.gmra.mrb[12].mxu0 %v8413_v32  ;;  %v6705_v32 = vld [vmem:[#allocation17 + $0xa8] ss:$16 sps:$4 sm:$0xff]  }
 0x51c   :  { %3382 = vmatpush1.bf16.msra.mxu0 %v6675_v42  ;;  %3413 = vmatprep.mubr.bf16.mxu0 %v8448_v62  ;;  %v6717_v62 = vld [vmem:[#allocation17 + $0xe8] ss:$16 sps:$4 sm:$0xff]  }
 0x51d   :  { %3383 = vmatprep.subr.bf16.mxu0 %v6683_v44  ;;  %3269 = vmatpush1.bf16.msra.mxu1 %v6816_v1  ;;  %v6783_v42 = vld [vmem:[#allocation17 + $0x248] ss:$16 sps:$4 sm:$0xff]   ;;  %v6791_v44 = vld [vmem:[#allocation17 + $0x26c] ss:$16 sps:$4 sm:$0xff]  }
 0x51e   :  { %3270 = vmatprep.subr.bf16.mxu1 %v6824_v4  ;;  %v6851_v1 = vld [vmem:[#allocation17 + $0x3ac] ss:$16 sps:$4 sm:$0xff]   ;;  %v1111_v4 = vsub.s32 5, %v8426_v36 }
 0x520   :  { %3384 = vmatpush1.bf16.msra.mxu0 %v6681_v46  ;;  %v6789_v46 = vld [vmem:[#allocation17 + $0x268] ss:$16 sps:$4 sm:$0xff]  }
 0x521   :  { %3385 = vmatprep.subr.bf16.mxu0 %v6689_v47  ;;  %3271 = vmatpush1.bf16.msra.mxu1 %v6822_v6  ;;  %v6797_v47 = vld [vmem:[#allocation17 + $0x28c] ss:$16 sps:$4 sm:$0xff]   ;;  %v6849_v6 = vld [vmem:[#allocation17 + $0x3a8] ss:$16 sps:$4 sm:$0xff]  }
 0x522   :  { %3272 = vmatprep.subr.bf16.mxu1 %v6830_v8  ;;  %v1112_v8 = vrot.slane %v8440_v25, %v1111_v4  ;;  %v6873_v4 = vld [vmem:[#allocation17 + $0x428] ss:$16 sps:$4 sm:$0xff]  }
 0x524   :  { %3386 = vmatpush1.bf16.msra.mxu0 %v6687_v48  ;;  %v6795_v48 = vld [vmem:[#allocation17 + $0x288] ss:$16 sps:$4 sm:$0xff]  }
 0x525   :  { %3387 = vmatprep.subr.bf16.mxu0 %v6695_v49  ;;  %3273 = vmatpush1.bf16.msra.mxu1 %v6828_v10  ;;  %v6803_v49 = vld [vmem:[#allocation17 + $0x2ac] ss:$16 sps:$4 sm:$0xff]  }
 0x526   :  { %3274 = vmatprep.subr.bf16.mxu1 %v6836_v11  ;;  %v6857_v10 = vld [vmem:[#allocation17 + $0x3cc] ss:$16 sps:$4 sm:$0xff]  }
 0x528   :  { %3388 = vmatpush1.bf16.msra.mxu0 %v6693_v50  ;;  %v6801_v50 = vld [vmem:[#allocation17 + $0x2a8] ss:$16 sps:$4 sm:$0xff]  }
 0x529   :  { %3389 = vmatprep.subr.bf16.mxu0 %v6701_v51  ;;  %3275 = vmatpush1.bf16.msra.mxu1 %v6834_v14  ;;  %v6807_v51 = vld [vmem:[#allocation17 + $0x2c8] ss:$16 sps:$4 sm:$0xff]  }
 0x52a   :  { %3276 = vmatprep.subr.bf16.mxu1 %v6842_v15 }
 0x52c   :  { %3390 = vmatpush1.bf16.msra.mxu0 %v6699_v52  ;;  %v6815_v52 = vld [vmem:[#allocation17 + $0x2ec] ss:$16 sps:$4 sm:$0xff]  }
 0x52d   :  { %3391 = vmatprep.subr.bf16.mxu0 %v6707_v53  ;;  %3277 = vmatpush1.bf16.msra.mxu1 %v6840_v18  ;;  %v6813_v53 = vld [vmem:[#allocation17 + $0x2e8] ss:$16 sps:$4 sm:$0xff]  }
 0x52e   :  { %3278 = vmatprep.subr.bf16.mxu1 %v6848_v19 }
 0x530   :  { %3392 = vmatpush1.bf16.msra.mxu0 %v6705_v32  ;;  %v6821_v32 = vld [vmem:[#allocation17 + $0x30c] ss:$16 sps:$4 sm:$0xff]  }
 0x531   :  { %3393 = vmatprep.subr.bf16.mxu0 %v6713_v54  ;;  %3279 = vmatpush1.bf16.msra.mxu1 %v6846_v37  ;;  %v6819_v54 = vld [vmem:[#allocation17 + $0x308] ss:$16 sps:$4 sm:$0xff]  }
 0x532   :  { %3280 = vmatprep.subr.bf16.mxu1 %v6854_v22  ;;  %v6869_v22 = vld [vmem:[#allocation17 + $0x40c] ss:$16 sps:$4 sm:$0xff]  }
 0x534   :  { %3394 = vmatpush1.bf16.msra.mxu0 %v6711_v57  ;;  %v6833_v57 = vld [vmem:[#allocation17 + $0x34c] ss:$16 sps:$4 sm:$0xff]  }
 0x535   :  { %3395 = vmatprep.subr.bf16.mxu0 %v6719_v58  ;;  %3281 = vmatpush1.bf16.msra.mxu1 %v6852_v23  ;;  %v6831_v58 = vld [vmem:[#allocation17 + $0x348] ss:$16 sps:$4 sm:$0xff]  }
 0x536   :  { %3282 = vmatprep.subr.bf16.mxu1 %v6860_v27 }
 0x538   :  { %3396 = vmatpush1.bf16.msra.mxu0 %v6717_v62  ;;  %v6845_v62 = vld [vmem:[#allocation17 + $0x38c] ss:$16 sps:$4 sm:$0xff]  }
 0x539   :  { %3397 = vmatprep.subr.bf16.mxu0 %v6725_v63  ;;  %3283 = vmatpush1.bf16.msra.mxu1 %v6858_v28  ;;  %v6843_v63 = vld [vmem:[#allocation17 + $0x388] ss:$16 sps:$4 sm:$0xff]  }
 0x53a   :  { %3295 = vmatprep.subr.bf16.mxu1 %v6866_v31 }
 0x53c   :  { %3398 = vmatpush1.bf16.msra.mxu0 %v6723_v3  ;;  %v1575_v3 = vpop.f32.mrb[12].mxu1 }
 0x53d   :  { %3399 = vmatprep.subr.bf16.mxu0 %v6731_v5  ;;  %v1577_v5 = vpop.f32.mrb[13].mxu1 }
 0x540   :  { %3400 = vmatpush1.bf16.msra.mxu0 %v6729_v7  ;;  %v1108_v7 = vrot.slane %v8440_v25, %v1107_v2  ;;  %v6875_v2 = vld [vmem:[#allocation17 + $0x42c] ss:$16 sps:$4 sm:$0xff]  }
 0x541   :  { %3401 = vmatprep.subr.bf16.mxu0 %v6737_v9  ;;  %v1579_v9 = vpop.f32.mrb[14].mxu1 }
 0x542   :  { %v1576_v11 = vadd.f32 %v1575_v3, %v1108_v7  ;;  %v1581_v14 = vpop.f32.mrb[15].mxu1  ;;  %v6870_v3 = vld [vmem:[#allocation17 + $0x420] ss:$16 sps:$4 sm:$0xff]  }
 0x543   :  { %v1582_v15 = vadd.f32 %v1581_v14, %v1112_v8  ;;  %v6893_v14 = vld [vmem:[#allocation17 + $0x48c] ss:$16 sps:$4 sm:$0xff]  }
 0x544   :  { %3402 = vmatpush1.bf16.msra.mxu0 %v6735_v12  ;;  %v1578_v12 = vadd.f32 %v1577_v5, %v1112_v8  ;;  %v6878_v5 = vld [vmem:[#allocation17 + $0x444] ss:$16 sps:$4 sm:$0xff]   ;;  %v6879_v8 = vld [vmem:[#allocation17 + $0x448] ss:$16 sps:$4 sm:$0xff]  }
 0x545   :  { %3403 = vmatprep.subr.bf16.mxu0 %v6743_v13  ;;  %v1580_v13 = vadd.f32 %v1579_v9, %v1108_v7  ;;  %v6876_v7 = vld [vmem:[#allocation17 + $0x440] ss:$16 sps:$4 sm:$0xff]   ;;  %v6884_v9 = vld [vmem:[#allocation17 + $0x464] ss:$16 sps:$4 sm:$0xff]  }
 0x546   :  { %v1632_v18 = vmax.f32 %v1578_v12, 0.0  ;;  %v6885_v12 = vld [vmem:[#allocation17 + $0x468] ss:$16 sps:$4 sm:$0xff]  }
 0x547   :  { %v1639_v19 = vmax.f32 %v1580_v13, 0.0  ;;  %v6890_v13 = vld [vmem:[#allocation17 + $0x484] ss:$16 sps:$4 sm:$0xff]  }
 0x548   :  { %3404 = vmatpush1.bf16.msra.mxu0 %v6741_v16  ;;  %v6855_v16 = vld [vmem:[#allocation17 + $0x3c8] ss:$16 sps:$4 sm:$0xff]  }
 0x549   :  { %3405 = vmatprep.subr.bf16.mxu0 %v6749_v17  ;;  %v1631_v17 = vmax.f32 %v1576_v11, 0.0  ;;  %v6882_v11 = vld [vmem:[#allocation17 + $0x460] ss:$16 sps:$4 sm:$0xff]  }
 0x54b   :  { %v8461_v37 = vpack.c.bf16 %v1639_v19, %v1631_v17  ;;  %v6896_v17 = vld [vmem:[#allocation17 + $0x4a4] ss:$16 sps:$4 sm:$0xff]   ;;  %v1115_v19 = vsub.s32 6, %v8426_v36 }
 0x54c   :  { %3406 = vmatpush1.bf16.msra.mxu0 %v6747_v20  ;;  %v6863_v20 = vld [vmem:[#allocation17 + $0x3ec] ss:$16 sps:$4 sm:$0xff]  }
 0x54d   :  { %3407 = vmatprep.subr.bf16.mxu0 %v6755_v21  ;;  %v1640_v21 = vmax.f32 %v1582_v15, 0.0  ;;  %v6888_v15 = vld [vmem:[#allocation17 + $0x480] ss:$16 sps:$4 sm:$0xff]  }
 0x550   :  { %3408 = vmatpush1.bf16.msra.mxu0 %v6753_v38  ;;  %v1648_v38 = vpack.c.bf16 %v1640_v21, %v1632_v18  ;;  %v6899_v18 = vld [vmem:[#allocation17 + $0x4ac] ss:$16 sps:$4 sm:$0xff]   ;;  %v6894_v21 = vld [vmem:[#allocation17 + $0x4a0] ss:$16 sps:$4 sm:$0xff]  }
 0x551   :  { %3409 = vmatprep.subr.bf16.mxu0 %v6761_v41  ;;  %v6861_v41 = vld [vmem:[#allocation17 + $0x3e8] ss:$16 sps:$4 sm:$0xff]  }
 0x554   :  { %3410 = vmatpush1.bf16.msra.mxu0 %v6759_v24 }
 0x555   :  { %3411 = vmatprep.subr.bf16.mxu0 %v6767_v26  ;;  %v5761_v26 = vld [vmem:[#allocation13] ss:$0 sm:$0xff] }
 0x558   :  { %3412 = vmatpush1.bf16.msra.mxu0 %v6765_v29 }
 0x559   :  { %3424 = vmatprep.subr.bf16.mxu0 %v6773_v30 }
 0x55b   :  { %3414 = vmatmul.mubr.bf16.vlgmr.msra.gmra.mrb[16].mxu0 %v8446_v60  ;;  %v6809_v60 = vld [vmem:[#allocation17 + $0x2cc] ss:$16 sps:$4 sm:$0xff]  }
 0x55c   :  { %3425 = vmatpush1.bf16.msra.mxu0 %v6771_v33 }
 0x55d   :  { %3426 = vmatprep.subr.bf16.mxu0 %v6779_v34 }
 0x560   :  { %3427 = vmatpush1.bf16.msra.mxu0 %v6777_v35 }
 0x561   :  { %3428 = vmatprep.subr.bf16.mxu0 %v6785_v39 }
 0x564   :  { %3429 = vmatpush1.bf16.msra.mxu0 %v6783_v42 }
 0x565   :  { %3430 = vmatprep.subr.bf16.mxu0 %v6791_v44  ;;  %v1099_v44 = vsub.s32 2, %v8426_v36 }
 0x568   :  { %3431 = vmatpush1.bf16.msra.mxu0 %v6789_v46  ;;  %v1103_v46 = vsub.s32 3, %v8426_v36 }
 0x569   :  { %3432 = vmatprep.subr.bf16.mxu0 %v6797_v47  ;;  %v1100_v47 = vrot.slane %v8440_v25, %v1099_v44 }
 0x56c   :  { %3433 = vmatpush1.bf16.msra.mxu0 %v6795_v48  ;;  %v1104_v48 = vrot.slane %v8440_v25, %v1103_v46 }
 0x56d   :  { %3434 = vmatprep.subr.bf16.mxu0 %v6803_v49 }
 0x570   :  { %3435 = vmatpush1.bf16.msra.mxu0 %v6801_v50 }
 0x571   :  { %3436 = vmatprep.subr.bf16.mxu0 %v6809_v60 }
 0x574   :  { %3437 = vmatpush1.bf16.msra.mxu0 %v6807_v51 }
 0x575   :  { %3438 = vmatprep.subr.bf16.mxu0 %v6815_v52 }
 0x578   :  { %3439 = vmatpush1.bf16.msra.mxu0 %v6813_v53 }
 0x579   :  { %3440 = vmatprep.subr.bf16.mxu0 %v6821_v32 }
 0x57c   :  { %3441 = vmatpush1.bf16.msra.mxu0 %v6819_v54 }
 0x57d   :  { %3442 = vmatprep.subr.bf16.mxu0 %v6827_v55 }
 0x580   :  { %3443 = vmatpush1.bf16.msra.mxu0 %v6825_v56 }
 0x581   :  { %3444 = vmatprep.subr.bf16.mxu0 %v6833_v57 }
 0x584   :  { %3445 = vmatpush1.bf16.msra.mxu0 %v6831_v58 }
 0x585   :  { %3446 = vmatprep.subr.bf16.mxu0 %v6839_v59 }
 0x588   :  { %3447 = vmatpush1.bf16.msra.mxu0 %v6837_v61 }
 0x589   :  { %3448 = vmatprep.subr.bf16.mxu0 %v6845_v62  ;;  %v6864_v62 = vld [vmem:[#allocation17 + $0x400] ss:$16 sps:$4 sm:$0xff]  }
 0x58c   :  { %3449 = vmatpush1.bf16.msra.mxu0 %v6843_v63  ;;  %v6867_v63 = vld [vmem:[#allocation17 + $0x408] ss:$16 sps:$4 sm:$0xff]  }
 0x58d   :  { %3450 = vmatprep.subr.bf16.mxu0 %v6851_v1  ;;  %v6872_v1 = vld [vmem:[#allocation17 + $0x424] ss:$16 sps:$4 sm:$0xff]  }
 0x590   :  { %3451 = vmatpush1.bf16.msra.mxu0 %v6849_v6  ;;  %v6881_v6 = vld [vmem:[#allocation17 + $0x44c] ss:$16 sps:$4 sm:$0xff]  }
 0x591   :  { %3452 = vmatprep.subr.bf16.mxu0 %v6857_v10  ;;  %v6887_v10 = vld [vmem:[#allocation17 + $0x46c] ss:$16 sps:$4 sm:$0xff]  }
 0x594   :  { %3453 = vmatpush1.bf16.msra.mxu0 %v6855_v16  ;;  %v6891_v16 = vld [vmem:[#allocation17 + $0x488] ss:$16 sps:$4 sm:$0xff]  }
 0x595   :  { %3454 = vmatprep.subr.bf16.mxu0 %v6863_v20  ;;  %v1119_v20 = vsub.s32 7, %v8426_v36 }
 0x598   :  { %3455 = vmatpush1.bf16.msra.mxu0 %v6861_v41  ;;  %v6902_v41 = vld [vmem:[#allocation17 + $0x4c4] ss:$16 sps:$4 sm:$0xff]  }
 0x599   :  { %3467 = vmatprep.subr.bf16.mxu0 %v6869_v22  ;;  %v6905_v22 = vld [vmem:[#allocation17 + $0x4cc] ss:$16 sps:$4 sm:$0xff]  }
 0x5ae   :  { %v6356_v23 = vpop.f32.mrb[4].mxu0 }
 0x5af   :  { %v6357_v24 = vpop.f32.mrb[5].mxu0 }
 0x5b0   :  { %v6358_v27 = vadd.f32 %v6357_v24, %v6356_v23  ;;  %v6359_v28 = vpop.f32.mrb[6].mxu0  ;;  %v1116_v23 = vrot.slane %v8440_v25, %v1115_v19  ;;  %v1120_v24 = vrot.slane %v8440_v25, %v1119_v20  ;;  %v6909_v25 = vld [vmem:[#allocation17 + $0x4e8] ss:$16 sps:$4 sm:$0xff]   ;;  %v6948_v19 = vld [vmem:[#allocation17 + $0x5c0] ss:$16 sps:$4 sm:$0xff]  }
 0x5b1   :  { %v6360_v29 = vpop.f32.mrb[7].mxu0  ;;  %v6951_v20 = vld [vmem:[#allocation17 + $0x5c8] ss:$16 sps:$4 sm:$0xff]  }
 0x5b2   :  { %v6361_v30 = vadd.f32 %v6360_v29, %v6359_v28  ;;  %v1001_v31 = vadd.f32 %v6358_v27, %v5761_v26  ;;  %v6903_v27 = vld [vmem:[#allocation17 + $0x4c8] ss:$16 sps:$4 sm:$0xff]   ;;  %v6908_v29 = vld [vmem:[#allocation17 + $0x4e4] ss:$16 sps:$4 sm:$0xff]  }
 0x5b4   :  { %v1004_v33 = vadd.f32 %v6361_v30, %v5761_v26  ;;  %v8463_v34 = vmax.f32 %v1001_v31, 0.0  ;;  %v6900_v26 = vld [vmem:[#allocation17 + $0x4c0] ss:$16 sps:$4 sm:$0xff]   ;;  %v6911_v30 = vld [vmem:[#allocation17 + $0x4ec] ss:$16 sps:$4 sm:$0xff]  }
 0x5b6   :  { %v8465_v35 = vmax.f32 %v1004_v33, 0.0  ;;  %v1009_v39 = vmul.f32 %v8463_v34, %v8463_v34 }
 0x5b8   :  { %1011 = vadd.xlane.f32.xlu0 %v1009_v39  ;;  %v1010_v42 = vmul.f32 %v8465_v35, %v8465_v35 }
 0x5bc   :  { %1013 = vadd.xlane.f32.xlu0 %v1010_v42 }
 0x5ce   :  { %v1532_v49 = vpop.f32.mrb[8].mxu0 }
 0x5cf   :  { %v1533_v50 = vadd.f32 %v1532_v49, %v1100_v47  ;;  %v1534_v60 = vpop.f32.mrb[9].mxu0 }
 0x5d0   :  { %v1535_v51 = vadd.f32 %v1534_v60, %v1104_v48  ;;  %v1536_v52 = vpop.f32.mrb[10].mxu0 }
 0x5d1   :  { %v1537_v53 = vadd.f32 %v1536_v52, %v1100_v47  ;;  %v1538_v32 = vpop.f32.mrb[11].mxu0  ;;  %v1629_v55 = vmax.f32 %v1533_v50, 0.0  ;;  %v6906_v50 = vld [vmem:[#allocation17 + $0x4e0] ss:$16 sps:$4 sm:$0xff]   ;;  %v6914_v52 = vld [vmem:[#allocation17 + $0x504] ss:$16 sps:$4 sm:$0xff]  }
 0x5d2   :  { %v1539_v54 = vadd.f32 %v1538_v32, %v1104_v48  ;;  %v1630_v57 = vmax.f32 %v1535_v51, 0.0 }
 0x5d3   :  { %v1637_v56 = vmax.f32 %v1537_v53, 0.0  ;;  %v6917_v53 = vld [vmem:[#allocation17 + $0x50c] ss:$16 sps:$4 sm:$0xff]  }
 0x5d4   :  { %v1638_v58 = vmax.f32 %v1539_v54, 0.0 }
 0x5d5   :  { %v1645_v59 = vpack.c.bf16 %v1637_v56, %v1629_v55  ;;  %v6912_v56 = vld [vmem:[#allocation17 + $0x500] ss:$16 sps:$4 sm:$0xff]  }
 0x5d6   :  { %v1646_v61 = vpack.c.bf16 %v1638_v58, %v1630_v57  ;;  %v6915_v57 = vld [vmem:[#allocation17 + $0x508] ss:$16 sps:$4 sm:$0xff]  }
 0x5d8   :  { %3284 = vmatprep.mubr.bf16.mxu1 %v1646_v61  ;;  %3456 = vmatprep.mubr.bf16.mxu0 %v1646_v61  ;;  %v6923_v61 = vld [vmem:[#allocation17 + $0x52c] ss:$16 sps:$4 sm:$0xff]  }
 0x5d9   :  { %3285 = vmatmul.mubr.bf16.vlgmr.msra.gmra.mrb[16].mxu1 %v1645_v59  ;;  %3457 = vmatmul.mubr.bf16.vlgmr.msra.gmra.mrb[16].mxu0 %v1645_v59  ;;  %v6920_v59 = vld [vmem:[#allocation17 + $0x524] ss:$16 sps:$4 sm:$0xff]  }
 0x5da   :  { %3296 = vmatpush1.bf16.msra.mxu1 %v6864_v62  ;;  %3468 = vmatpush1.bf16.msra.mxu0 %v6867_v63  ;;  %v6918_v62 = vld [vmem:[#allocation17 + $0x520] ss:$16 sps:$4 sm:$0xff]   ;;  %v6921_v63 = vld [vmem:[#allocation17 + $0x528] ss:$16 sps:$4 sm:$0xff]  }
 0x5db   :  { %3297 = vmatprep.subr.bf16.mxu1 %v6872_v1  ;;  %3469 = vmatprep.subr.bf16.mxu0 %v6875_v2  ;;  %v6926_v1 = vld [vmem:[#allocation17 + $0x544] ss:$16 sps:$4 sm:$0xff]   ;;  %v6929_v2 = vld [vmem:[#allocation17 + $0x54c] ss:$16 sps:$4 sm:$0xff]  }
 0x5dc   :  { %3327 = vmatprep.mubr.bf16.mxu1 %v1648_v38  ;;  %3499 = vmatprep.mubr.bf16.mxu0 %v1648_v38  ;;  %v6897_v38 = vld [vmem:[#allocation17 + $0x4a8] ss:$16 sps:$4 sm:$0xff]  }
 0x5de   :  { %3298 = vmatpush1.bf16.msra.mxu1 %v6870_v3  ;;  %3470 = vmatpush1.bf16.msra.mxu0 %v6873_v4  ;;  %v6924_v3 = vld [vmem:[#allocation17 + $0x540] ss:$16 sps:$4 sm:$0xff]   ;;  %v6927_v4 = vld [vmem:[#allocation17 + $0x548] ss:$16 sps:$4 sm:$0xff]  }
 0x5df   :  { %3299 = vmatprep.subr.bf16.mxu1 %v6878_v5  ;;  %3471 = vmatprep.subr.bf16.mxu0 %v6881_v6  ;;  %v6932_v5 = vld [vmem:[#allocation17 + $0x564] ss:$16 sps:$4 sm:$0xff]   ;;  %v6935_v6 = vld [vmem:[#allocation17 + $0x56c] ss:$16 sps:$4 sm:$0xff]  }
 0x5e2   :  { %3300 = vmatpush1.bf16.msra.mxu1 %v6876_v7  ;;  %3472 = vmatpush1.bf16.msra.mxu0 %v6879_v8  ;;  %v6930_v7 = vld [vmem:[#allocation17 + $0x560] ss:$16 sps:$4 sm:$0xff]   ;;  %v6933_v8 = vld [vmem:[#allocation17 + $0x568] ss:$16 sps:$4 sm:$0xff]  }
 0x5e3   :  { %3301 = vmatprep.subr.bf16.mxu1 %v6884_v9  ;;  %3473 = vmatprep.subr.bf16.mxu0 %v6887_v10  ;;  %v6938_v9 = vld [vmem:[#allocation17 + $0x584] ss:$16 sps:$4 sm:$0xff]   ;;  %v6941_v10 = vld [vmem:[#allocation17 + $0x58c] ss:$16 sps:$4 sm:$0xff]  }
 0x5e6   :  { %3302 = vmatpush1.bf16.msra.mxu1 %v6882_v11  ;;  %3474 = vmatpush1.bf16.msra.mxu0 %v6885_v12  ;;  %v6936_v11 = vld [vmem:[#allocation17 + $0x580] ss:$16 sps:$4 sm:$0xff]   ;;  %v6939_v12 = vld [vmem:[#allocation17 + $0x588] ss:$16 sps:$4 sm:$0xff]  }
 0x5e7   :  { %3303 = vmatprep.subr.bf16.mxu1 %v6890_v13  ;;  %3475 = vmatprep.subr.bf16.mxu0 %v6893_v14  ;;  %v6944_v13 = vld [vmem:[#allocation17 + $0x5a4] ss:$16 sps:$4 sm:$0xff]   ;;  %v6947_v14 = vld [vmem:[#allocation17 + $0x5ac] ss:$16 sps:$4 sm:$0xff]  }
 0x5ea   :  { %3304 = vmatpush1.bf16.msra.mxu1 %v6888_v15  ;;  %3476 = vmatpush1.bf16.msra.mxu0 %v6891_v16  ;;  %v6942_v15 = vld [vmem:[#allocation17 + $0x5a0] ss:$16 sps:$4 sm:$0xff]   ;;  %v6945_v16 = vld [vmem:[#allocation17 + $0x5a8] ss:$16 sps:$4 sm:$0xff]  }
 0x5eb   :  { %3305 = vmatprep.subr.bf16.mxu1 %v6896_v17  ;;  %3477 = vmatprep.subr.bf16.mxu0 %v6899_v18  ;;  %v6950_v17 = vld [vmem:[#allocation17 + $0x5c4] ss:$16 sps:$4 sm:$0xff]   ;;  %v6953_v18 = vld [vmem:[#allocation17 + $0x5cc] ss:$16 sps:$4 sm:$0xff]  }
 0x5ee   :  { %3306 = vmatpush1.bf16.msra.mxu1 %v6894_v21  ;;  %3478 = vmatpush1.bf16.msra.mxu0 %v6897_v38  ;;  %v1618_v28 = vpop.f32.mrb[12].mxu0  ;;  %v6956_v21 = vld [vmem:[#allocation17 + $0x5e4] ss:$16 sps:$4 sm:$0xff]   ;;  %v6959_v38 = vld [vmem:[#allocation17 + $0x5ec] ss:$16 sps:$4 sm:$0xff]  }
 0x5ef   :  { %3307 = vmatprep.subr.bf16.mxu1 %v6902_v41  ;;  %3479 = vmatprep.subr.bf16.mxu0 %v6905_v22  ;;  %v1619_v31 = vadd.f32 %v1618_v28, %v1116_v23  ;;  %v1620_v33 = vpop.f32.mrb[13].mxu0  ;;  %v6954_v41 = vld [vmem:[#allocation17 + $0x5e0] ss:$16 sps:$4 sm:$0xff]   ;;  %v6957_v22 = vld [vmem:[#allocation17 + $0x5e8] ss:$16 sps:$4 sm:$0xff]  }
 0x5f0   :  { %v1621_v39 = vadd.f32 %v1620_v33, %v1120_v24  ;;  %v1622_v42 = vpop.f32.mrb[14].mxu0  ;;  %v6968_v28 = vld [vmem:[#allocation17 + $0x624] ss:$16 sps:$4 sm:$0xff]  }
 0x5f1   :  { %v1633_v47 = vmax.f32 %v1619_v31, 0.0  ;;  %v1623_v48 = vadd.f32 %v1622_v42, %v1116_v23  ;;  %v1624_v49 = vpop.f32.mrb[15].mxu0  ;;  %v6962_v23 = vld [vmem:[#allocation17 + $0x604] ss:$16 sps:$4 sm:$0xff]   ;;  %v6969_v31 = vld [vmem:[#allocation17 + $0x628] ss:$16 sps:$4 sm:$0xff]  }
 0x5f2   :  { %3308 = vmatpush1.bf16.msra.mxu1 %v6900_v26  ;;  %3480 = vmatpush1.bf16.msra.mxu0 %v6903_v27  ;;  %v1634_v60 = vmax.f32 %v1621_v39, 0.0  ;;  %v1625_v51 = vadd.f32 %v1624_v49, %v1120_v24  ;;  %v6965_v24 = vld [vmem:[#allocation17 + $0x60c] ss:$16 sps:$4 sm:$0xff]   ;;  %v6960_v26 = vld [vmem:[#allocation17 + $0x600] ss:$16 sps:$4 sm:$0xff]  }
 0x5f3   :  { %3309 = vmatprep.subr.bf16.mxu1 %v6908_v29  ;;  %3481 = vmatprep.subr.bf16.mxu0 %v6911_v30  ;;  %v1641_v32 = vmax.f32 %v1623_v48, 0.0  ;;  %v6963_v27 = vld [vmem:[#allocation17 + $0x608] ss:$16 sps:$4 sm:$0xff]   ;;  %v6971_v29 = vld [vmem:[#allocation17 + $0x62c] ss:$16 sps:$4 sm:$0xff]  }
 0x5f4   :  { %v1642_v54 = vmax.f32 %v1625_v51, 0.0  ;;  %v6966_v30 = vld [vmem:[#allocation17 + $0x620] ss:$16 sps:$4 sm:$0xff]   ;;  %v6974_v33 = vld [vmem:[#allocation17 + $0x644] ss:$16 sps:$4 sm:$0xff]  }
 0x5f5   :  { %v8483_v55 = vpack.c.bf16 %v1641_v32, %v1633_v47  ;;  %v6977_v39 = vld [vmem:[#allocation17 + $0x64c] ss:$16 sps:$4 sm:$0xff]   ;;  %v6972_v42 = vld [vmem:[#allocation17 + $0x640] ss:$16 sps:$4 sm:$0xff]   ;;  %v6975_v47 = vld [vmem:[#allocation17 + $0x648] ss:$16 sps:$4 sm:$0xff]  }
 0x5f6   :  { %3310 = vmatpush1.bf16.msra.mxu1 %v6906_v50  ;;  %3482 = vmatpush1.bf16.msra.mxu0 %v6909_v25  ;;  %v8485_v58 = vpack.c.bf16 %v1642_v54, %v1634_v60  ;;  %v6980_v48 = vld [vmem:[#allocation17 + $0x664] ss:$16 sps:$4 sm:$0xff]   ;;  %v6978_v49 = vld [vmem:[#allocation17 + $0x660] ss:$16 sps:$4 sm:$0xff]   ;;  %v6981_v50 = vld [vmem:[#allocation17 + $0x668] ss:$16 sps:$4 sm:$0xff]  }
 0x5f7   :  { %3311 = vmatprep.subr.bf16.mxu1 %v6914_v52  ;;  %3483 = vmatprep.subr.bf16.mxu0 %v6917_v53  ;;  %v6986_v25 = vld [vmem:[#allocation17 + $0x684] ss:$16 sps:$4 sm:$0xff]   ;;  %v6989_v60 = vld [vmem:[#allocation17 + $0x68c] ss:$16 sps:$4 sm:$0xff]   ;;  %v6984_v51 = vld [vmem:[#allocation17 + $0x680] ss:$16 sps:$4 sm:$0xff]  }
 0x5f8   :  { %v6987_v52 = vld [vmem:[#allocation17 + $0x688] ss:$16 sps:$4 sm:$0xff]   ;;  %v6992_v53 = vld [vmem:[#allocation17 + $0x6a4] ss:$16 sps:$4 sm:$0xff]   ;;  %v6995_v32 = vld [vmem:[#allocation17 + $0x6ac] ss:$16 sps:$4 sm:$0xff]  }
 0x5f9   :  { %v6990_v54 = vld [vmem:[#allocation17 + $0x6a0] ss:$16 sps:$4 sm:$0xff]  }
 0x5fa   :  { %3312 = vmatpush1.bf16.msra.mxu1 %v6912_v56  ;;  %3484 = vmatpush1.bf16.msra.mxu0 %v6915_v57  ;;  %v6993_v56 = vld [vmem:[#allocation17 + $0x6a8] ss:$16 sps:$4 sm:$0xff]   ;;  %v6998_v57 = vld [vmem:[#allocation17 + $0x6c4] ss:$16 sps:$4 sm:$0xff]  }
 0x5fb   :  { %3313 = vmatprep.subr.bf16.mxu1 %v6920_v59  ;;  %3485 = vmatprep.subr.bf16.mxu0 %v6923_v61  ;;  %v6996_v59 = vld [vmem:[#allocation17 + $0x6c0] ss:$16 sps:$4 sm:$0xff]   ;;  %v6999_v61 = vld [vmem:[#allocation17 + $0x6c8] ss:$16 sps:$4 sm:$0xff]  }
 0x5fe   :  { %3314 = vmatpush1.bf16.msra.mxu1 %v6918_v62  ;;  %3486 = vmatpush1.bf16.msra.mxu0 %v6921_v63  ;;  %v7004_v62 = vld [vmem:[#allocation17 + $0x6e4] ss:$16 sps:$4 sm:$0xff]   ;;  %v7007_v63 = vld [vmem:[#allocation17 + $0x6ec] ss:$16 sps:$4 sm:$0xff]  }
 0x5ff   :  { %3315 = vmatprep.subr.bf16.mxu1 %v6926_v1  ;;  %3487 = vmatprep.subr.bf16.mxu0 %v6929_v2  ;;  %v7002_v1 = vld [vmem:[#allocation17 + $0x6e0] ss:$16 sps:$4 sm:$0xff]   ;;  %v7005_v2 = vld [vmem:[#allocation17 + $0x6e8] ss:$16 sps:$4 sm:$0xff]  }
 0x602   :  { %3316 = vmatpush1.bf16.msra.mxu1 %v6924_v3  ;;  %3488 = vmatpush1.bf16.msra.mxu0 %v6927_v4  ;;  %v7010_v3 = vld [vmem:[#allocation17 + $0x704] ss:$16 sps:$4 sm:$0xff]   ;;  %v7013_v4 = vld [vmem:[#allocation17 + $0x70c] ss:$16 sps:$4 sm:$0xff]  }
 0x603   :  { %3317 = vmatprep.subr.bf16.mxu1 %v6932_v5  ;;  %3489 = vmatprep.subr.bf16.mxu0 %v6935_v6  ;;  %v7008_v5 = vld [vmem:[#allocation17 + $0x700] ss:$16 sps:$4 sm:$0xff]   ;;  %v7011_v6 = vld [vmem:[#allocation17 + $0x708] ss:$16 sps:$4 sm:$0xff]  }
 0x606   :  { %3318 = vmatpush1.bf16.msra.mxu1 %v6930_v7  ;;  %3490 = vmatpush1.bf16.msra.mxu0 %v6933_v8  ;;  %v7016_v7 = vld [vmem:[#allocation17 + $0x724] ss:$16 sps:$4 sm:$0xff]   ;;  %v7019_v8 = vld [vmem:[#allocation17 + $0x72c] ss:$16 sps:$4 sm:$0xff]  }
 0x607   :  { %3319 = vmatprep.subr.bf16.mxu1 %v6938_v9  ;;  %3491 = vmatprep.subr.bf16.mxu0 %v6941_v10  ;;  %v7014_v9 = vld [vmem:[#allocation17 + $0x720] ss:$16 sps:$4 sm:$0xff]   ;;  %v7017_v10 = vld [vmem:[#allocation17 + $0x728] ss:$16 sps:$4 sm:$0xff]  }
 0x60a   :  { %3320 = vmatpush1.bf16.msra.mxu1 %v6936_v11  ;;  %3492 = vmatpush1.bf16.msra.mxu0 %v6939_v12  ;;  %v7022_v11 = vld [vmem:[#allocation17 + $0x744] ss:$16 sps:$4 sm:$0xff]   ;;  %v7025_v12 = vld [vmem:[#allocation17 + $0x74c] ss:$16 sps:$4 sm:$0xff]  }
 0x60b   :  { %3321 = vmatprep.subr.bf16.mxu1 %v6944_v13  ;;  %3493 = vmatprep.subr.bf16.mxu0 %v6947_v14  ;;  %v7020_v13 = vld [vmem:[#allocation17 + $0x740] ss:$16 sps:$4 sm:$0xff]   ;;  %v7023_v14 = vld [vmem:[#allocation17 + $0x748] ss:$16 sps:$4 sm:$0xff]  }
 0x60e   :  { %3322 = vmatpush1.bf16.msra.mxu1 %v6942_v15  ;;  %3494 = vmatpush1.bf16.msra.mxu0 %v6945_v16  ;;  %v7028_v15 = vld [vmem:[#allocation17 + $0x764] ss:$16 sps:$4 sm:$0xff]   ;;  %v7031_v16 = vld [vmem:[#allocation17 + $0x76c] ss:$16 sps:$4 sm:$0xff]  }
 0x60f   :  { %3323 = vmatprep.subr.bf16.mxu1 %v6950_v17  ;;  %3495 = vmatprep.subr.bf16.mxu0 %v6953_v18  ;;  %v7026_v17 = vld [vmem:[#allocation17 + $0x760] ss:$16 sps:$4 sm:$0xff]   ;;  %v7029_v18 = vld [vmem:[#allocation17 + $0x768] ss:$16 sps:$4 sm:$0xff]  }
 0x612   :  { %3324 = vmatpush1.bf16.msra.mxu1 %v6948_v19  ;;  %3496 = vmatpush1.bf16.msra.mxu0 %v6951_v20  ;;  %v7034_v19 = vld [vmem:[#allocation17 + $0x784] ss:$16 sps:$4 sm:$0xff]   ;;  %v7037_v20 = vld [vmem:[#allocation17 + $0x78c] ss:$16 sps:$4 sm:$0xff]  }
 0x613   :  { %3325 = vmatprep.subr.bf16.mxu1 %v6956_v21  ;;  %3497 = vmatprep.subr.bf16.mxu0 %v6959_v38  ;;  %v7032_v21 = vld [vmem:[#allocation17 + $0x780] ss:$16 sps:$4 sm:$0xff]   ;;  %v7035_v38 = vld [vmem:[#allocation17 + $0x788] ss:$16 sps:$4 sm:$0xff]  }
 0x616   :  { %3326 = vmatpush1.bf16.msra.mxu1 %v6954_v41  ;;  %3498 = vmatpush1.bf16.msra.mxu0 %v6957_v22  ;;  %v7040_v41 = vld [vmem:[#allocation17 + $0x7a4] ss:$16 sps:$4 sm:$0xff]   ;;  %v7043_v22 = vld [vmem:[#allocation17 + $0x7ac] ss:$16 sps:$4 sm:$0xff]  }
 0x617   :  { %3338 = vmatprep.subr.bf16.mxu1 %v6962_v23  ;;  %3510 = vmatprep.subr.bf16.mxu0 %v6965_v24  ;;  %v7038_v23 = vld [vmem:[#allocation17 + $0x7a0] ss:$16 sps:$4 sm:$0xff]   ;;  %v7041_v24 = vld [vmem:[#allocation17 + $0x7a8] ss:$16 sps:$4 sm:$0xff]  }
 0x619   :  { %3328 = vmatmul.mubr.bf16.vlgmr.msra.gmra.mrb[16].mxu1 %v8461_v37  ;;  %3500 = vmatmul.mubr.bf16.vlgmr.msra.gmra.mrb[16].mxu0 %v8461_v37  ;;  %v6983_v37 = vld [vmem:[#allocation17 + $0x66c] ss:$16 sps:$4 sm:$0xff]  }
 0x61a   :  { %3339 = vmatpush1.bf16.msra.mxu1 %v6960_v26  ;;  %3511 = vmatpush1.bf16.msra.mxu0 %v6963_v27  ;;  %v7046_v26 = vld [vmem:[#allocation17 + $0x7c4] ss:$16 sps:$4 sm:$0xff]   ;;  %v7049_v27 = vld [vmem:[#allocation17 + $0x7cc] ss:$16 sps:$4 sm:$0xff]  }
 0x61b   :  { %3340 = vmatprep.subr.bf16.mxu1 %v6968_v28  ;;  %3512 = vmatprep.subr.bf16.mxu0 %v6971_v29  ;;  %v7044_v28 = vld [vmem:[#allocation17 + $0x7c0] ss:$16 sps:$4 sm:$0xff]   ;;  %v7047_v29 = vld [vmem:[#allocation17 + $0x7c8] ss:$16 sps:$4 sm:$0xff]  }
 0x61c   :  { %3370 = vmatprep.mubr.bf16.mxu1 %v8485_v58  ;;  %3542 = vmatprep.mubr.bf16.mxu0 %v8485_v58  ;;  %v7001_v58 = vld [vmem:[#allocation17 + $0x6cc] ss:$16 sps:$4 sm:$0xff]  }
 0x61e   :  { %3341 = vmatpush1.bf16.msra.mxu1 %v6966_v30  ;;  %3513 = vmatpush1.bf16.msra.mxu0 %v6969_v31  ;;  %v7052_v30 = vld [vmem:[#allocation17 + $0x7e4] ss:$16 sps:$4 sm:$0xff]   ;;  %v7055_v31 = vld [vmem:[#allocation17 + $0x7ec] ss:$16 sps:$4 sm:$0xff]  }
 0x61f   :  { %3342 = vmatprep.subr.bf16.mxu1 %v6974_v33  ;;  %3514 = vmatprep.subr.bf16.mxu0 %v6977_v39  ;;  %v7050_v33 = vld [vmem:[#allocation17 + $0x7e0] ss:$16 sps:$4 sm:$0xff]   ;;  %v7053_v39 = vld [vmem:[#allocation17 + $0x7e8] ss:$16 sps:$4 sm:$0xff]  }
 0x622   :  { %3343 = vmatpush1.bf16.msra.mxu1 %v6972_v42  ;;  %3515 = vmatpush1.bf16.msra.mxu0 %v6975_v47  ;;  %v7058_v42 = vld [vmem:[#allocation19 + $0x4] ss:$8 sps:$4 sm:$0xff]   ;;  %v7056_v47 = vld [vmem:[#allocation19] ss:$8 sps:$4 sm:$0xff]  }
 0x623   :  { %3344 = vmatprep.subr.bf16.mxu1 %v6980_v48  ;;  %3516 = vmatprep.subr.bf16.mxu0 %v6983_v37  ;;  %v7061_v48 = vld [vmem:[#allocation19 + $0x14] ss:$8 sps:$4 sm:$0xff]   ;;  %v7059_v37 = vld [vmem:[#allocation19 + $0x10] ss:$8 sps:$4 sm:$0xff]  }
 0x626   :  { %3345 = vmatpush1.bf16.msra.mxu1 %v6978_v49  ;;  %3517 = vmatpush1.bf16.msra.mxu0 %v6981_v50  ;;  %v7064_v49 = vld [vmem:[#allocation19 + $0x24] ss:$8 sps:$4 sm:$0xff]   ;;  %v7062_v50 = vld [vmem:[#allocation19 + $0x20] ss:$8 sps:$4 sm:$0xff]  }
 0x627   :  { %3346 = vmatprep.subr.bf16.mxu1 %v6986_v25  ;;  %3518 = vmatprep.subr.bf16.mxu0 %v6989_v60  ;;  %v7067_v25 = vld [vmem:[#allocation19 + $0x34] ss:$8 sps:$4 sm:$0xff]   ;;  %v7065_v60 = vld [vmem:[#allocation19 + $0x30] ss:$8 sps:$4 sm:$0xff]  }
 0x62a   :  { %3347 = vmatpush1.bf16.msra.mxu1 %v6984_v51  ;;  %3519 = vmatpush1.bf16.msra.mxu0 %v6987_v52  ;;  %v7070_v51 = vld [vmem:[#allocation19 + $0x44] ss:$8 sps:$4 sm:$0xff]   ;;  %v7068_v52 = vld [vmem:[#allocation19 + $0x40] ss:$8 sps:$4 sm:$0xff]  }
 0x62b   :  { %3348 = vmatprep.subr.bf16.mxu1 %v6992_v53  ;;  %3520 = vmatprep.subr.bf16.mxu0 %v6995_v32  ;;  %v7073_v53 = vld [vmem:[#allocation19 + $0x54] ss:$8 sps:$4 sm:$0xff]   ;;  %v7071_v32 = vld [vmem:[#allocation19 + $0x50] ss:$8 sps:$4 sm:$0xff]  }
 0x62e   :  { %3349 = vmatpush1.bf16.msra.mxu1 %v6990_v54  ;;  %3521 = vmatpush1.bf16.msra.mxu0 %v6993_v56  ;;  %v7074_v54 = vld [vmem:[#allocation19 + $0x60] ss:$8 sps:$4 sm:$0xff]   ;;  %v7079_v56 = vld [vmem:[#allocation19 + $0x74] ss:$8 sps:$4 sm:$0xff]  }
 0x62f   :  { %3350 = vmatprep.subr.bf16.mxu1 %v6998_v57  ;;  %3522 = vmatprep.subr.bf16.mxu0 %v7001_v58  ;;  %v7077_v57 = vld [vmem:[#allocation19 + $0x70] ss:$8 sps:$4 sm:$0xff]   ;;  %v7082_v58 = vld [vmem:[#allocation19 + $0x84] ss:$8 sps:$4 sm:$0xff]  }
 0x632   :  { %3351 = vmatpush1.bf16.msra.mxu1 %v6996_v59  ;;  %3523 = vmatpush1.bf16.msra.mxu0 %v6999_v61  ;;  %v7080_v59 = vld [vmem:[#allocation19 + $0x80] ss:$8 sps:$4 sm:$0xff]   ;;  %v7085_v61 = vld [vmem:[#allocation19 + $0x94] ss:$8 sps:$4 sm:$0xff]  }
 0x633   :  { %3352 = vmatprep.subr.bf16.mxu1 %v7004_v62  ;;  %3524 = vmatprep.subr.bf16.mxu0 %v7007_v63  ;;  %v7083_v62 = vld [vmem:[#allocation19 + $0x90] ss:$8 sps:$4 sm:$0xff]   ;;  %v7088_v63 = vld [vmem:[#allocation19 + $0xa4] ss:$8 sps:$4 sm:$0xff]  }
 0x636   :  { %3353 = vmatpush1.bf16.msra.mxu1 %v7002_v1  ;;  %3525 = vmatpush1.bf16.msra.mxu0 %v7005_v2  ;;  %v7086_v1 = vld [vmem:[#allocation19 + $0xa0] ss:$8 sps:$4 sm:$0xff]   ;;  %v7091_v2 = vld [vmem:[#allocation19 + $0xb4] ss:$8 sps:$4 sm:$0xff]  }
 0x637   :  { %3354 = vmatprep.subr.bf16.mxu1 %v7010_v3  ;;  %3526 = vmatprep.subr.bf16.mxu0 %v7013_v4  ;;  %v7089_v3 = vld [vmem:[#allocation19 + $0xb0] ss:$8 sps:$4 sm:$0xff]   ;;  %v7094_v4 = vld [vmem:[#allocation19 + $0xc4] ss:$8 sps:$4 sm:$0xff]  }
 0x63a   :  { %3355 = vmatpush1.bf16.msra.mxu1 %v7008_v5  ;;  %3527 = vmatpush1.bf16.msra.mxu0 %v7011_v6  ;;  %v7092_v5 = vld [vmem:[#allocation19 + $0xc0] ss:$8 sps:$4 sm:$0xff]   ;;  %v7097_v6 = vld [vmem:[#allocation19 + $0xd4] ss:$8 sps:$4 sm:$0xff]  }
 0x63b   :  { %3356 = vmatprep.subr.bf16.mxu1 %v7016_v7  ;;  %3528 = vmatprep.subr.bf16.mxu0 %v7019_v8  ;;  %v7095_v7 = vld [vmem:[#allocation19 + $0xd0] ss:$8 sps:$4 sm:$0xff]   ;;  %v7100_v8 = vld [vmem:[#allocation19 + $0xe4] ss:$8 sps:$4 sm:$0xff]  }
 0x63e   :  { %3357 = vmatpush1.bf16.msra.mxu1 %v7014_v9  ;;  %3529 = vmatpush1.bf16.msra.mxu0 %v7017_v10  ;;  %v7098_v9 = vld [vmem:[#allocation19 + $0xe0] ss:$8 sps:$4 sm:$0xff]   ;;  %v7103_v10 = vld [vmem:[#allocation19 + $0xf4] ss:$8 sps:$4 sm:$0xff]  }
 0x63f   :  { %3358 = vmatprep.subr.bf16.mxu1 %v7022_v11  ;;  %3530 = vmatprep.subr.bf16.mxu0 %v7025_v12  ;;  %v7101_v11 = vld [vmem:[#allocation19 + $0xf0] ss:$8 sps:$4 sm:$0xff]   ;;  %v7106_v12 = vld [vmem:[#allocation19 + $0x104] ss:$8 sps:$4 sm:$0xff]  }
 0x642   :  { %3359 = vmatpush1.bf16.msra.mxu1 %v7020_v13  ;;  %3531 = vmatpush1.bf16.msra.mxu0 %v7023_v14  ;;  %v7152_v13 = vld [vmem:[#allocation22 + $0x40] sm:$0xff]  }
 0x643   :  { %3360 = vmatprep.subr.bf16.mxu1 %v7028_v15  ;;  %3532 = vmatprep.subr.bf16.mxu0 %v7031_v16  ;;  %v7153_v14 = vld [vmem:[#allocation22] sm:$0xff]   ;;  %v7154_v15 = vld [vmem:[#allocation22 + $0x48] sm:$0xff]  }
 0x644   :  { %v7155_v16 = vld [vmem:[#allocation22 + $0x8] sm:$0xff]  }
 0x646   :  { %3361 = vmatpush1.bf16.msra.mxu1 %v7026_v17  ;;  %3533 = vmatpush1.bf16.msra.mxu0 %v7029_v18  ;;  %v7156_v17 = vld [vmem:[#allocation22 + $0x50] sm:$0xff]  }
 0x647   :  { %3362 = vmatprep.subr.bf16.mxu1 %v7034_v19  ;;  %3534 = vmatprep.subr.bf16.mxu0 %v7037_v20  ;;  %v7157_v18 = vld [vmem:[#allocation22 + $0x10] sm:$0xff]   ;;  %v7158_v19 = vld [vmem:[#allocation22 + $0x58] sm:$0xff]  }
 0x648   :  { %v7159_v20 = vld [vmem:[#allocation22 + $0x18] sm:$0xff]  }
 0x64a   :  { %3363 = vmatpush1.bf16.msra.mxu1 %v7032_v21  ;;  %3535 = vmatpush1.bf16.msra.mxu0 %v7035_v38  ;;  %v7160_v21 = vld [vmem:[#allocation22 + $0x60] sm:$0xff]  }
 0x64b   :  { %3364 = vmatprep.subr.bf16.mxu1 %v7040_v41  ;;  %3536 = vmatprep.subr.bf16.mxu0 %v7043_v22  ;;  %v7161_v38 = vld [vmem:[#allocation22 + $0x20] sm:$0xff]   ;;  %v7162_v41 = vld [vmem:[#allocation22 + $0x68] sm:$0xff]  }
 0x64c   :  { %v7163_v22 = vld [vmem:[#allocation22 + $0x28] sm:$0xff]  }
 0x64e   :  { %3365 = vmatpush1.bf16.msra.mxu1 %v7038_v23  ;;  %3537 = vmatpush1.bf16.msra.mxu0 %v7041_v24  ;;  %v1907_v23 = vld [vmem:[%s8651_s27] sm:$0xf] }
 0x64f   :  { %3366 = vmatprep.subr.bf16.mxu1 %v7046_v26  ;;  %3538 = vmatprep.subr.bf16.mxu0 %v7049_v27  ;;  %v1912_v24 = vrot.slane %v1907_v23, %v8429_v43  ;;  %v1920_v26 = vrot.slane %v1907_v23, %v1099_v44  ;;  %v1916_v27 = vrot.slane %v1907_v23, %v8432_v45 }
 0x652   :  { %3367 = vmatpush1.bf16.msra.mxu1 %v7044_v28  ;;  %3539 = vmatpush1.bf16.msra.mxu0 %v7047_v29  ;;  %v1924_v28 = vrot.slane %v1907_v23, %v1103_v46  ;;  %v7145_v23 = vld [vmem:[#allocation19 + $0x1d4] ss:$8 sps:$4 sm:$0xff]  }
 0x653   :  { %3368 = vmatprep.subr.bf16.mxu1 %v7052_v30  ;;  %3540 = vmatprep.subr.bf16.mxu0 %v7055_v31 }
 0x656   :  { %3369 = vmatpush1.bf16.msra.mxu1 %v7050_v33  ;;  %3541 = vmatpush1.bf16.msra.mxu0 %v7053_v39 }
 0x657   :  { %3961 = vmatprep.subr.bf16.mxu1 %v7058_v42  ;;  %6362 = vmatprep.subr.bf16.mxu0 %v7152_v13  ;;  %v7127_v13 = vld [vmem:[#allocation19 + $0x174] ss:$8 sps:$4 sm:$0xff]  }
 0x659   :  { %3371 = vmatmul.mubr.bf16.vlgmr.msra.gmra.mrb[16].mxu1 %v8483_v55  ;;  %3543 = vmatmul.mubr.bf16.vlgmr.msra.gmra.mrb[16].mxu0 %v8483_v55  ;;  %v7076_v55 = vld [vmem:[#allocation19 + $0x64] ss:$8 sps:$4 sm:$0xff]  }
 0x65a   :  { %3962 = vmatpush1.bf16.msra.mxu1 %v7056_v47  ;;  %6363 = vmatpush3.bf16.msra.mxu0 %v7153_v14  ;;  %v7125_v14 = vld [vmem:[#allocation19 + $0x170] ss:$8 sps:$4 sm:$0xff]  }
 0x65b   :  { %3963 = vmatprep.subr.bf16.mxu1 %v7061_v48  ;;  %6364 = vmatprep.subr.bf16.mxu0 %v7154_v15  ;;  %v7130_v15 = vld [vmem:[#allocation19 + $0x184] ss:$8 sps:$4 sm:$0xff]  }
 0x65e   :  { %3964 = vmatpush1.bf16.msra.mxu1 %v7059_v37  ;;  %6365 = vmatpush3.bf16.msra.mxu0 %v7155_v16  ;;  %v7128_v16 = vld [vmem:[#allocation19 + $0x180] ss:$8 sps:$4 sm:$0xff]  }
 0x65f   :  { %3965 = vmatprep.subr.bf16.mxu1 %v7064_v49  ;;  %6366 = vmatprep.subr.bf16.mxu0 %v7156_v17  ;;  %v7133_v17 = vld [vmem:[#allocation19 + $0x194] ss:$8 sps:$4 sm:$0xff]  }
 0x662   :  { %3966 = vmatpush1.bf16.msra.mxu1 %v7062_v50  ;;  %6367 = vmatpush3.bf16.msra.mxu0 %v7157_v18  ;;  %v7131_v18 = vld [vmem:[#allocation19 + $0x190] ss:$8 sps:$4 sm:$0xff]  }
 0x663   :  { %3967 = vmatprep.subr.bf16.mxu1 %v7067_v25  ;;  %6368 = vmatprep.subr.bf16.mxu0 %v7158_v19  ;;  %v7136_v19 = vld [vmem:[#allocation19 + $0x1a4] ss:$8 sps:$4 sm:$0xff]  }
 0x666   :  { %3968 = vmatpush1.bf16.msra.mxu1 %v7065_v60  ;;  %6369 = vmatpush3.bf16.msra.mxu0 %v7159_v20  ;;  %v7134_v20 = vld [vmem:[#allocation19 + $0x1a0] ss:$8 sps:$4 sm:$0xff]  }
 0x667   :  { %3969 = vmatprep.subr.bf16.mxu1 %v7070_v51  ;;  %6370 = vmatprep.subr.bf16.mxu0 %v7160_v21  ;;  %v7139_v21 = vld [vmem:[#allocation19 + $0x1b4] ss:$8 sps:$4 sm:$0xff]  }
 0x66a   :  { %3970 = vmatpush1.bf16.msra.mxu1 %v7068_v52  ;;  %6371 = vmatpush3.bf16.msra.mxu0 %v7161_v38  ;;  %v7137_v38 = vld [vmem:[#allocation19 + $0x1b0] ss:$8 sps:$4 sm:$0xff]  }
 0x66b   :  { %3971 = vmatprep.subr.bf16.mxu1 %v7073_v53  ;;  %6372 = vmatprep.subr.bf16.mxu0 %v7162_v41  ;;  %v7142_v41 = vld [vmem:[#allocation19 + $0x1c4] ss:$8 sps:$4 sm:$0xff]  }
 0x66e   :  { %3972 = vmatpush1.bf16.msra.mxu1 %v7071_v32  ;;  %6373 = vmatpush3.bf16.msra.mxu0 %v7163_v22  ;;  %v7140_v22 = vld [vmem:[#allocation19 + $0x1c0] ss:$8 sps:$4 sm:$0xff]  }
 0x66f   :  { %3973 = vmatprep.subr.bf16.mxu1 %v7076_v55 }
 0x672   :  { %3974 = vmatpush1.bf16.msra.mxu1 %v7074_v54 }
 0x673   :  { %3975 = vmatprep.subr.bf16.mxu1 %v7079_v56 }
 0x676   :  { %3976 = vmatpush1.bf16.msra.mxu1 %v7077_v57 }
 0x677   :  { %3977 = vmatprep.subr.bf16.mxu1 %v7082_v58 }
 0x67a   :  { %3978 = vmatpush1.bf16.msra.mxu1 %v7080_v59 }
 0x67b   :  { %3979 = vmatprep.subr.bf16.mxu1 %v7085_v61 }
 0x67e   :  { %3980 = vmatpush1.bf16.msra.mxu1 %v7083_v62 }
 0x67f   :  { %3981 = vmatprep.subr.bf16.mxu1 %v7088_v63  ;;  %v7104_v63 = vld [vmem:[#allocation19 + $0x100] ss:$8 sps:$4 sm:$0xff]  }
 0x682   :  { %3982 = vmatpush1.bf16.msra.mxu1 %v7086_v1  ;;  %v7109_v1 = vld [vmem:[#allocation19 + $0x114] ss:$8 sps:$4 sm:$0xff]  }
 0x683   :  { %3983 = vmatprep.subr.bf16.mxu1 %v7091_v2  ;;  %v7107_v2 = vld [vmem:[#allocation19 + $0x110] ss:$8 sps:$4 sm:$0xff]  }
 0x686   :  { %3984 = vmatpush1.bf16.msra.mxu1 %v7089_v3  ;;  %v7112_v3 = vld [vmem:[#allocation19 + $0x124] ss:$8 sps:$4 sm:$0xff]  }
 0x687   :  { %3985 = vmatprep.subr.bf16.mxu1 %v7094_v4  ;;  %v7110_v4 = vld [vmem:[#allocation19 + $0x120] ss:$8 sps:$4 sm:$0xff]  }
 0x68a   :  { %3986 = vmatpush1.bf16.msra.mxu1 %v7092_v5  ;;  %v7115_v5 = vld [vmem:[#allocation19 + $0x134] ss:$8 sps:$4 sm:$0xff]  }
 0x68b   :  { %3987 = vmatprep.subr.bf16.mxu1 %v7097_v6  ;;  %v7113_v6 = vld [vmem:[#allocation19 + $0x130] ss:$8 sps:$4 sm:$0xff]  }
 0x68e   :  { %3988 = vmatpush1.bf16.msra.mxu1 %v7095_v7  ;;  %v7118_v7 = vld [vmem:[#allocation19 + $0x144] ss:$8 sps:$4 sm:$0xff]  }
 0x68f   :  { %3989 = vmatprep.subr.bf16.mxu1 %v7100_v8  ;;  %v7116_v8 = vld [vmem:[#allocation19 + $0x140] ss:$8 sps:$4 sm:$0xff]  }
 0x692   :  { %3990 = vmatpush1.bf16.msra.mxu1 %v7098_v9  ;;  %v7121_v9 = vld [vmem:[#allocation19 + $0x154] ss:$8 sps:$4 sm:$0xff]  }
 0x693   :  { %3991 = vmatprep.subr.bf16.mxu1 %v7103_v10  ;;  %v7119_v10 = vld [vmem:[#allocation19 + $0x150] ss:$8 sps:$4 sm:$0xff]  }
 0x696   :  { %3992 = vmatpush1.bf16.msra.mxu1 %v7101_v11  ;;  %v7124_v11 = vld [vmem:[#allocation19 + $0x164] ss:$8 sps:$4 sm:$0xff]  }
 0x697   :  { %4004 = vmatprep.subr.bf16.mxu1 %v7106_v12  ;;  %v7122_v12 = vld [vmem:[#allocation19 + $0x160] ss:$8 sps:$4 sm:$0xff]  }
 0x72c   :  { %v3372_v29 = vpop.f32.mrb[16].mxu1  ;;  %v3544_v30 = vpop.f32.mrb[16].mxu0 }
 0x72d   :  { %v6506_v31 = vadd.f32 %v3372_v29, %v1912_v24  ;;  %v6510_v33 = vadd.f32 %v3544_v30, %v1920_v26  ;;  %v3374_v39 = vpop.f32.mrb[17].mxu1  ;;  %v3546_v42 = vpop.f32.mrb[17].mxu0  ;;  %v7149_v29 = vld [vmem:[#allocation19 + $0x1f0] ss:$8 sps:$4 sm:$0xff]  }
 0x72e   :  { %v6507_v47 = vadd.f32 %v3374_v39, %v1916_v27  ;;  %v6511_v48 = vadd.f32 %v3546_v42, %v1924_v28  ;;  %v3376_v37 = vpop.f32.mrb[18].mxu1  ;;  %v3548_v49 = vpop.f32.mrb[18].mxu0  ;;  %v7164_v30 = vld [vmem:[#allocation22 + $0x70] sm:$0xff]   ;;  %v7167_v39 = vld [vmem:[#allocation22 + $0x38] sm:$0xff]  }
 0x72f   :  { %v6508_v50 = vadd.f32 %v3376_v37, %v1912_v24  ;;  %v6512_v25 = vadd.f32 %v3548_v49, %v1920_v26  ;;  %v3378_v60 = vpop.f32.mrb[19].mxu1  ;;  %v3550_v51 = vpop.f32.mrb[19].mxu0  ;;  %v3553_v53 = vmax.f32 %v6506_v31, 0.0  ;;  %v3555_v32 = vmax.f32 %v6510_v33, 0.0  ;;  %v7143_v24 = vld [vmem:[#allocation19 + $0x1d0] ss:$8 sps:$4 sm:$0xff]   ;;  %6374 = vmatprep.subr.bf16.mxu0 %v7164_v30 }
 0x730   :  { %v6509_v44 = vadd.f32 %v3378_v60, %v1916_v27  ;;  %v6513_v52 = vadd.f32 %v3550_v51, %v1924_v28  ;;  %v3554_v55 = vmax.f32 %v6507_v47, 0.0  ;;  %v3556_v54 = vmax.f32 %v6511_v48, 0.0  ;;  %v7148_v26 = vld [vmem:[#allocation19 + $0x1e4] ss:$8 sps:$4 sm:$0xff]   ;;  %v7146_v27 = vld [vmem:[#allocation19 + $0x1e0] ss:$8 sps:$4 sm:$0xff]  }
 0x731   :  { %v3557_v36 = vmax.f32 %v6508_v50, 0.0  ;;  %v3559_v46 = vmax.f32 %v6512_v25, 0.0  ;;  %v7151_v28 = vld [vmem:[#allocation19 + $0x1f4] ss:$8 sps:$4 sm:$0xff]   ;;  %v3629_v42 = vld [vmem:[#allocation20] sm:$0x3] }
 0x732   :  { %v3558_v56 = vmax.f32 %v6509_v44, 0.0  ;;  %v3560_v57 = vmax.f32 %v6513_v52, 0.0  ;;  %v7165_v31 = vld [vmem:[#allocation22 + $0x30] sm:$0xff]   ;;  %v7166_v33 = vld [vmem:[#allocation22 + $0x78] sm:$0xff]   ;;  %v3634_v47 = vrot.slane %v3629_v42, %v8429_v43  ;;  %v3638_v48 = vrot.slane %v3629_v42, %v8432_v45 }
 0x733   :  { %v3561_v58 = vpack.c.bf16 %v3557_v36, %v3553_v53  ;;  %v8500_v59 = vpack.c.bf16 %v3559_v46, %v3555_v32  ;;  %6375 = vmatpush3.bf16.msra.mxu0 %v7165_v31  ;;  %v7186_v30 = vld [vmem:[#allocation29 + $0x14] ss:$8 sps:$4 sm:$0xff]   ;;  %v7184_v31 = vld [vmem:[#allocation29 + $0x10] ss:$8 sps:$4 sm:$0xff]  }
 0x734   :  { %v3562_v61 = vpack.c.bf16 %v3558_v56, %v3554_v55  ;;  %v3564_v62 = vpack.c.bf16 %v3560_v57, %v3556_v54  ;;  %6376 = vmatprep.subr.bf16.mxu0 %v7166_v33  ;;  %v7168_v56 = vld [vmem:[%s8652_s11] sm:$0xff]   ;;  %v7169_v57 = vld [vmem:[%s8652_s11 + $0x8] sm:$0xff]  }
 0x735   :  { %v7189_v33 = vld [vmem:[#allocation29 + $0x24] ss:$8 sps:$4 sm:$0xff]   ;;  %v7192_v42 = vld [vmem:[#allocation29 + $0x34] ss:$8 sps:$4 sm:$0xff]  }
 0x736   :  { %3993 = vmatprep.mubr.bf16.mxu1 %v3562_v61  ;;  %v7172_v61 = vld [vmem:[%s8652_s11 + $0x20] sm:$0xff]  }
 0x737   :  { %3994 = vmatmul.mubr.bf16.vlgmr.msra.gmra.mrb[20].mxu1 %v3561_v58  ;;  %6377 = vmatpush3.bf16.msra.mxu0 %v7167_v39  ;;  %v7170_v58 = vld [vmem:[%s8652_s11 + $0x10] sm:$0xff]  }
 0x738   :  { %4005 = vmatpush1.bf16.msra.mxu1 %v7104_v63  ;;  %4036 = vmatprep.mubr.bf16.mxu1 %v3564_v62  ;;  %v7173_v62 = vld [vmem:[%s8652_s11 + $0x28] sm:$0xff]   ;;  %v7174_v63 = vld [vmem:[%s8652_s11 + $0x30] sm:$0xff]  }
 0x739   :  { %4006 = vmatprep.subr.bf16.mxu1 %v7109_v1  ;;  %6474 = vmatprep.subr.bf16.mxu0 %v8041_v0  ;;  %v7175_v1 = vld [vmem:[%s8652_s11 + $0x38] sm:$0xff]   ;;  %v7187_v39 = vld [vmem:[#allocation29 + $0x20] ss:$8 sps:$4 sm:$0xff]  }
 0x73c   :  { %4007 = vmatpush1.bf16.msra.mxu1 %v7107_v2  ;;  %v7176_v2 = vld [vmem:[#allocation5] sm:$0xff]  }
 0x73d   :  { %4008 = vmatprep.subr.bf16.mxu1 %v7112_v3  ;;  %v7177_v3 = vld [vmem:[#allocation26] sm:$0xff]  }
 0x740   :  { %4009 = vmatpush1.bf16.msra.mxu1 %v7110_v4  ;;  %v7178_v4 = vld [vmem:[#allocation26 + $0x8] sm:$0xff]  }
 0x741   :  { %4010 = vmatprep.subr.bf16.mxu1 %v7115_v5  ;;  %v7179_v5 = vld [vmem:[#allocation26 + $0x10] sm:$0xff]  }
 0x744   :  { %4011 = vmatpush1.bf16.msra.mxu1 %v7113_v6  ;;  %v7180_v6 = vld [vmem:[#allocation26 + $0x18] sm:$0xff]  }
 0x745   :  { %4012 = vmatprep.subr.bf16.mxu1 %v7118_v7 }
 0x748   :  { %4013 = vmatpush1.bf16.msra.mxu1 %v7116_v8 }
 0x749   :  { %4014 = vmatprep.subr.bf16.mxu1 %v7121_v9  ;;  %v6163_v9 = vld [vmem:[#allocation23] ss:$0 sm:$0xff] }
 0x74c   :  { %4015 = vmatpush1.bf16.msra.mxu1 %v7119_v10 }
 0x74d   :  { %4016 = vmatprep.subr.bf16.mxu1 %v7124_v11 }
 0x750   :  { %4017 = vmatpush1.bf16.msra.mxu1 %v7122_v12 }
 0x751   :  { %4018 = vmatprep.subr.bf16.mxu1 %v7127_v13 }
 0x754   :  { %4019 = vmatpush1.bf16.msra.mxu1 %v7125_v14 }
 0x755   :  { %4020 = vmatprep.subr.bf16.mxu1 %v7130_v15 }
 0x758   :  { %4021 = vmatpush1.bf16.msra.mxu1 %v7128_v16 }
 0x759   :  { %4022 = vmatprep.subr.bf16.mxu1 %v7133_v17 }
 0x75c   :  { %4023 = vmatpush1.bf16.msra.mxu1 %v7131_v18 }
 0x75d   :  { %4024 = vmatprep.subr.bf16.mxu1 %v7136_v19  ;;  %v6180_v19 = vld [vmem:[#allocation25] ss:$0 sm:$0xff] }
 0x760   :  { %4025 = vmatpush1.bf16.msra.mxu1 %v7134_v20 }
 0x761   :  { %4026 = vmatprep.subr.bf16.mxu1 %v7139_v21 }
 0x764   :  { %4027 = vmatpush1.bf16.msra.mxu1 %v7137_v38 }
 0x765   :  { %4028 = vmatprep.subr.bf16.mxu1 %v7142_v41 }
 0x768   :  { %4029 = vmatpush1.bf16.msra.mxu1 %v7140_v22 }
 0x769   :  { %4030 = vmatprep.subr.bf16.mxu1 %v7145_v23 }
 0x76c   :  { %4031 = vmatpush1.bf16.msra.mxu1 %v7143_v24 }
 0x76d   :  { %4032 = vmatprep.subr.bf16.mxu1 %v7148_v26 }
 0x770   :  { %4033 = vmatpush1.bf16.msra.mxu1 %v7146_v27 }
 0x771   :  { %4034 = vmatprep.subr.bf16.mxu1 %v7151_v28  ;;  %v7181_v28 = vld [vmem:[#allocation29] ss:$8 sps:$4 sm:$0xff]  }
 0x774   :  { %4035 = vmatpush1.bf16.msra.mxu1 %v7149_v29  ;;  %v7183_v29 = vld [vmem:[#allocation29 + $0x4] ss:$8 sps:$4 sm:$0xff]  }
 0x775   :  { %6494 = vmatprep.subr.bf16.mxu1 %v8041_v0 }
 0x777   :  { %4037 = vmatmul.mubr.bf16.vlgmr.msra.gmra.mrb[20].mxu1 %v8500_v59  ;;  %v7171_v59 = vld [vmem:[%s8652_s11 + $0x18] sm:$0xff]  }
 0x778   :  { %6502 = vmatprep.mubr.msk.bf16.mxu1 %vm8042_vm0, %v8041_v0  ;;  %6495 = vmatpush3.bf16.msra.mxu1 %v7177_v3  ;;  %v7212_v3 = vld [vmem:[#allocation32 + $0x18] sm:$0xff]  }
 0x779   :  { %6496 = vmatprep.subr.bf16.mxu1 %v8041_v0 }
 0x77c   :  { %6497 = vmatpush3.bf16.msra.mxu1 %v7178_v4  ;;  %v7213_v4 = vld [vmem:[#allocation32 + $0x60] sm:$0xff]  }
 0x77d   :  { %6498 = vmatprep.subr.bf16.mxu1 %v8041_v0 }
 0x780   :  { %6499 = vmatpush3.bf16.msra.mxu1 %v7179_v5  ;;  %v7214_v5 = vld [vmem:[#allocation32 + $0x20] sm:$0xff]  }
 0x781   :  { %6500 = vmatprep.subr.bf16.mxu1 %v8041_v0 }
 0x784   :  { %6501 = vmatpush3.bf16.msra.mxu1 %v7180_v6  ;;  %v7215_v6 = vld [vmem:[#allocation32 + $0x68] sm:$0xff]  }
 0x84a   :  { %v4038_v37 = vpop.f32.mrb[20].mxu1 }
 0x84b   :  { %v6514_v49 = vadd.f32 %v4038_v37, %v3634_v47  ;;  %v4040_v50 = vpop.f32.mrb[21].mxu1  ;;  %v7193_v37 = vld [vmem:[#allocation29 + $0x40] ss:$8 sps:$4 sm:$0xff]  }
 0x84c   :  { %v6515_v25 = vadd.f32 %v4040_v50, %v3638_v48  ;;  %v4042_v60 = vpop.f32.mrb[22].mxu1  ;;  %v7201_v50 = vld [vmem:[#allocation29 + $0x64] ss:$8 sps:$4 sm:$0xff]  }
 0x84d   :  { %v6516_v51 = vadd.f32 %v4042_v60, %v3634_v47  ;;  %v4044_v44 = vpop.f32.mrb[23].mxu1  ;;  %v4047_v53 = vmax.f32 %v6514_v49, 0.0  ;;  %v7190_v47 = vld [vmem:[#allocation29 + $0x30] ss:$8 sps:$4 sm:$0xff]   ;;  %v7204_v60 = vld [vmem:[#allocation29 + $0x74] ss:$8 sps:$4 sm:$0xff]  }
 0x84e   :  { %v6517_v52 = vadd.f32 %v4044_v44, %v3638_v48  ;;  %v4048_v36 = vmax.f32 %v6515_v25, 0.0  ;;  %v7195_v48 = vld [vmem:[#allocation29 + $0x44] ss:$8 sps:$4 sm:$0xff]   ;;  %v7196_v49 = vld [vmem:[#allocation29 + $0x50] ss:$8 sps:$4 sm:$0xff]  }
 0x84f   :  { %v4049_v32 = vmax.f32 %v6516_v51, 0.0  ;;  %v7199_v25 = vld [vmem:[#allocation29 + $0x60] ss:$8 sps:$4 sm:$0xff]   ;;  %v7202_v51 = vld [vmem:[#allocation29 + $0x70] ss:$8 sps:$4 sm:$0xff]  }
 0x850   :  { %v4050_v46 = vmax.f32 %v6517_v52, 0.0  ;;  %v7205_v44 = vld [vmem:[#allocation32 + $0x40] sm:$0xff]   ;;  %v6190_v52 = vld [vmem:[#allocation28] ss:$0 sm:$0xff] }
 0x851   :  { %v4051_v55 = vpack.c.bf16 %v4049_v32, %v4047_v53 }
 0x852   :  { %v4052_v54 = vpack.c.bf16 %v4050_v46, %v4048_v36 }
 0x854   :  { %4220 = vmatprep.mubr.bf16.mxu0 %v4052_v54 }
 0x855   :  { %4221 = vmatmul.mubr.bf16.vlgmr.msra.gmra.mrb[20].mxu0 %v4051_v55 }
 0x856   :  { %6475 = vmatpush3.bf16.msra.mxu0 %v7168_v56  ;;  %6490 = vmatprep.mubr.msk.bf16.mxu0 %vm8042_vm0, %v8041_v0 }
 0x857   :  { %6476 = vmatprep.subr.bf16.mxu0 %v8041_v0 }
 0x85a   :  { %6477 = vmatpush3.bf16.msra.mxu0 %v7169_v57 }
 0x85b   :  { %6478 = vmatprep.subr.bf16.mxu0 %v8041_v0 }
 0x85e   :  { %6479 = vmatpush3.bf16.msra.mxu0 %v7170_v58  ;;  %v7206_v58 = vld [vmem:[#allocation32] sm:$0xff]  }
 0x85f   :  { %6480 = vmatprep.subr.bf16.mxu0 %v8041_v0 }
 0x862   :  { %6481 = vmatpush3.bf16.msra.mxu0 %v7171_v59 }
 0x863   :  { %6482 = vmatprep.subr.bf16.mxu0 %v8041_v0 }
 0x866   :  { %6483 = vmatpush3.bf16.msra.mxu0 %v7172_v61  ;;  %v7207_v61 = vld [vmem:[#allocation32 + $0x48] sm:$0xff]  }
 0x867   :  { %6484 = vmatprep.subr.bf16.mxu0 %v8041_v0 }
 0x86a   :  { %6485 = vmatpush3.bf16.msra.mxu0 %v7173_v62  ;;  %v7208_v62 = vld [vmem:[#allocation32 + $0x8] sm:$0xff]  }
 0x86b   :  { %6486 = vmatprep.subr.bf16.mxu0 %v8041_v0 }
 0x86e   :  { %6487 = vmatpush3.bf16.msra.mxu0 %v7174_v63  ;;  %v7209_v63 = vld [vmem:[#allocation32 + $0x50] sm:$0xff]  }
 0x86f   :  { %6488 = vmatprep.subr.bf16.mxu0 %v8041_v0 }
 0x872   :  { %6489 = vmatpush3.bf16.msra.mxu0 %v7175_v1  ;;  %v7210_v1 = vld [vmem:[#allocation32 + $0x10] sm:$0xff]  }
 0x873   :  { %4560 = vmatprep.subr.bf16.mxu0 %v7183_v29  ;;  %v7221_v29 = vld [vmem:[#allocation35] ss:$8 sps:$4 sm:$0xff]  }
 0x875   :  { %6491 = vmatmul.mubr.bf16.vlgmr.msra.gmra.mrb[24].mxu0 %v7176_v2  ;;  %v7211_v2 = vld [vmem:[#allocation32 + $0x58] sm:$0xff]  }
 0x876   :  { %4592 = vmatprep.mubr.bf16.mxu0 %v8043_v40  ;;  %4561 = vmatpush1.bf16.msra.mxu0 %v7181_v28 }
 0x877   :  { %4562 = vmatprep.subr.bf16.mxu0 %v7186_v30  ;;  %v7223_v30 = vld [vmem:[#allocation35 + $0x4] ss:$8 sps:$4 sm:$0xff]  }
 0x878   :  { %4918 = vmatprep.subr.bf16.mxu1 %v7223_v30 }
 0x87a   :  { %4563 = vmatpush1.bf16.msra.mxu0 %v7184_v31  ;;  %v7226_v31 = vld [vmem:[#allocation35 + $0x14] ss:$8 sps:$4 sm:$0xff]  }
 0x87b   :  { %4564 = vmatprep.subr.bf16.mxu0 %v7189_v33  ;;  %v7224_v33 = vld [vmem:[#allocation35 + $0x10] ss:$8 sps:$4 sm:$0xff]  }
 0x87e   :  { %4565 = vmatpush1.bf16.msra.mxu0 %v7187_v39  ;;  %v7229_v39 = vld [vmem:[#allocation35 + $0x24] ss:$8 sps:$4 sm:$0xff]  }
 0x87f   :  { %4566 = vmatprep.subr.bf16.mxu0 %v7192_v42  ;;  %v7227_v42 = vld [vmem:[#allocation35 + $0x20] ss:$8 sps:$4 sm:$0xff]  }
 0x882   :  { %4567 = vmatpush1.bf16.msra.mxu0 %v7190_v47 }
 0x883   :  { %4568 = vmatprep.subr.bf16.mxu0 %v7195_v48  ;;  %v6212_v48 = vld [vmem:[#allocation34] ss:$0 sm:$0xff] }
 0x886   :  { %4569 = vmatpush1.bf16.msra.mxu0 %v7193_v37 }
 0x928   :  { %v6378_v7 = vpop.f32.mrb[20].mxu0 }
 0x929   :  { %v6379_v8 = vpop.f32.mrb[21].mxu0 }
 0x92a   :  { %v6380_v10 = vadd.f32 %v6379_v8, %v6378_v7  ;;  %v6381_v11 = vpop.f32.mrb[22].mxu0  ;;  %v7216_v7 = vld [vmem:[#allocation32 + $0x28] sm:$0xff]   ;;  %v7217_v8 = vld [vmem:[#allocation32 + $0x70] sm:$0xff]  }
 0x92b   :  { %v6382_v12 = vpop.f32.mrb[23].mxu0 }
 0x92c   :  { %v6383_v13 = vadd.f32 %v6382_v12, %v6381_v11  ;;  %v4223_v14 = vadd.f32 %v6380_v10, %v6163_v9  ;;  %v7219_v10 = vld [vmem:[#allocation32 + $0x78] sm:$0xff]  }
 0x92d   :  { %v7220_v11 = vld [vmem:[#allocation32 + $0x38] sm:$0xff]  }
 0x92e   :  { %v4226_v15 = vadd.f32 %v6383_v13, %v6163_v9  ;;  %v8530_v16 = vmax.f32 %v4223_v14, 0.0  ;;  %v7218_v9 = vld [vmem:[#allocation32 + $0x30] sm:$0xff]   ;;  %v4468_v12 = vld [vmem:[#allocation31] sm:$0x3] }
 0x92f   :  { %v4473_v13 = vrot.slane %v4468_v12, %v8429_v43  ;;  %v4477_v14 = vrot.slane %v4468_v12, %v8432_v45  ;;  %v7265_v12 = vld [vmem:[%s8653_s16 + $0x64] ss:$8 sps:$4 sm:$0xff]  }
 0x930   :  { %v8532_v17 = vmax.f32 %v4226_v15, 0.0  ;;  %v4231_v18 = vmul.f32 %v8530_v16, %v8530_v16 }
 0x932   :  { %4233 = vadd.xlane.f32.xlu1 %v4231_v18  ;;  %v4232_v0 = vmul.f32 %v8532_v17, %v8532_v17 }
 0x936   :  { %4235 = vadd.xlane.f32.xlu1 %v4232_v0 }
 0x948   :  { %v4356_v20 = vpop.f32.mrb[24].mxu0 }
 0x949   :  { %v4357_v21 = vadd.f32 %v6180_v19, %v4356_v20  ;;  %v6492_v38 = vpop.f32.mrb[25].mxu0 }
 0x94a   :  { %v4359_v41 = vpop.f32.mrb[26].mxu0 }
 0x94b   :  { %v4360_v22 = vadd.f32 %v6180_v19, %v4359_v41  ;;  %v6493_v23 = vpop.f32.mrb[27].mxu0  ;;  %v4363_v24 = vmax.f32 %v4357_v21, 0.0 }
 0x94d   :  { %v4364_v26 = vmax.f32 %v4360_v22, 0.0 }
 0x94f   :  { %v4365_v27 = vpack.c.bf16 %v4364_v26, %v4363_v24 }
 0x951   :  { %6503 = vmatmul.mubr.msk.bf16.vlgmr.msra.gmra.mrb[24].mxu1 %vm626_vm1, %v4365_v27 }
 0x952   :  { %4950 = vmatprep.mubr.bf16.mxu1 %v8043_v40  ;;  %v7198_v40 = vld [vmem:[#allocation29 + $0x54] ss:$8 sps:$4 sm:$0xff]   ;;  %4919 = vmatpush1.bf16.msra.mxu1 %v7221_v29  ;;  %v1012_v29 = vpop.xlane.xlu0 %1011 }
 0x953   :  { %4570 = vmatprep.subr.bf16.mxu0 %v7198_v40  ;;  %4920 = vmatprep.subr.bf16.mxu1 %v7226_v31 }
 0x954   :  { %4571 = vmatpush1.bf16.msra.mxu0 %v7196_v49 }
 0x955   :  { %4572 = vmatprep.subr.bf16.mxu0 %v7201_v50 }
 0x956   :  { %4921 = vmatpush1.bf16.msra.mxu1 %v7224_v33  ;;  %v1014_v31 = vpop.xlane.xlu0 %1013 }
 0x957   :  { %4922 = vmatprep.subr.bf16.mxu1 %v7229_v39 }
 0x958   :  { %4573 = vmatpush1.bf16.msra.mxu0 %v7199_v25 }
 0x959   :  { %4574 = vmatprep.subr.bf16.mxu0 %v7204_v60 }
 0x95a   :  { %4923 = vmatpush1.bf16.msra.mxu1 %v7227_v42  ;;  %v1015_v42 = vmax.f32 %v1012_v29, 1e-30  ;;  %v7331_v29 = vld [vmem:[#allocation38 + $0xc4] ss:$8 sps:$4 sm:$0xff]  }
 0x95c   :  { %4575 = vmatpush1.bf16.msra.mxu0 %v7202_v51 }
 0x95d   :  { %6398 = vmatprep.subr.bf16.mxu0 %v7205_v44 }
 0xa24   :  { %v4442_v53 = vpop.f32.mrb[24].mxu1 }
 0xa25   :  { %v4443_v32 = vadd.f32 %v6190_v52, %v4442_v53  ;;  %v6504_v36 = vpop.f32.mrb[25].mxu1 }
 0xa26   :  { %v4445_v46 = vpop.f32.mrb[26].mxu1  ;;  %v7232_v36 = vld [vmem:[#allocation35 + $0x34] ss:$8 sps:$4 sm:$0xff]  }
 0xa27   :  { %v4446_v55 = vadd.f32 %v6190_v52, %v4445_v46  ;;  %v6505_v54 = vpop.f32.mrb[27].mxu1  ;;  %v4449_v56 = vmax.f32 %v4443_v32, 0.0  ;;  %v7230_v46 = vld [vmem:[#allocation35 + $0x30] ss:$8 sps:$4 sm:$0xff]   ;;  %4924 = vmatprep.subr.bf16.mxu1 %v7232_v36 }
 0xa28   :  { %4925 = vmatpush1.bf16.msra.mxu1 %v7230_v46  ;;  %v7235_v54 = vld [vmem:[#allocation35 + $0x44] ss:$8 sps:$4 sm:$0xff]  }
 0xa29   :  { %v4450_v57 = vmax.f32 %v4446_v55, 0.0  ;;  %v7233_v55 = vld [vmem:[#allocation35 + $0x40] ss:$8 sps:$4 sm:$0xff]   ;;  %4926 = vmatprep.subr.bf16.mxu1 %v7235_v54 }
 0xa2b   :  { %v4451_v59 = vpack.c.bf16 %v4450_v57, %v4449_v56  ;;  %v7238_v56 = vld [vmem:[#allocation35 + $0x54] ss:$8 sps:$4 sm:$0xff]   ;;  %v7236_v57 = vld [vmem:[#allocation35 + $0x50] ss:$8 sps:$4 sm:$0xff]  }
 0xa2c   :  { %4927 = vmatpush1.bf16.msra.mxu1 %v7233_v55 }
 0xa2d   :  { %4593 = vmatmul.mubr.bf16.vlgmr.msra.gmra.mrb[28].mxu0 %v4451_v59  ;;  %4928 = vmatprep.subr.bf16.mxu1 %v7238_v56  ;;  %v7239_v59 = vld [vmem:[#allocation35 + $0x60] ss:$8 sps:$4 sm:$0xff]  }
 0xa2e   :  { %6399 = vmatpush3.bf16.msra.mxu0 %v7206_v58  ;;  %v7241_v58 = vld [vmem:[#allocation35 + $0x64] ss:$8 sps:$4 sm:$0xff]  }
 0xa2f   :  { %6400 = vmatprep.subr.bf16.mxu0 %v7207_v61  ;;  %v7244_v61 = vld [vmem:[#allocation35 + $0x74] ss:$8 sps:$4 sm:$0xff]  }
 0xa30   :  { %4929 = vmatpush1.bf16.msra.mxu1 %v7236_v57 }
 0xa31   :  { %4930 = vmatprep.subr.bf16.mxu1 %v7241_v58 }
 0xa32   :  { %6401 = vmatpush3.bf16.msra.mxu0 %v7208_v62  ;;  %v7242_v62 = vld [vmem:[#allocation35 + $0x70] ss:$8 sps:$4 sm:$0xff]  }
 0xa33   :  { %6402 = vmatprep.subr.bf16.mxu0 %v7209_v63  ;;  %v7245_v63 = vld [vmem:[%s8653_s16] ss:$8 sps:$4 sm:$0xff]  }
 0xa34   :  { %4931 = vmatpush1.bf16.msra.mxu1 %v7239_v59 }
 0xa35   :  { %4932 = vmatprep.subr.bf16.mxu1 %v7244_v61 }
 0xa36   :  { %6403 = vmatpush3.bf16.msra.mxu0 %v7210_v1  ;;  %v7247_v1 = vld [vmem:[%s8653_s16 + $0x4] ss:$8 sps:$4 sm:$0xff]  }
 0xa37   :  { %6404 = vmatprep.subr.bf16.mxu0 %v7211_v2  ;;  %v7250_v2 = vld [vmem:[%s8653_s16 + $0x14] ss:$8 sps:$4 sm:$0xff]  }
 0xa38   :  { %4933 = vmatpush1.bf16.msra.mxu1 %v7242_v62 }
 0xa3a   :  { %6405 = vmatpush3.bf16.msra.mxu0 %v7212_v3  ;;  %v7248_v3 = vld [vmem:[%s8653_s16 + $0x10] ss:$8 sps:$4 sm:$0xff]  }
 0xa3b   :  { %6406 = vmatprep.subr.bf16.mxu0 %v7213_v4  ;;  %v7253_v4 = vld [vmem:[%s8653_s16 + $0x24] ss:$8 sps:$4 sm:$0xff]  }
 0xa3e   :  { %6407 = vmatpush3.bf16.msra.mxu0 %v7214_v5  ;;  %v7251_v5 = vld [vmem:[%s8653_s16 + $0x20] ss:$8 sps:$4 sm:$0xff]  }
 0xa3f   :  { %6408 = vmatprep.subr.bf16.mxu0 %v7215_v6  ;;  %v7256_v6 = vld [vmem:[%s8653_s16 + $0x34] ss:$8 sps:$4 sm:$0xff]  }
 0xa42   :  { %6409 = vmatpush3.bf16.msra.mxu0 %v7216_v7  ;;  %v7254_v7 = vld [vmem:[%s8653_s16 + $0x30] ss:$8 sps:$4 sm:$0xff]  }
 0xa43   :  { %6410 = vmatprep.subr.bf16.mxu0 %v7217_v8  ;;  %v7259_v8 = vld [vmem:[%s8653_s16 + $0x44] ss:$8 sps:$4 sm:$0xff]  }
 0xa46   :  { %6411 = vmatpush3.bf16.msra.mxu0 %v7218_v9  ;;  %v7257_v9 = vld [vmem:[%s8653_s16 + $0x40] ss:$8 sps:$4 sm:$0xff]  }
 0xa47   :  { %6412 = vmatprep.subr.bf16.mxu0 %v7219_v10  ;;  %v7262_v10 = vld [vmem:[%s8653_s16 + $0x54] ss:$8 sps:$4 sm:$0xff]  }
 0xa4a   :  { %6413 = vmatpush3.bf16.msra.mxu0 %v7220_v11  ;;  %v7260_v11 = vld [vmem:[%s8653_s16 + $0x50] ss:$8 sps:$4 sm:$0xff]  }
 0xa4b   :  { %5171 = vmatprep.subr.bf16.mxu0 %v7247_v1 }
 0xb00   :  { %v4594_v15 = vpop.f32.mrb[28].mxu0 }
 0xb01   :  { %v4595_v18 = vadd.f32 %v4594_v15, %v4473_v13  ;;  %v4596_v0 = vpop.f32.mrb[29].mxu0  ;;  %v7266_v15 = vld [vmem:[%s8653_s16 + $0x70] ss:$8 sps:$4 sm:$0xff]  }
 0xb02   :  { %v4597_v19 = vadd.f32 %v4596_v0, %v4477_v14  ;;  %v4598_v20 = vpop.f32.mrb[30].mxu0  ;;  %v7269_v0 = vld [vmem:[%s8653_s16 + $0x80] ss:$8 sps:$4 sm:$0xff]  }
 0xb03   :  { %v4599_v21 = vadd.f32 %v4598_v20, %v4473_v13  ;;  %v4600_v38 = vpop.f32.mrb[31].mxu0  ;;  %v4603_v22 = vmax.f32 %v4595_v18, 0.0  ;;  %v7263_v13 = vld [vmem:[%s8653_s16 + $0x60] ss:$8 sps:$4 sm:$0xff]   ;;  %v7271_v18 = vld [vmem:[%s8653_s16 + $0x84] ss:$8 sps:$4 sm:$0xff]  }
 0xb04   :  { %v4601_v41 = vadd.f32 %v4600_v38, %v4477_v14  ;;  %v4604_v24 = vmax.f32 %v4597_v19, 0.0  ;;  %v7268_v14 = vld [vmem:[%s8653_s16 + $0x74] ss:$8 sps:$4 sm:$0xff]   ;;  %v7272_v20 = vld [vmem:[%s8653_s16 + $0x90] ss:$8 sps:$4 sm:$0xff]  }
 0xb05   :  { %v4605_v23 = vmax.f32 %v4599_v21, 0.0  ;;  %v7274_v19 = vld [vmem:[%s8653_s16 + $0x94] ss:$8 sps:$4 sm:$0xff]   ;;  %v7277_v21 = vld [vmem:[%s8653_s16 + $0xa4] ss:$8 sps:$4 sm:$0xff]  }
 0xb06   :  { %v4606_v26 = vmax.f32 %v4601_v41, 0.0  ;;  %v7275_v38 = vld [vmem:[%s8653_s16 + $0xa0] ss:$8 sps:$4 sm:$0xff]   ;;  %v7280_v41 = vld [vmem:[%s8653_s16 + $0xb4] ss:$8 sps:$4 sm:$0xff]  }
 0xb07   :  { %v4607_v27 = vpack.c.bf16 %v4605_v23, %v4603_v22  ;;  %v7278_v22 = vld [vmem:[%s8653_s16 + $0xb0] ss:$8 sps:$4 sm:$0xff]   ;;  %v7283_v23 = vld [vmem:[%s8653_s16 + $0xc4] ss:$8 sps:$4 sm:$0xff]  }
 0xb08   :  { %v4608_v28 = vpack.c.bf16 %v4606_v26, %v4604_v24  ;;  %v7281_v24 = vld [vmem:[%s8653_s16 + $0xc0] ss:$8 sps:$4 sm:$0xff]   ;;  %v7286_v26 = vld [vmem:[%s8653_s16 + $0xd4] ss:$8 sps:$4 sm:$0xff]  }
 0xb0a   :  { %4776 = vmatprep.mubr.bf16.mxu0 %v4608_v28  ;;  %v4234_v28 = vpop.xlane.xlu1 %4233 }
 0xb0b   :  { %4777 = vmatmul.mubr.bf16.vlgmr.msra.gmra.mrb[32].mxu0 %v4607_v27  ;;  %v7284_v27 = vld [vmem:[%s8653_s16 + $0xd0] ss:$8 sps:$4 sm:$0xff]   ;;  %v4237_v33 = vmax.f32 %v4234_v28, 1e-30  ;;  %v7326_v28 = vld [vmem:[#allocation38 + $0xb0] ss:$8 sps:$4 sm:$0xff]  }
 0xb0c   :  { %5172 = vmatpush1.bf16.msra.mxu0 %v7245_v63 }
 0xb0d   :  { %5173 = vmatprep.subr.bf16.mxu0 %v7250_v2  ;;  %7357 = vrsqrt.f32 %v4237_v33  ;;  %v7332_v33 = vld [vmem:[#allocation38 + $0xd0] ss:$8 sps:$4 sm:$0xff]  }
 0xb0e   :  { %v4236_v30 = vpop.xlane.xlu1 %4235 }
 0xb0f   :  { %v4238_v39 = vmax.f32 %v4236_v30, 1e-30  ;;  %v7329_v30 = vld [vmem:[#allocation38 + $0xc0] ss:$8 sps:$4 sm:$0xff]  }
 0xb10   :  { %5174 = vmatpush1.bf16.msra.mxu0 %v7248_v3  ;;  %v7289_v3 = vld [vmem:[%s8653_s16 + $0xe4] ss:$8 sps:$4 sm:$0xff]  }
 0xb11   :  { %5175 = vmatprep.subr.bf16.mxu0 %v7253_v4  ;;  %7359 = vrsqrt.f32 %v4238_v39  ;;  %v7287_v4 = vld [vmem:[%s8653_s16 + $0xe0] ss:$8 sps:$4 sm:$0xff]  }
 0xb12   :  { %7361 = vrsqrt.f32 %v1015_v42  ;;  %v4826_v39 = vld [vmem:[#allocation37] sm:$0x3] }
 0xb13   :  { %v4831_v42 = vrot.slane %v4826_v39, %v8429_v43 }
 0xb14   :  { %5176 = vmatpush1.bf16.msra.mxu0 %v7251_v5  ;;  %v7290_v5 = vld [vmem:[%s8653_s16 + $0xf0] ss:$8 sps:$4 sm:$0xff]  }
 0xb15   :  { %5177 = vmatprep.subr.bf16.mxu0 %v7256_v6  ;;  %v7293_v6 = vld [vmem:[#allocation38] ss:$8 sps:$4 sm:$0xff]  }
 0xb18   :  { %5178 = vmatpush1.bf16.msra.mxu0 %v7254_v7  ;;  %v7295_v7 = vld [vmem:[#allocation38 + $0x4] ss:$8 sps:$4 sm:$0xff]  }
 0xb19   :  { %5179 = vmatprep.subr.bf16.mxu0 %v7259_v8  ;;  %v7298_v8 = vld [vmem:[#allocation38 + $0x14] ss:$8 sps:$4 sm:$0xff]   ;;  %5424 = vmatprep.subr.bf16.mxu1 %v7295_v7 }
 0xb1c   :  { %5180 = vmatpush1.bf16.msra.mxu0 %v7257_v9  ;;  %v7301_v9 = vld [vmem:[#allocation38 + $0x24] ss:$8 sps:$4 sm:$0xff]  }
 0xb1d   :  { %5181 = vmatprep.subr.bf16.mxu0 %v7262_v10  ;;  %v7299_v10 = vld [vmem:[#allocation38 + $0x20] ss:$8 sps:$4 sm:$0xff]  }
 0xb20   :  { %5182 = vmatpush1.bf16.msra.mxu0 %v7260_v11  ;;  %v7304_v11 = vld [vmem:[#allocation38 + $0x34] ss:$8 sps:$4 sm:$0xff]  }
 0xb21   :  { %5183 = vmatprep.subr.bf16.mxu0 %v7265_v12  ;;  %v7302_v12 = vld [vmem:[#allocation38 + $0x30] ss:$8 sps:$4 sm:$0xff]  }
 0xb24   :  { %5184 = vmatpush1.bf16.msra.mxu0 %v7263_v13  ;;  %v7307_v13 = vld [vmem:[#allocation38 + $0x44] ss:$8 sps:$4 sm:$0xff]  }
 0xb25   :  { %5185 = vmatprep.subr.bf16.mxu0 %v7268_v14  ;;  %v7305_v14 = vld [vmem:[#allocation38 + $0x40] ss:$8 sps:$4 sm:$0xff]  }
 0xb28   :  { %5186 = vmatpush1.bf16.msra.mxu0 %v7266_v15  ;;  %v7310_v15 = vld [vmem:[#allocation38 + $0x54] ss:$8 sps:$4 sm:$0xff]  }
 0xb29   :  { %5187 = vmatprep.subr.bf16.mxu0 %v7271_v18  ;;  %v7308_v18 = vld [vmem:[#allocation38 + $0x50] ss:$8 sps:$4 sm:$0xff]  }
 0xb2c   :  { %5188 = vmatpush1.bf16.msra.mxu0 %v7269_v0  ;;  %v7313_v0 = vld [vmem:[#allocation38 + $0x64] ss:$8 sps:$4 sm:$0xff]  }
 0xb2d   :  { %5189 = vmatprep.subr.bf16.mxu0 %v7274_v19  ;;  %v7311_v19 = vld [vmem:[#allocation38 + $0x60] ss:$8 sps:$4 sm:$0xff]  }
 0xb30   :  { %5190 = vmatpush1.bf16.msra.mxu0 %v7272_v20  ;;  %v7316_v20 = vld [vmem:[#allocation38 + $0x74] ss:$8 sps:$4 sm:$0xff]  }
 0xb31   :  { %5191 = vmatprep.subr.bf16.mxu0 %v7277_v21  ;;  %v7314_v21 = vld [vmem:[#allocation38 + $0x70] ss:$8 sps:$4 sm:$0xff]  }
 0xb34   :  { %5192 = vmatpush1.bf16.msra.mxu0 %v7275_v38  ;;  %v7319_v38 = vld [vmem:[#allocation38 + $0x84] ss:$8 sps:$4 sm:$0xff]  }
 0xb35   :  { %5193 = vmatprep.subr.bf16.mxu0 %v7280_v41  ;;  %v7317_v41 = vld [vmem:[#allocation38 + $0x80] ss:$8 sps:$4 sm:$0xff]  }
 0xb38   :  { %5194 = vmatpush1.bf16.msra.mxu0 %v7278_v22  ;;  %v7322_v22 = vld [vmem:[#allocation38 + $0x94] ss:$8 sps:$4 sm:$0xff]  }
 0xb39   :  { %5195 = vmatprep.subr.bf16.mxu0 %v7283_v23  ;;  %v7320_v23 = vld [vmem:[#allocation38 + $0x90] ss:$8 sps:$4 sm:$0xff]  }
 0xb3c   :  { %5196 = vmatpush1.bf16.msra.mxu0 %v7281_v24  ;;  %v7325_v24 = vld [vmem:[#allocation38 + $0xa4] ss:$8 sps:$4 sm:$0xff]  }
 0xb3d   :  { %5197 = vmatprep.subr.bf16.mxu0 %v7286_v26  ;;  %v7323_v26 = vld [vmem:[#allocation38 + $0xa0] ss:$8 sps:$4 sm:$0xff]  }
 0xb40   :  { %5198 = vmatpush1.bf16.msra.mxu0 %v7284_v27  ;;  %v7328_v27 = vld [vmem:[#allocation38 + $0xb4] ss:$8 sps:$4 sm:$0xff]  }
 0xb41   :  { %5199 = vmatprep.subr.bf16.mxu0 %v7289_v3  ;;  %v7350_v3 = vld [vmem:[#allocation40 + $0x20] sm:$0xff]  }
 0xb44   :  { %5200 = vmatpush1.bf16.msra.mxu0 %v7287_v4  ;;  %v7351_v4 = vld [vmem:[#allocation40 + $0x68] sm:$0xff]  }
 0xbde   :  { %v6414_v47 = vpop.f32.mrb[32].mxu0 }
 0xbdf   :  { %v6415_v37 = vpop.f32.mrb[33].mxu0 }
 0xbe0   :  { %v6416_v40 = vadd.f32 %v6415_v37, %v6414_v47  ;;  %v6417_v49 = vpop.f32.mrb[34].mxu0  ;;  %v1016_v47 = vmax.f32 %v1014_v31, 1e-30  ;;  %v7334_v31 = vld [vmem:[#allocation38 + $0xd4] ss:$8 sps:$4 sm:$0xff]  }
 0xbe1   :  { %v6418_v50 = vpop.f32.mrb[35].mxu0 }
 0xbe2   :  { %v4779_v25 = vadd.f32 %v6416_v40, %v6212_v48  ;;  %v6419_v60 = vadd.f32 %v6418_v50, %v6417_v49  ;;  %7363 = vrsqrt.f32 %v1016_v47  ;;  %v7358_v50 = vpop.eup %7357  ;;  %v4835_v47 = vrot.slane %v4826_v39, %v8432_v45 }
 0xbe4   :  { %v8542_v51 = vmax.f32 %v4779_v25, 0.0  ;;  %v4782_v44 = vadd.f32 %v6419_v60, %v6212_v48  ;;  %v7360_v25 = vpop.eup %7359 }
 0xbe5   :  { %v7362_v60 = vpop.eup %7361 }
 0xbe6   :  { %v8544_v52 = vmax.f32 %v4782_v44, 0.0  ;;  %v4787_v53 = vmul.f32 %v8542_v51, %v8542_v51  ;;  %v1019_v36 = vmul.f32 %v7362_v60, %v8463_v34 }
 0xbe8   :  { %4789 = vadd.xlane.f32.xlu0 %v4787_v53  ;;  %v4788_v32 = vmul.f32 %v8544_v52, %v8544_v52  ;;  %v4241_v53 = vmul.f32 %v7358_v50, %v8530_v16  ;;  %v4799_v59 = vmul.f32 0.4, %v1019_v36 }
 0xbea   :  { %4791 = vadd.xlane.f32.xlu1 %v4788_v32  ;;  %v4242_v32 = vmul.f32 %v7360_v25, %v8532_v17  ;;  %v4801_v54 = vmul.f32 0.35, %v4241_v53 }
 0xbec   :  { %v7364_v44 = vpop.eup %7363  ;;  %v4802_v56 = vmul.f32 0.35, %v4242_v32  ;;  %v4803_v17 = vadd.f32 %v4801_v54, %v4799_v59  ;;  %v7338_v59 = vld [vmem:[#allocation38 + $0xf0] ss:$8 sps:$4 sm:$0xff]  }
 0xbed   :  { %v1020_v46 = vmul.f32 %v7364_v44, %v8465_v35 }
 0xbef   :  { %v4800_v61 = vmul.f32 0.4, %v1020_v46 }
 0xbf1   :  { %v4804_v63 = vadd.f32 %v4802_v56, %v4800_v61  ;;  %v7337_v56 = vld [vmem:[#allocation38 + $0xe4] ss:$8 sps:$4 sm:$0xff]  }
 0xbf2   :  { %v7341_v61 = vld [vmem:[#allocation40 + $0x40] sm:$0xff]  }
 0xc75   :  { %v4790_v48 = vpop.xlane.xlu0 %4789 }
 0xc76   :  { %v4793_v37 = vmax.f32 %v4790_v48, 1e-30 }
 0xc77   :  { %v4792_v40 = vpop.xlane.xlu1 %4791 }
 0xc78   :  { %7365 = vrsqrt.f32 %v4793_v37  ;;  %v4794_v49 = vmax.f32 %v4792_v40, 1e-30 }
 0xc7a   :  { %7367 = vrsqrt.f32 %v4794_v49 }
 0xc82   :  { %v7366_v55 = vpop.eup %7365 }
 0xc83   :  { %v4797_v57 = vmul.f32 %v7366_v55, %v8542_v51  ;;  %v7292_v51 = vld [vmem:[%s8653_s16 + $0xf4] ss:$8 sps:$4 sm:$0xff]  }
 0xc84   :  { %v7368_v58 = vpop.eup %7367  ;;  %5201 = vmatprep.subr.bf16.mxu0 %v7292_v51  ;;  %v4999_v51 = vld [vmem:[%s8654_s20] sm:$0x3] }
 0xc85   :  { %v4798_v16 = vmul.f32 %v7368_v58, %v8544_v52  ;;  %v4805_v62 = vmul.f32 0.25, %v4797_v57  ;;  %5202 = vmatpush1.bf16.msra.mxu0 %v7290_v5  ;;  %v7296_v52 = vld [vmem:[#allocation38 + $0x10] ss:$8 sps:$4 sm:$0xff]   ;;  %v7335_v57 = vld [vmem:[#allocation38 + $0xe0] ss:$8 sps:$4 sm:$0xff]   ;;  %v5004_v5 = vrot.slane %v4999_v51, %v8429_v43 }
 0xc86   :  { %v7340_v58 = vld [vmem:[#allocation38 + $0xf4] ss:$8 sps:$4 sm:$0xff]   ;;  %6420 = vmatprep.subr.bf16.mxu0 %v7341_v61 }
 0xc87   :  { %v4806_v34 = vmul.f32 0.25, %v4798_v16  ;;  %v4807_v1 = vadd.f32 %v4805_v62, %v4803_v17  ;;  %v7342_v16 = vld [vmem:[#allocation40] sm:$0xff]   ;;  %v7343_v62 = vld [vmem:[#allocation40 + $0x48] sm:$0xff]  }
 0xc88   :  { %v7344_v17 = vld [vmem:[#allocation40 + $0x8] sm:$0xff]  }
 0xc89   :  { %v4808_v35 = vadd.f32 %v4806_v34, %v4804_v63  ;;  %v7345_v63 = vld [vmem:[#allocation40 + $0x50] sm:$0xff]  }
 0xc8a   :  { %v7346_v34 = vld [vmem:[#allocation40 + $0x10] sm:$0xff]  }
 0xc8b   :  { %v4809_v2 = vpack.c.bf16 %v4808_v35, %v4807_v1  ;;  %v7347_v1 = vld [vmem:[#allocation40 + $0x58] sm:$0xff]  }
 0xc8c   :  { %v7348_v35 = vld [vmem:[#allocation40 + $0x18] sm:$0xff]  }
 0xc8d   :  { %4951 = vmatmul.mubr.bf16.vlgmr.msra.gmra.mrb[28].mxu1 %v4809_v2  ;;  %v7349_v2 = vld [vmem:[#allocation40 + $0x60] sm:$0xff]  }
 0xc8e   :  { %5425 = vmatpush1.bf16.msra.mxu1 %v7293_v6  ;;  %v5008_v6 = vrot.slane %v4999_v51, %v8432_v45 }
 0xc8f   :  { %5426 = vmatprep.subr.bf16.mxu1 %v7298_v8 }
 0xc92   :  { %5427 = vmatpush1.bf16.msra.mxu1 %v7296_v52 }
 0xc93   :  { %5428 = vmatprep.subr.bf16.mxu1 %v7301_v9 }
 0xc96   :  { %5429 = vmatpush1.bf16.msra.mxu1 %v7299_v10 }
 0xc97   :  { %5430 = vmatprep.subr.bf16.mxu1 %v7304_v11 }
 0xc9a   :  { %5431 = vmatpush1.bf16.msra.mxu1 %v7302_v12 }
 0xc9b   :  { %5432 = vmatprep.subr.bf16.mxu1 %v7307_v13 }
 0xc9e   :  { %5433 = vmatpush1.bf16.msra.mxu1 %v7305_v14 }
 0xc9f   :  { %5434 = vmatprep.subr.bf16.mxu1 %v7310_v15 }
 0xca2   :  { %5435 = vmatpush1.bf16.msra.mxu1 %v7308_v18 }
 0xca3   :  { %5436 = vmatprep.subr.bf16.mxu1 %v7313_v0 }
 0xca6   :  { %5437 = vmatpush1.bf16.msra.mxu1 %v7311_v19 }
 0xca7   :  { %5438 = vmatprep.subr.bf16.mxu1 %v7316_v20 }
 0xcaa   :  { %5439 = vmatpush1.bf16.msra.mxu1 %v7314_v21  ;;  %v7352_v21 = vld [vmem:[#allocation40 + $0x28] sm:$0xff]  }
 0xcab   :  { %5440 = vmatprep.subr.bf16.mxu1 %v7319_v38  ;;  %v7353_v38 = vld [vmem:[#allocation40 + $0x70] sm:$0xff]  }
 0xcae   :  { %5441 = vmatpush1.bf16.msra.mxu1 %v7317_v41  ;;  %v7354_v41 = vld [vmem:[#allocation40 + $0x30] sm:$0xff]  }
 0xcaf   :  { %5442 = vmatprep.subr.bf16.mxu1 %v7322_v22  ;;  %v7355_v22 = vld [vmem:[#allocation40 + $0x78] sm:$0xff]  }
 0xcb2   :  { %5443 = vmatpush1.bf16.msra.mxu1 %v7320_v23  ;;  %v7356_v23 = vld [vmem:[#allocation40 + $0x38] sm:$0xff]  }
 0xcb3   :  { %5444 = vmatprep.subr.bf16.mxu1 %v7325_v24  ;;  %v5252_v24 = vld [vmem:[%s8213_s5] sm:$0x3]  ;;  %s8044_s5 = smov [#allocation41]  }
 0xcb6   :  { %5445 = vmatpush1.bf16.msra.mxu1 %v7323_v26  ;;  %v5257_v26 = vrot.slane %v5252_v24, %v8429_v43 }
 0xcb7   :  { %5446 = vmatprep.subr.bf16.mxu1 %v7328_v27  ;;  %v5261_v27 = vrot.slane %v5252_v24, %v8432_v45 }
 0xcba   :  { %5447 = vmatpush1.bf16.msra.mxu1 %v7326_v28 }
 0xcbb   :  { %5448 = vmatprep.subr.bf16.mxu1 %v7331_v29 }
 0xcbe   :  { %5449 = vmatpush1.bf16.msra.mxu1 %v7329_v30 }
 0xcbf   :  { %5450 = vmatprep.subr.bf16.mxu1 %v7334_v31 }
 0xcc2   :  { %5451 = vmatpush1.bf16.msra.mxu1 %v7332_v33 }
 0xcc3   :  { %5452 = vmatprep.subr.bf16.mxu1 %v7337_v56 }
 0xcc6   :  { %5453 = vmatpush1.bf16.msra.mxu1 %v7335_v57 }
 0xcc7   :  { %5454 = vmatprep.subr.bf16.mxu1 %v7340_v58 }
 0xcca   :  { %5455 = vmatpush1.bf16.msra.mxu1 %v7338_v59 }
 0xd60   :  { %v4952_v48 = vpop.f32.mrb[28].mxu1 }
 0xd61   :  { %v4953_v37 = vadd.f32 %v4952_v48, %v4831_v42  ;;  %v4954_v40 = vpop.f32.mrb[29].mxu1 }
 0xd62   :  { %v4955_v49 = vadd.f32 %v4954_v40, %v4835_v47  ;;  %v4956_v50 = vpop.f32.mrb[30].mxu1 }
 0xd63   :  { %v4957_v25 = vadd.f32 %v4956_v50, %v4831_v42  ;;  %v4958_v60 = vpop.f32.mrb[31].mxu1  ;;  %v4961_v53 = vmax.f32 %v4953_v37, 0.0 }
 0xd64   :  { %v4959_v44 = vadd.f32 %v4958_v60, %v4835_v47  ;;  %v4962_v36 = vmax.f32 %v4955_v49, 0.0  ;;  %v6309_v60 = vld [vmem:[%s8223_s17] ss:$0 sm:$0xff]  ;;  %s5670_s17 = sshll.u32 %s8044_s5, 4  ;;  %s5671_s17 = int_to_ptr.vmem [resolvable:$true] %s5670_s17 }
 0xd65   :  { %v4963_v32 = vmax.f32 %v4957_v25, 0.0  ;;  %s7923_s18 = scalar_lea.vmem %s5671_s17, 256  ;;  %p7928_p5 = scmp.lt.s32.totalorder %s5671_s17, %s5671_s17 }
 0xd66   :  { %v4964_v46 = vmax.f32 %v4959_v44, 0.0  ;;  %p7924_p4 = scmp.ne.s32.totalorder %s5671_s17, %s7923_s18  ;;  %p7929_p6 = scmp.lt.s32.totalorder %s7923_s18, %s7923_s18 }
 0xd67   :  { %v4965_v55 = vpack.c.bf16 %v4963_v32, %v4961_v53 }
 0xd68   :  { %v4966_v54 = vpack.c.bf16 %v4964_v46, %v4962_v36  ;;  %p7930_p7 = por %p7929_p6, %p7928_p5 }
 0xd6a   :  { %5203 = vmatprep.mubr.bf16.mxu0 %v4966_v54  ;;  %p7931_p8 = pnand %p7930_p7, %p7924_p4 }
 0xd6b   :  { %5204 = vmatmul.mubr.bf16.vlgmr.msra.gmra.mrb[36].mxu0 %v4965_v55 }
 0xd6c   :  { %6421 = vmatpush3.bf16.msra.mxu0 %v7342_v16 }
 0xd6d   :  { %6422 = vmatprep.subr.bf16.mxu0 %v7343_v62 }
 0xd70   :  { %6423 = vmatpush3.bf16.msra.mxu0 %v7344_v17 }
 0xd71   :  { %6424 = vmatprep.subr.bf16.mxu0 %v7345_v63 }
 0xd74   :  { %6425 = vmatpush3.bf16.msra.mxu0 %v7346_v34 }
 0xd75   :  { %6426 = vmatprep.subr.bf16.mxu0 %v7347_v1 }
 0xd78   :  { %6427 = vmatpush3.bf16.msra.mxu0 %v7348_v35 }
 0xd79   :  { %6428 = vmatprep.subr.bf16.mxu0 %v7349_v2 }
 0xd7c   :  { %6429 = vmatpush3.bf16.msra.mxu0 %v7350_v3 }
 0xd7d   :  { %6430 = vmatprep.subr.bf16.mxu0 %v7351_v4 }
 0xd80   :  { %6431 = vmatpush3.bf16.msra.mxu0 %v7352_v21 }
 0xd81   :  { %6432 = vmatprep.subr.bf16.mxu0 %v7353_v38 }
 0xd84   :  { %6433 = vmatpush3.bf16.msra.mxu0 %v7354_v41 }
 0xd85   :  { %6434 = vmatprep.subr.bf16.mxu0 %v7355_v22 }
 0xd88   :  { %6435 = vmatpush3.bf16.msra.mxu0 %v7356_v23 }
 0xe3e   :  { %v5205_v7 = vpop.f32.mrb[36].mxu0 }
 0xe3f   :  { %v5206_v8 = vadd.f32 %v5205_v7, %v5004_v5  ;;  %v5207_v52 = vpop.f32.mrb[37].mxu0 }
 0xe40   :  { %v5208_v9 = vadd.f32 %v5207_v52, %v5008_v6  ;;  %v5209_v10 = vpop.f32.mrb[38].mxu0 }
 0xe41   :  { %v5210_v11 = vadd.f32 %v5209_v10, %v5004_v5  ;;  %v5211_v12 = vpop.f32.mrb[39].mxu0  ;;  %v5214_v14 = vmax.f32 %v5206_v8, 0.0 }
 0xe42   :  { %v5212_v13 = vadd.f32 %v5211_v12, %v5008_v6  ;;  %v5215_v18 = vmax.f32 %v5208_v9, 0.0 }
 0xe43   :  { %v5216_v15 = vmax.f32 %v5210_v11, 0.0 }
 0xe44   :  { %v5217_v0 = vmax.f32 %v5212_v13, 0.0 }
 0xe45   :  { %v5218_v19 = vpack.c.bf16 %v5216_v15, %v5214_v14 }
 0xe46   :  { %v5219_v20 = vpack.c.bf16 %v5217_v0, %v5215_v18 }
 0xe48   :  { %5456 = vmatprep.mubr.bf16.mxu1 %v5219_v20 }
 0xe49   :  { %5457 = vmatmul.mubr.bf16.vlgmr.msra.gmra.mrb[32].mxu1 %v5218_v19 }
 0xf1c   :  { %v5458_v28 = vpop.f32.mrb[32].mxu1 }
 0xf1d   :  { %v5459_v29 = vadd.f32 %v5458_v28, %v5257_v26  ;;  %v5460_v30 = vpop.f32.mrb[33].mxu1 }
 0xf1e   :  { %v5461_v31 = vadd.f32 %v5460_v30, %v5261_v27  ;;  %v5462_v33 = vpop.f32.mrb[34].mxu1 }
 0xf1f   :  { %v5463_v39 = vadd.f32 %v5462_v33, %v5257_v26  ;;  %v5464_v42 = vpop.f32.mrb[35].mxu1  ;;  %v5467_v48 = vmax.f32 %v5459_v29, 0.0 }
 0xf20   :  { %v5465_v47 = vadd.f32 %v5464_v42, %v5261_v27  ;;  %v5468_v40 = vmax.f32 %v5461_v31, 0.0 }
 0xf21   :  { %v5469_v37 = vmax.f32 %v5463_v39, 0.0 }
 0xf22   :  { %v5470_v49 = vmax.f32 %v5465_v47, 0.0 }
 0xf23   :  { %v5471_v50 = vpack.c.bf16 %v5469_v37, %v5467_v48 }
 0xf24   :  { %v5472_v25 = vpack.c.bf16 %v5470_v49, %v5468_v40 }
 0xf26   :  { %5640 = vmatprep.mubr.bf16.mxu0 %v5472_v25 }
 0xf27   :  { %5641 = vmatmul.mubr.bf16.vlgmr.msra.gmra.mrb[40].mxu0 %v5471_v50 }
 0xffa   :  { %v6436_v43 = vpop.f32.mrb[40].mxu0 }
 0xffb   :  { %v6437_v45 = vpop.f32.mrb[41].mxu0 }
 0xffc   :  { %v6438_v44 = vadd.f32 %v6437_v45, %v6436_v43  ;;  %v6439_v53 = vpop.f32.mrb[42].mxu0 }
 0xffd   :  { %v6440_v32 = vpop.f32.mrb[43].mxu0 }
 0xffe   :  { %v5643_v36 = vadd.f32 %v6438_v44, %v6309_v60  ;;  %v6441_v46 = vadd.f32 %v6440_v32, %v6439_v53 }
0x1000   :  { %v5649_v55 = vmax.f32 %v5643_v36, 0.0  ;;  %v5646_v54 = vadd.f32 %v6441_v46, %v6309_v60 }
0x1002   :  { %v5650_v56 = vmax.f32 %v5646_v54, 0.0  ;;  %v5651_v57 = vmul.f32 %v5649_v55, %v5649_v55 }
0x1004   :  { %5653 = vadd.xlane.f32.xlu0 %v5651_v57  ;;  %v5652_v58 = vmul.f32 %v5650_v56, %v5650_v56 }
0x1006   :  { %5655 = vadd.xlane.f32.xlu1 %v5652_v58 }
0x1091   :  { %v5654_v59 = vpop.xlane.xlu0 %5653 }
0x1092   :  { %v5657_v61 = vmax.f32 %v5654_v59, 1e-30 }
0x1093   :  { %v5656_v16 = vpop.xlane.xlu1 %5655 }
0x1094   :  { %7369 = vrsqrt.f32 %v5657_v61  ;;  %v5658_v62 = vmax.f32 %v5656_v16, 1e-30 }
0x1096   :  { %7371 = vrsqrt.f32 %v5658_v62 }
0x109e   :  { %v7370_v17 = vpop.eup %7369 }
0x109f   :  { %v5661_v63 = vmul.f32 %v7370_v17, %v5649_v55 }
0x10a0   :  { %v7372_v34 = vpop.eup %7371 }
0x10a1   :  { %v5662_v1 = vmul.f32 %v7372_v34, %v5650_v56  ;;  %5663 = vst [vmem:[#allocation41] sm:$0xff] %v5661_v63 }
0x10a3   :  { %5664 = vst [vmem:[#allocation41 + $0x8] sm:$0xff] %v5662_v1 }
0x10a4   :  { %7934 = shalt.err (!%p7931_p8)
}
0x10a5   :  { %s7935_s19 = scalar_lea.hbm %s8228_s8, 256 }
0x10a6   :  { %p7936_p9 = scmp.ne.s32.totalorder %s8228_s8, %s7935_s19  ;;  %p7939_p10 = scmp.lt.u32.totalorder %s7935_s19, %s8228_s8 }
0x10a8   :  { %p7941_p11 = pnand %p7939_p10, %p7936_p9 }
0x10aa   :  { %7944 = shalt.err (!%p7941_p11)
}
0x10ab   :  { %5676 = dma.vmem_to_hbm [thread:$0]  %s5671_s17, 256, %s8228_s8, [#allocation4], %s8012_s15, %s8012_s15, %s8013_s13  }
0x10ac   :  { %7971 = dma.done.wait [#allocation4], 256  }
0x10ad   :  { %7972 = vsyncadd [#allocation4], 4294967040 }
0x10ae   :  { %5680 = vsyncpa [#allocation3], 1 }
0x10af   :  { %5681 = vsyncpa [#allocation6], 1 }
0x10b0   :  { %5682 = vsyncpa [#allocation9], 1 }
0x10b1   :  { %5683 = vsyncpa [#allocation12], 1 }
0x10b2   :  { %5684 = vsyncpa [#allocation15], 1 }
0x10b3   :  { %5685 = vsyncpa [#allocation18], 1 }
0x10b4   :  { %5686 = vsyncpa [#allocation21], 1 }
0x10b5   :  { %5687 = vsyncpa [#allocation24], 1 }
0x10b6   :  { %5688 = vsyncpa [#allocation27], 1 }
0x10b7   :  { %5689 = vsyncpa [#allocation30], 1 }
0x10b8   :  { %5690 = vsyncpa [#allocation33], 1 }
0x10b9   :  { %5691 = vsyncpa [#allocation36], 1 }
0x10ba   :  { %5692 = vsyncpa [#allocation39], 1 }
0x10bb   :  { %5693 = vsyncpa [#allocation4], 1 }

</bundles_post_ra>
